<compile_context>
chip_gen: v7x
topology: tpu7x:2x2x1
jax: 0.10.0
libtpu: 0.0.40
codegen_flags: <defaults>
</compile_context>

<pallas_src>
import functools
import math

import jax
import jax.numpy as jnp
from jax.experimental import pallas as pl
from jax.experimental.pallas import tpu as pltpu

EMBED_DIM = 32
NUM_HEADS = 4
HEAD_DIM = EMBED_DIM // NUM_HEADS
FFN_DIM = 64
LN_EPS = 1e-5

VMEM = pltpu.MemorySpace.VMEM


def _vmem_spec():
    return pl.BlockSpec(memory_space=VMEM)


# ------------------------- fused decoder-layer kernel ------------------------

def _decoder_layer_kernel(
    # data
    x_ref,        # (2B*T, E)   both decoder streams, batch-major rows
    enc_ref,      # (2B*S, E)   both encoder streams, source-major then batch
    smask_ref,    # (H*2B*T, H*2B*T)  additive block-diag + per-stream attn mask
    emask_ref,    # (H*2B*T, H*B*S)   additive (head,batch)-matching mask
    # self-attention params (shared, all_share=True)
    wsa_in_ref, bsa_in_ref,     # (E, 3E) bf16, (1, 3E) f32   q-scaling folded
    wsa_out_ref, bsa_out_ref,   # (E, E)  bf16, (1, E)  f32
    g_sa_ref, be_sa_ref,        # (1, E), (1, E)
    # encoder-attention params
    wea_q_ref, bea_q_ref,       # (E, E)  bf16, (1, E)        q-scaling folded
    wea_kv_ref, bea_kv_ref,     # (E, 2E) bf16, (1, 2E)
    wea_out_ref, bea_out_ref,   # (E, E)  bf16 (x0.5 folded), (1, E)
    g_ea_ref, be_ea_ref,        # (1, E), (1, E)
    # FFN + final LN params
    w1_ref, b1_ref,             # (E, F) bf16, (1, F)
    w2_ref, b2_ref,             # (F, E) bf16, (1, E)
    g_f_ref, be_f_ref,          # (1, E), (1, E)
    # outputs
    y_ref,        # (2B*T, E)
    attnw_ref,    # (2B*T, S)   head-averaged matched-source enc-attn probs
    *, T, S, B, E, H):
    dh = E // H
    BB = 2 * B
    R = BB * T              # decoder rows (both streams)
    BT = B * T
    NK = H * B * S          # packed encoder-key rows per source
    f32, bf16 = jnp.float32, jnp.bfloat16

    def mm(a, w):
        return jnp.dot(a.astype(bf16), w.astype(bf16),
                       preferred_element_type=f32)

    def mm_nt(a, b):        # a @ b.T (contract last dims, no transpose)
        return jax.lax.dot_general(
            a.astype(bf16), b.astype(bf16),
            dimension_numbers=(((1,), (1,)), ((), ())),
            preferred_element_type=f32)

    def layer_norm(v, g, be):
        mu = jnp.mean(v, axis=-1, keepdims=True)
        d = v - mu
        var = jnp.mean(d * d, axis=-1, keepdims=True)
        return d * jax.lax.rsqrt(var + LN_EPS) * g + be

    def masked_softmax(scores, mask):
        sc = scores + mask
        m = jnp.max(sc, axis=-1, keepdims=True)
        ex = jnp.exp(sc - m)
        return ex * pl.reciprocal(jnp.sum(ex, axis=-1, keepdims=True),
                                  approx=True)

    def pack_heads(a, base):
        # (rows, >=base+E) -> (H*rows, dh); packed row order = (head, row)
        return jnp.concatenate(
            [a[:, base + h * dh: base + (h + 1) * dh] for h in range(H)],
            axis=0)

    def unpack_heads(a, rows):
        # (H*rows, dh) -> (rows, E); heads concatenated along lanes
        return jnp.concatenate(
            [a[h * rows:(h + 1) * rows, :] for h in range(H)], axis=1)

    x0 = x_ref[...]

    # ---- phase 1: self-attention (all streams/batches/heads in one matmul) --
    qkv = mm(x0, wsa_in_ref[...]) + bsa_in_ref[...]          # (R, 3E)
    q = pack_heads(qkv, 0)                                   # (H*R, dh)
    k = pack_heads(qkv, E)
    v = pack_heads(qkv, 2 * E)
    p = masked_softmax(mm_nt(q, k), smask_ref[...])          # (H*R, H*R)
    o = unpack_heads(mm(p, v), R)                            # (R, E)
    x1 = layer_norm(mm(o, wsa_out_ref[...]) + bsa_out_ref[...] + x0,
                    g_sa_ref[...], be_sa_ref[...])

    # ---- phase 2: encoder attention, both sources (separate softmaxes) ------
    qe = pack_heads(mm(x1, wea_q_ref[...]) + bea_q_ref[...], 0)   # (H*R, dh)
    kv = mm(enc_ref[...], wea_kv_ref[...]) + bea_kv_ref[...]      # (2B*S, 2E)
    emask = emask_ref[...]
    # selector that sums the (head,batch)-matched probability columns per
    # source position: j_mat[kb*S + j, j'] = [j == j']
    rr = jax.lax.broadcasted_iota(jnp.int32, (NK, S), 0)
    cc = jax.lax.broadcasted_iota(jnp.int32, (NK, S), 1)
    j_mat = (rr % S == cc).astype(f32)

    pv_sum = None
    attn_parts = []
    for es in range(2):                                      # encoder source
        kv_es = kv[es * B * S:(es + 1) * B * S, :]           # (B*S, 2E)
        k_es = pack_heads(kv_es, 0)                          # (NK, dh)
        v_es = pack_heads(kv_es, E)
        p_es = masked_softmax(mm_nt(qe, k_es), emask)        # (H*R, NK)
        pv = mm(p_es, v_es)                                  # (H*R, dh)
        pv_sum = pv if pv_sum is None else pv_sum + pv
        # matched-source probs for the queries of stream `es`, summed over heads
        colsum = mm(p_es, j_mat)                             # (H*R, S)
        attn_parts.append(
            sum(colsum[h * BB * T + es * BT: h * BB * T + es * BT + BT]
                for h in range(H)))
    attnw_ref[...] = jnp.concatenate(attn_parts, axis=0) * (1.0 / H)

    o_e = unpack_heads(pv_sum, R)                            # (R, E)
    x2 = layer_norm(mm(o_e, wea_out_ref[...]) + bea_out_ref[...] + x1,
                    g_ea_ref[...], be_ea_ref[...])

    # ---- phase 3: FFN (shared, ffn_share=True) ------------------------------
    h1 = jnp.maximum(mm(x2, w1_ref[...]) + b1_ref[...], 0.0)
    y = mm(h1, w2_ref[...]) + b2_ref[...]
    y_ref[...] = layer_norm(y + x2, g_f_ref[...], be_f_ref[...])


# ----------------------------- parameter prep --------------------------------

def _prep_params(p):
    """Pre-transpose to (in, out), fold q-scaling and the 0.5 mix, cast matmul
    weights to bf16, reshape biases/LN params to (1, X)."""
    e = EMBED_DIM
    scaling = HEAD_DIM ** -0.5
    sa, ea = p["self_attn"], p["encoder_attn"]
    bf16 = jnp.bfloat16

    col_scale = jnp.concatenate([jnp.full((e,), scaling, jnp.float32),
                                 jnp.ones((2 * e,), jnp.float32)])
    w_sa_in = (sa["in_proj_weight"].T * col_scale[None, :]).astype(bf16)
    b_sa_in = (sa["in_proj_bias"] * col_scale).reshape(1, 3 * e)

    w_ea_q = (ea["in_proj_weight"][:e].T * scaling).astype(bf16)
    b_ea_q = (ea["in_proj_bias"][:e] * scaling).reshape(1, e)
    w_ea_kv = ea["in_proj_weight"][e:].T.astype(bf16)
    b_ea_kv = ea["in_proj_bias"][e:].reshape(1, 2 * e)

    # 0.5 cross-source mixing (eval, dec_drop_path_ratio=0 => ratio=1.0) folded
    # into the enc-attn output projection weight; bias stays unscaled since
    # 0.5*(a0 W + b) + 0.5*(a1 W + b) == (a0 + a1)(0.5 W) + b.
    w_ea_out = (ea["out_proj_weight"].T * 0.5).astype(bf16)
    b_ea_out = ea["out_proj_bias"].reshape(1, e)

    return (
        w_sa_in, b_sa_in,
        sa["out_proj_weight"].T.astype(bf16), sa["out_proj_bias"].reshape(1, e),
        p["self_attn_ln"]["gamma"].reshape(1, e),
        p["self_attn_ln"]["beta"].reshape(1, e),
        w_ea_q, b_ea_q, w_ea_kv, b_ea_kv,
        w_ea_out, b_ea_out,
        p["encoder_attn_ln"]["gamma"].reshape(1, e),
        p["encoder_attn_ln"]["beta"].reshape(1, e),
        p["fc1_w"].T.astype(bf16), p["fc1_b"].reshape(1, FFN_DIM),
        p["fc2_w"].T.astype(bf16), p["fc2_b"].reshape(1, e),
        p["final_ln"]["gamma"].reshape(1, e),
        p["final_ln"]["beta"].reshape(1, e),
    )


# ------------------------------ mask building --------------------------------

def _build_masks(mask0, mask1, T, S, B, H):
    """Additive masks for the packed (head, stream, batch, time) attention.

    Packed decoder row index = ((h*2 + stream)*B + b)*T + t.
    Packed encoder key index (per source) = (h*B + b)*S + j.
    """
    BB = 2 * B
    nq = H * BB * T
    neg_inf = jnp.float32(-jnp.inf)

    qi = jnp.arange(nq)
    q_blk = qi // T                       # h*BB + stream*B + b
    q_t = qi % T
    q_h = q_blk // BB
    q_s = (q_blk % BB) // B
    q_b = q_blk % B

    # self-attention: block-diagonal in (h, stream, b) + the per-stream mask
    same = q_blk[:, None] == q_blk[None, :]
    stream_masks = jnp.stack([mask0, mask1], 0)               # (2, T, T)
    user = stream_masks[q_s[:, None], q_t[:, None], q_t[None, :]]
    smask = jnp.where(same, user, neg_inf)

    # encoder attention: query (h, b) must match key (h, b); same for both
    # sources.  TODO(synk): encoder_padding_mask would be added here.
    kj = jnp.arange(H * B * S)
    k_blk = kj // S                                           # h*B + b
    match = (q_h[:, None] * B + q_b[:, None]) == k_blk[None, :]
    emask = jnp.where(match, jnp.float32(0.0), neg_inf)
    return smask, emask


# --------------------------- decoder layer forward ---------------------------

def transformer_decoder_layer_forward(params, x, x_sen_piece, encoder_out,
                                      encoder_padding_mask, encoder_out_sen_piece,
                                      encoder_padding_mask_sen_piece,
                                      self_attn_mask=None,
                                      self_attn_mask_sen_piece=None):
    # eval mode, dec_drop_path_ratio == 0.0  =>  ratio = 1.0 ; dropouts = no-op
    # TODO(synk): incremental_state / prev_*_attn_state KV caching and
    #             key_padding_mask / encoder_padding_mask are not modeled.
    t, b, e = x.shape
    s = encoder_out.shape[0]
    assert e == EMBED_DIM

    # batch-major rows, streams concatenated (tiny XLA transposes; this keeps
    # the kernel's rows lane-dense and contiguous per sequence)
    xc = jnp.concatenate(
        [x.transpose(1, 0, 2), x_sen_piece.transpose(1, 0, 2)], axis=0
    ).reshape(2 * b * t, e)
    encc = jnp.concatenate(
        [encoder_out.transpose(1, 0, 2), encoder_out_sen_piece.transpose(1, 0, 2)],
        axis=0,
    ).reshape(2 * b * s, e)

    def _mask(m):
        if m is None:
            return jnp.zeros((t, t), jnp.float32)
        return m.astype(jnp.float32).reshape(t, t)

    smask, emask = _build_masks(_mask(self_attn_mask),
                                _mask(self_attn_mask_sen_piece),
                                t, s, b, NUM_HEADS)

    flat = _prep_params(params)
    kern = functools.partial(_decoder_layer_kernel,
                             T=t, S=s, B=b, E=e, H=NUM_HEADS)
    y2d, attnw = pl.pallas_call(
        kern,
        out_shape=(jax.ShapeDtypeStruct((2 * b * t, e), jnp.float32),
                   jax.ShapeDtypeStruct((2 * b * t, s), jnp.float32)),
        in_specs=[_vmem_spec()] * (4 + len(flat)),
        out_specs=(_vmem_spec(), _vmem_spec()),
    )(xc, encc, smask, emask, *flat)

    y = y2d.reshape(2 * b, t, e)
    aw = attnw.reshape(2 * b, t, s)
    x_out = y[:b].transpose(1, 0, 2)            # (T, B, E)
    sp_out = y[b:].transpose(1, 0, 2)           # (T, B, E)
    return x_out, aw[:b], sp_out, aw[b:]


# ------------------------------- param init ----------------------------------

def xavier_uniform(key, shape):
    fan_out, fan_in = shape
    bound = math.sqrt(6.0 / (fan_in + fan_out))
    return jax.random.uniform(key, shape, jnp.float32, -bound, bound)


def init_params(key):
    ks = jax.random.split(key, 6)

    def mha_params(k_in, k_out):
        return {
            "in_proj_weight": xavier_uniform(k_in, (3 * EMBED_DIM, EMBED_DIM)),
            "in_proj_bias": jnp.zeros((3 * EMBED_DIM,), jnp.float32),
            "out_proj_weight": xavier_uniform(k_out, (EMBED_DIM, EMBED_DIM)),
            "out_proj_bias": jnp.zeros((EMBED_DIM,), jnp.float32),
        }

    def ln_params():
        return {"gamma": jnp.ones((EMBED_DIM,), jnp.float32),
                "beta": jnp.zeros((EMBED_DIM,), jnp.float32)}

    return {
        "self_attn": mha_params(ks[0], ks[1]),
        "encoder_attn": mha_params(ks[2], ks[3]),
        "self_attn_ln": ln_params(),
        "encoder_attn_ln": ln_params(),
        "final_ln": ln_params(),
        "fc1_w": xavier_uniform(ks[4], (FFN_DIM, EMBED_DIM)),
        "fc1_b": jnp.zeros((FFN_DIM,), jnp.float32),
        "fc2_w": xavier_uniform(ks[5], (EMBED_DIM, FFN_DIM)),
        "fc2_b": jnp.zeros((EMBED_DIM,), jnp.float32),
    }


# ---------------------------------- main --------------------------------------

if __name__ == "__main__":
    T, B, S = 8, 2, 8  # tgt len, batch, src len

    root = jax.random.PRNGKey(0)
    pkey, k1, k2, k3, k4 = jax.random.split(root, 5)
    params = init_params(pkey)

    x = jax.random.normal(k1, (T, B, EMBED_DIM), jnp.float32)
    x_sen_piece = jax.random.normal(k2, (T, B, EMBED_DIM), jnp.float32)
    encoder_out = jax.random.normal(k3, (S, B, EMBED_DIM), jnp.float32)
    encoder_out_sen_piece = jax.random.normal(k4, (S, B, EMBED_DIM), jnp.float32)

    # causal self-attention mask (additive, -inf above the diagonal)
    causal_mask = jnp.triu(jnp.full((T, T), -jnp.inf, jnp.float32), k=1)

    fwd = jax.jit(functools.partial(transformer_decoder_layer_forward, params))
    out_x, attn, out_sp, attn_sp = fwd(
        x, x_sen_piece, encoder_out, None, encoder_out_sen_piece, None,
        causal_mask, causal_mask)

    jax.block_until_ready((out_x, attn, out_sp, attn_sp))
    assert out_x.shape == (T, B, EMBED_DIM)
    assert out_sp.shape == (T, B, EMBED_DIM)
    assert attn.shape == (B, T, S)
    assert attn_sp.shape == (B, T, S)
    assert bool(jnp.all(jnp.isfinite(out_x))) and bool(jnp.all(jnp.isfinite(out_sp)))
    assert bool(jnp.all(jnp.isfinite(attn))) and bool(jnp.all(jnp.isfinite(attn_sp)))
    print("KERNEL_OK")
</pallas_src>

<mosaic_0001>
module attributes {stable_mosaic.version = 11 : i64} {
  func.func @_decoder_layer_kernel(%arg0: memref<32x32xf32, #tpu.memory_space<vmem>>, %arg1: memref<32x32xf32, #tpu.memory_space<vmem>>, %arg2: memref<128x128xf32, #tpu.memory_space<vmem>>, %arg3: memref<128x64xf32, #tpu.memory_space<vmem>>, %arg4: memref<32x96xbf16, #tpu.memory_space<vmem>>, %arg5: memref<1x96xf32, #tpu.memory_space<vmem>>, %arg6: memref<32x32xbf16, #tpu.memory_space<vmem>>, %arg7: memref<1x32xf32, #tpu.memory_space<vmem>>, %arg8: memref<1x32xf32, #tpu.memory_space<vmem>>, %arg9: memref<1x32xf32, #tpu.memory_space<vmem>>, %arg10: memref<32x32xbf16, #tpu.memory_space<vmem>>, %arg11: memref<1x32xf32, #tpu.memory_space<vmem>>, %arg12: memref<32x64xbf16, #tpu.memory_space<vmem>>, %arg13: memref<1x64xf32, #tpu.memory_space<vmem>>, %arg14: memref<32x32xbf16, #tpu.memory_space<vmem>>, %arg15: memref<1x32xf32, #tpu.memory_space<vmem>>, %arg16: memref<1x32xf32, #tpu.memory_space<vmem>>, %arg17: memref<1x32xf32, #tpu.memory_space<vmem>>, %arg18: memref<32x64xbf16, #tpu.memory_space<vmem>>, %arg19: memref<1x64xf32, #tpu.memory_space<vmem>>, %arg20: memref<64x32xbf16, #tpu.memory_space<vmem>>, %arg21: memref<1x32xf32, #tpu.memory_space<vmem>>, %arg22: memref<1x32xf32, #tpu.memory_space<vmem>>, %arg23: memref<1x32xf32, #tpu.memory_space<vmem>>, %arg24: memref<32x32xf32, #tpu.memory_space<vmem>>, %arg25: memref<32x8xf32, #tpu.memory_space<vmem>>) attributes {dimension_semantics = [], scalar_prefetch = 0 : i64, scratch_operands = 0 : i64, tpu.core_type = #tpu.core_type<tc>} {
    %c0 = arith.constant 0 : index
    %c0_0 = arith.constant 0 : index
    %0 = vector.load %arg0[%c0, %c0_0] : memref<32x32xf32, #tpu.memory_space<vmem>>, vector<32x32xf32>
    %c0_1 = arith.constant 0 : index
    %c0_2 = arith.constant 0 : index
    %1 = vector.load %arg4[%c0_1, %c0_2] : memref<32x96xbf16, #tpu.memory_space<vmem>>, vector<32x96xbf16>
    %2 = arith.truncf %0 : vector<32x32xf32> to vector<32x32xbf16>
    %cst = arith.constant dense<0.000000e+00> : vector<32x96xf32>
    %3 = tpu.matmul %2, %1, %cst {dimension_numbers = #tpu.dot_dimension_numbers<[1], [0], [0], [1], [0, 0, 1, 1], [], []>} : vector<32x32xbf16>, vector<32x96xbf16>, vector<32x96xf32> -> vector<32x96xf32>
    %c0_3 = arith.constant 0 : index
    %c0_4 = arith.constant 0 : index
    %4 = vector.load %arg5[%c0_3, %c0_4] : memref<1x96xf32, #tpu.memory_space<vmem>>, vector<1x96xf32>
    %5 = vector.broadcast %4 : vector<1x96xf32> to vector<32x96xf32>
    %6 = arith.addf %3, %5 : vector<32x96xf32>
    %7 = vector.extract_strided_slice %6 {offsets = [0, 0], sizes = [32, 8], strides = [1, 1]} : vector<32x96xf32> to vector<32x8xf32>
    %8 = vector.extract_strided_slice %6 {offsets = [0, 8], sizes = [32, 8], strides = [1, 1]} : vector<32x96xf32> to vector<32x8xf32>
    %9 = vector.extract_strided_slice %6 {offsets = [0, 16], sizes = [32, 8], strides = [1, 1]} : vector<32x96xf32> to vector<32x8xf32>
    %10 = vector.extract_strided_slice %6 {offsets = [0, 24], sizes = [32, 8], strides = [1, 1]} : vector<32x96xf32> to vector<32x8xf32>
    %11 = tpu.concatenate %7, %8, %9, %10 in 0 : vector<32x8xf32>, vector<32x8xf32>, vector<32x8xf32>, vector<32x8xf32> -> vector<128x8xf32>
    %12 = vector.extract_strided_slice %6 {offsets = [0, 32], sizes = [32, 8], strides = [1, 1]} : vector<32x96xf32> to vector<32x8xf32>
    %13 = vector.extract_strided_slice %6 {offsets = [0, 40], sizes = [32, 8], strides = [1, 1]} : vector<32x96xf32> to vector<32x8xf32>
    %14 = vector.extract_strided_slice %6 {offsets = [0, 48], sizes = [32, 8], strides = [1, 1]} : vector<32x96xf32> to vector<32x8xf32>
    %15 = vector.extract_strided_slice %6 {offsets = [0, 56], sizes = [32, 8], strides = [1, 1]} : vector<32x96xf32> to vector<32x8xf32>
    %16 = tpu.concatenate %12, %13, %14, %15 in 0 : vector<32x8xf32>, vector<32x8xf32>, vector<32x8xf32>, vector<32x8xf32> -> vector<128x8xf32>
    %17 = vector.extract_strided_slice %6 {offsets = [0, 64], sizes = [32, 8], strides = [1, 1]} : vector<32x96xf32> to vector<32x8xf32>
    %18 = vector.extract_strided_slice %6 {offsets = [0, 72], sizes = [32, 8], strides = [1, 1]} : vector<32x96xf32> to vector<32x8xf32>
    %19 = vector.extract_strided_slice %6 {offsets = [0, 80], sizes = [32, 8], strides = [1, 1]} : vector<32x96xf32> to vector<32x8xf32>
    %20 = vector.extract_strided_slice %6 {offsets = [0, 88], sizes = [32, 8], strides = [1, 1]} : vector<32x96xf32> to vector<32x8xf32>
    %21 = tpu.concatenate %17, %18, %19, %20 in 0 : vector<32x8xf32>, vector<32x8xf32>, vector<32x8xf32>, vector<32x8xf32> -> vector<128x8xf32>
    %22 = arith.truncf %11 : vector<128x8xf32> to vector<128x8xbf16>
    %23 = arith.truncf %16 : vector<128x8xf32> to vector<128x8xbf16>
    %cst_5 = arith.constant dense<0.000000e+00> : vector<128x128xf32>
    %24 = tpu.matmul %22, %23, %cst_5 {dimension_numbers = #tpu.dot_dimension_numbers<[1], [1], [0], [0], [0, 0, 1, 0], [], []>} : vector<128x8xbf16>, vector<128x8xbf16>, vector<128x128xf32> -> vector<128x128xf32>
    %c0_6 = arith.constant 0 : index
    %c0_7 = arith.constant 0 : index
    %25 = vector.load %arg2[%c0_6, %c0_7] : memref<128x128xf32, #tpu.memory_space<vmem>>, vector<128x128xf32>
    %26 = arith.addf %24, %25 : vector<128x128xf32>
    %cst_8 = arith.constant dense<0xFF800000> : vector<128xf32>
    %27 = vector.multi_reduction <maximumf>, %26, %cst_8 [1] : vector<128x128xf32> to vector<128xf32>
    %28 = vector.shape_cast %27 : vector<128xf32> to vector<128x1xf32>
    %29 = vector.broadcast %28 : vector<128x1xf32> to vector<128x128xf32>
    %30 = arith.subf %26, %29 : vector<128x128xf32>
    %31 = math.exp %30 : vector<128x128xf32>
    %cst_9 = arith.constant dense<0.000000e+00> : vector<128xf32>
    %32 = vector.multi_reduction <add>, %31, %cst_9 [1] : vector<128x128xf32> to vector<128xf32>
    %33 = vector.shape_cast %32 : vector<128xf32> to vector<128x1xf32>
    %34 = tpu.reciprocal %33 {approx = true} : vector<128x1xf32> -> vector<128x1xf32>
    %35 = vector.broadcast %34 : vector<128x1xf32> to vector<128x128xf32>
    %36 = arith.mulf %31, %35 : vector<128x128xf32>
    %37 = arith.truncf %36 : vector<128x128xf32> to vector<128x128xbf16>
    %38 = arith.truncf %21 : vector<128x8xf32> to vector<128x8xbf16>
    %cst_10 = arith.constant dense<0.000000e+00> : vector<128x8xf32>
    %39 = tpu.matmul %37, %38, %cst_10 {dimension_numbers = #tpu.dot_dimension_numbers<[1], [0], [0], [1], [0, 0, 1, 1], [], []>} : vector<128x128xbf16>, vector<128x8xbf16>, vector<128x8xf32> -> vector<128x8xf32>
    %40 = vector.extract_strided_slice %39 {offsets = [0, 0], sizes = [32, 8], strides = [1, 1]} : vector<128x8xf32> to vector<32x8xf32>
    %41 = vector.extract_strided_slice %39 {offsets = [32, 0], sizes = [32, 8], strides = [1, 1]} : vector<128x8xf32> to vector<32x8xf32>
    %42 = vector.extract_strided_slice %39 {offsets = [64, 0], sizes = [32, 8], strides = [1, 1]} : vector<128x8xf32> to vector<32x8xf32>
    %43 = vector.extract_strided_slice %39 {offsets = [96, 0], sizes = [32, 8], strides = [1, 1]} : vector<128x8xf32> to vector<32x8xf32>
    %44 = tpu.concatenate %40, %41, %42, %43 in 1 : vector<32x8xf32>, vector<32x8xf32>, vector<32x8xf32>, vector<32x8xf32> -> vector<32x32xf32>
    %c0_11 = arith.constant 0 : index
    %c0_12 = arith.constant 0 : index
    %45 = vector.load %arg6[%c0_11, %c0_12] : memref<32x32xbf16, #tpu.memory_space<vmem>>, vector<32x32xbf16>
    %46 = arith.truncf %44 : vector<32x32xf32> to vector<32x32xbf16>
    %cst_13 = arith.constant dense<0.000000e+00> : vector<32x32xf32>
    %47 = tpu.matmul %46, %45, %cst_13 {dimension_numbers = #tpu.dot_dimension_numbers<[1], [0], [0], [1], [0, 0, 1, 1], [], []>} : vector<32x32xbf16>, vector<32x32xbf16>, vector<32x32xf32> -> vector<32x32xf32>
    %c0_14 = arith.constant 0 : index
    %c0_15 = arith.constant 0 : index
    %48 = vector.load %arg7[%c0_14, %c0_15] : memref<1x32xf32, #tpu.memory_space<vmem>>, vector<1x32xf32>
    %49 = vector.broadcast %48 : vector<1x32xf32> to vector<32x32xf32>
    %50 = arith.addf %47, %49 : vector<32x32xf32>
    %51 = arith.addf %50, %0 : vector<32x32xf32>
    %c0_16 = arith.constant 0 : index
    %c0_17 = arith.constant 0 : index
    %52 = vector.load %arg8[%c0_16, %c0_17] : memref<1x32xf32, #tpu.memory_space<vmem>>, vector<1x32xf32>
    %c0_18 = arith.constant 0 : index
    %c0_19 = arith.constant 0 : index
    %53 = vector.load %arg9[%c0_18, %c0_19] : memref<1x32xf32, #tpu.memory_space<vmem>>, vector<1x32xf32>
    %cst_20 = arith.constant dense<0.000000e+00> : vector<32xf32>
    %54 = vector.multi_reduction <add>, %51, %cst_20 [1] : vector<32x32xf32> to vector<32xf32>
    %55 = vector.shape_cast %54 : vector<32xf32> to vector<32x1xf32>
    %cst_21 = arith.constant 3.200000e+01 : f32
    %56 = vector.broadcast %cst_21 : f32 to vector<32x1xf32>
    %57 = arith.divf %55, %56 : vector<32x1xf32>
    %58 = vector.broadcast %57 : vector<32x1xf32> to vector<32x32xf32>
    %59 = arith.subf %51, %58 : vector<32x32xf32>
    %60 = arith.mulf %59, %59 : vector<32x32xf32>
    %cst_22 = arith.constant dense<0.000000e+00> : vector<32xf32>
    %61 = vector.multi_reduction <add>, %60, %cst_22 [1] : vector<32x32xf32> to vector<32xf32>
    %62 = vector.shape_cast %61 : vector<32xf32> to vector<32x1xf32>
    %cst_23 = arith.constant 3.200000e+01 : f32
    %63 = vector.broadcast %cst_23 : f32 to vector<32x1xf32>
    %64 = arith.divf %62, %63 : vector<32x1xf32>
    %cst_24 = arith.constant 9.99999974E-6 : f32
    %65 = vector.broadcast %cst_24 : f32 to vector<32x1xf32>
    %66 = arith.addf %64, %65 : vector<32x1xf32>
    %67 = math.rsqrt %66 : vector<32x1xf32>
    %68 = vector.broadcast %67 : vector<32x1xf32> to vector<32x32xf32>
    %69 = arith.mulf %59, %68 : vector<32x32xf32>
    %70 = vector.broadcast %52 : vector<1x32xf32> to vector<32x32xf32>
    %71 = arith.mulf %69, %70 : vector<32x32xf32>
    %72 = vector.broadcast %53 : vector<1x32xf32> to vector<32x32xf32>
    %73 = arith.addf %71, %72 : vector<32x32xf32>
    %c0_25 = arith.constant 0 : index
    %c0_26 = arith.constant 0 : index
    %74 = vector.load %arg10[%c0_25, %c0_26] : memref<32x32xbf16, #tpu.memory_space<vmem>>, vector<32x32xbf16>
    %75 = arith.truncf %73 : vector<32x32xf32> to vector<32x32xbf16>
    %cst_27 = arith.constant dense<0.000000e+00> : vector<32x32xf32>
    %76 = tpu.matmul %75, %74, %cst_27 {dimension_numbers = #tpu.dot_dimension_numbers<[1], [0], [0], [1], [0, 0, 1, 1], [], []>} : vector<32x32xbf16>, vector<32x32xbf16>, vector<32x32xf32> -> vector<32x32xf32>
    %c0_28 = arith.constant 0 : index
    %c0_29 = arith.constant 0 : index
    %77 = vector.load %arg11[%c0_28, %c0_29] : memref<1x32xf32, #tpu.memory_space<vmem>>, vector<1x32xf32>
    %78 = vector.broadcast %77 : vector<1x32xf32> to vector<32x32xf32>
    %79 = arith.addf %76, %78 : vector<32x32xf32>
    %80 = vector.extract_strided_slice %79 {offsets = [0, 0], sizes = [32, 8], strides = [1, 1]} : vector<32x32xf32> to vector<32x8xf32>
    %81 = vector.extract_strided_slice %79 {offsets = [0, 8], sizes = [32, 8], strides = [1, 1]} : vector<32x32xf32> to vector<32x8xf32>
    %82 = vector.extract_strided_slice %79 {offsets = [0, 16], sizes = [32, 8], strides = [1, 1]} : vector<32x32xf32> to vector<32x8xf32>
    %83 = vector.extract_strided_slice %79 {offsets = [0, 24], sizes = [32, 8], strides = [1, 1]} : vector<32x32xf32> to vector<32x8xf32>
    %84 = tpu.concatenate %80, %81, %82, %83 in 0 : vector<32x8xf32>, vector<32x8xf32>, vector<32x8xf32>, vector<32x8xf32> -> vector<128x8xf32>
    %c0_30 = arith.constant 0 : index
    %c0_31 = arith.constant 0 : index
    %85 = vector.load %arg1[%c0_30, %c0_31] : memref<32x32xf32, #tpu.memory_space<vmem>>, vector<32x32xf32>
    %c0_32 = arith.constant 0 : index
    %c0_33 = arith.constant 0 : index
    %86 = vector.load %arg12[%c0_32, %c0_33] : memref<32x64xbf16, #tpu.memory_space<vmem>>, vector<32x64xbf16>
    %87 = arith.truncf %85 : vector<32x32xf32> to vector<32x32xbf16>
    %cst_34 = arith.constant dense<0.000000e+00> : vector<32x64xf32>
    %88 = tpu.matmul %87, %86, %cst_34 {dimension_numbers = #tpu.dot_dimension_numbers<[1], [0], [0], [1], [0, 0, 1, 1], [], []>} : vector<32x32xbf16>, vector<32x64xbf16>, vector<32x64xf32> -> vector<32x64xf32>
    %c0_35 = arith.constant 0 : index
    %c0_36 = arith.constant 0 : index
    %89 = vector.load %arg13[%c0_35, %c0_36] : memref<1x64xf32, #tpu.memory_space<vmem>>, vector<1x64xf32>
    %90 = vector.broadcast %89 : vector<1x64xf32> to vector<32x64xf32>
    %91 = arith.addf %88, %90 : vector<32x64xf32>
    %c0_37 = arith.constant 0 : index
    %c0_38 = arith.constant 0 : index
    %92 = vector.load %arg3[%c0_37, %c0_38] : memref<128x64xf32, #tpu.memory_space<vmem>>, vector<128x64xf32>
    %93 = tpu.iota {dimensions = array<i32: 0>} : vector<64x8xi32>
    %94 = tpu.iota {dimensions = array<i32: 1>} : vector<64x8xi32>
    %c8_i32 = arith.constant 8 : i32
    %c0_i32 = arith.constant 0 : i32
    %95 = arith.cmpi eq, %c8_i32, %c0_i32 : i32
    %c1_i32 = arith.constant 1 : i32
    %96 = arith.select %95, %c1_i32, %c8_i32 : i32
    %97 = vector.broadcast %96 : i32 to vector<64x8xi32>
    %98 = arith.remsi %93, %97 : vector<64x8xi32>
    %c0_i32_39 = arith.constant 0 : i32
    %99 = vector.broadcast %c0_i32_39 : i32 to vector<64x8xi32>
    %100 = arith.cmpi ne, %98, %99 : vector<64x8xi32>
    %c0_i32_40 = arith.constant 0 : i32
    %101 = vector.broadcast %c0_i32_40 : i32 to vector<64x8xi32>
    %102 = arith.cmpi slt, %98, %101 : vector<64x8xi32>
    %c0_i32_41 = arith.constant 0 : i32
    %103 = arith.cmpi slt, %96, %c0_i32_41 : i32
    %104 = vector.broadcast %103 : i1 to vector<64x8xi1>
    %105 = vector.broadcast %104 : vector<64x8xi1> to vector<64x8xi1>
    %106 = arith.xori %102, %105 : vector<64x8xi1>
    %107 = arith.andi %106, %100 : vector<64x8xi1>
    %108 = vector.broadcast %96 : i32 to vector<64x8xi32>
    %109 = arith.addi %98, %108 : vector<64x8xi32>
    %110 = arith.select %107, %109, %98 : vector<64x8xi1>, vector<64x8xi32>
    %111 = arith.cmpi eq, %110, %94 : vector<64x8xi32>
    %112 = arith.extui %111 : vector<64x8xi1> to vector<64x8xi32>
    %113 = arith.sitofp %112 : vector<64x8xi32> to vector<64x8xf32>
    %114 = vector.extract_strided_slice %91 {offsets = [0, 0], sizes = [16, 64], strides = [1, 1]} : vector<32x64xf32> to vector<16x64xf32>
    %115 = vector.extract_strided_slice %114 {offsets = [0, 0], sizes = [16, 8], strides = [1, 1]} : vector<16x64xf32> to vector<16x8xf32>
    %116 = vector.extract_strided_slice %114 {offsets = [0, 8], sizes = [16, 8], strides = [1, 1]} : vector<16x64xf32> to vector<16x8xf32>
    %117 = vector.extract_strided_slice %114 {offsets = [0, 16], sizes = [16, 8], strides = [1, 1]} : vector<16x64xf32> to vector<16x8xf32>
    %118 = vector.extract_strided_slice %114 {offsets = [0, 24], sizes = [16, 8], strides = [1, 1]} : vector<16x64xf32> to vector<16x8xf32>
    %119 = tpu.concatenate %115, %116, %117, %118 in 0 : vector<16x8xf32>, vector<16x8xf32>, vector<16x8xf32>, vector<16x8xf32> -> vector<64x8xf32>
    %120 = vector.extract_strided_slice %114 {offsets = [0, 32], sizes = [16, 8], strides = [1, 1]} : vector<16x64xf32> to vector<16x8xf32>
    %121 = vector.extract_strided_slice %114 {offsets = [0, 40], sizes = [16, 8], strides = [1, 1]} : vector<16x64xf32> to vector<16x8xf32>
    %122 = vector.extract_strided_slice %114 {offsets = [0, 48], sizes = [16, 8], strides = [1, 1]} : vector<16x64xf32> to vector<16x8xf32>
    %123 = vector.extract_strided_slice %114 {offsets = [0, 56], sizes = [16, 8], strides = [1, 1]} : vector<16x64xf32> to vector<16x8xf32>
    %124 = tpu.concatenate %120, %121, %122, %123 in 0 : vector<16x8xf32>, vector<16x8xf32>, vector<16x8xf32>, vector<16x8xf32> -> vector<64x8xf32>
    %125 = arith.truncf %84 : vector<128x8xf32> to vector<128x8xbf16>
    %126 = arith.truncf %119 : vector<64x8xf32> to vector<64x8xbf16>
    %cst_42 = arith.constant dense<0.000000e+00> : vector<128x64xf32>
    %127 = tpu.matmul %125, %126, %cst_42 {dimension_numbers = #tpu.dot_dimension_numbers<[1], [1], [0], [0], [0, 0, 1, 0], [], []>} : vector<128x8xbf16>, vector<64x8xbf16>, vector<128x64xf32> -> vector<128x64xf32>
    %128 = arith.addf %127, %92 : vector<128x64xf32>
    %cst_43 = arith.constant dense<0xFF800000> : vector<128xf32>
    %129 = vector.multi_reduction <maximumf>, %128, %cst_43 [1] : vector<128x64xf32> to vector<128xf32>
    %130 = vector.shape_cast %129 : vector<128xf32> to vector<128x1xf32>
    %131 = vector.broadcast %130 : vector<128x1xf32> to vector<128x64xf32>
    %132 = arith.subf %128, %131 : vector<128x64xf32>
    %133 = math.exp %132 : vector<128x64xf32>
    %cst_44 = arith.constant dense<0.000000e+00> : vector<128xf32>
    %134 = vector.multi_reduction <add>, %133, %cst_44 [1] : vector<128x64xf32> to vector<128xf32>
    %135 = vector.shape_cast %134 : vector<128xf32> to vector<128x1xf32>
    %136 = tpu.reciprocal %135 {approx = true} : vector<128x1xf32> -> vector<128x1xf32>
    %137 = vector.broadcast %136 : vector<128x1xf32> to vector<128x64xf32>
    %138 = arith.mulf %133, %137 : vector<128x64xf32>
    %139 = arith.truncf %138 : vector<128x64xf32> to vector<128x64xbf16>
    %140 = arith.truncf %124 : vector<64x8xf32> to vector<64x8xbf16>
    %cst_45 = arith.constant dense<0.000000e+00> : vector<128x8xf32>
    %141 = tpu.matmul %139, %140, %cst_45 {dimension_numbers = #tpu.dot_dimension_numbers<[1], [0], [0], [1], [0, 0, 1, 1], [], []>} : vector<128x64xbf16>, vector<64x8xbf16>, vector<128x8xf32> -> vector<128x8xf32>
    %142 = arith.truncf %138 : vector<128x64xf32> to vector<128x64xbf16>
    %143 = arith.truncf %113 : vector<64x8xf32> to vector<64x8xbf16>
    %cst_46 = arith.constant dense<0.000000e+00> : vector<128x8xf32>
    %144 = tpu.matmul %142, %143, %cst_46 {dimension_numbers = #tpu.dot_dimension_numbers<[1], [0], [0], [1], [0, 0, 1, 1], [], []>} : vector<128x64xbf16>, vector<64x8xbf16>, vector<128x8xf32> -> vector<128x8xf32>
    %145 = vector.extract_strided_slice %144 {offsets = [0, 0], sizes = [16, 8], strides = [1, 1]} : vector<128x8xf32> to vector<16x8xf32>
    %cst_47 = arith.constant 0.000000e+00 : f32
    %146 = vector.broadcast %cst_47 : f32 to vector<16x8xf32>
    %147 = arith.addf %146, %145 : vector<16x8xf32>
    %148 = vector.extract_strided_slice %144 {offsets = [32, 0], sizes = [16, 8], strides = [1, 1]} : vector<128x8xf32> to vector<16x8xf32>
    %149 = arith.addf %147, %148 : vector<16x8xf32>
    %150 = vector.extract_strided_slice %144 {offsets = [64, 0], sizes = [16, 8], strides = [1, 1]} : vector<128x8xf32> to vector<16x8xf32>
    %151 = arith.addf %149, %150 : vector<16x8xf32>
    %152 = vector.extract_strided_slice %144 {offsets = [96, 0], sizes = [16, 8], strides = [1, 1]} : vector<128x8xf32> to vector<16x8xf32>
    %153 = arith.addf %151, %152 : vector<16x8xf32>
    %154 = vector.extract_strided_slice %91 {offsets = [16, 0], sizes = [16, 64], strides = [1, 1]} : vector<32x64xf32> to vector<16x64xf32>
    %155 = vector.extract_strided_slice %154 {offsets = [0, 0], sizes = [16, 8], strides = [1, 1]} : vector<16x64xf32> to vector<16x8xf32>
    %156 = vector.extract_strided_slice %154 {offsets = [0, 8], sizes = [16, 8], strides = [1, 1]} : vector<16x64xf32> to vector<16x8xf32>
    %157 = vector.extract_strided_slice %154 {offsets = [0, 16], sizes = [16, 8], strides = [1, 1]} : vector<16x64xf32> to vector<16x8xf32>
    %158 = vector.extract_strided_slice %154 {offsets = [0, 24], sizes = [16, 8], strides = [1, 1]} : vector<16x64xf32> to vector<16x8xf32>
    %159 = tpu.concatenate %155, %156, %157, %158 in 0 : vector<16x8xf32>, vector<16x8xf32>, vector<16x8xf32>, vector<16x8xf32> -> vector<64x8xf32>
    %160 = vector.extract_strided_slice %154 {offsets = [0, 32], sizes = [16, 8], strides = [1, 1]} : vector<16x64xf32> to vector<16x8xf32>
    %161 = vector.extract_strided_slice %154 {offsets = [0, 40], sizes = [16, 8], strides = [1, 1]} : vector<16x64xf32> to vector<16x8xf32>
    %162 = vector.extract_strided_slice %154 {offsets = [0, 48], sizes = [16, 8], strides = [1, 1]} : vector<16x64xf32> to vector<16x8xf32>
    %163 = vector.extract_strided_slice %154 {offsets = [0, 56], sizes = [16, 8], strides = [1, 1]} : vector<16x64xf32> to vector<16x8xf32>
    %164 = tpu.concatenate %160, %161, %162, %163 in 0 : vector<16x8xf32>, vector<16x8xf32>, vector<16x8xf32>, vector<16x8xf32> -> vector<64x8xf32>
    %165 = arith.truncf %84 : vector<128x8xf32> to vector<128x8xbf16>
    %166 = arith.truncf %159 : vector<64x8xf32> to vector<64x8xbf16>
    %cst_48 = arith.constant dense<0.000000e+00> : vector<128x64xf32>
    %167 = tpu.matmul %165, %166, %cst_48 {dimension_numbers = #tpu.dot_dimension_numbers<[1], [1], [0], [0], [0, 0, 1, 0], [], []>} : vector<128x8xbf16>, vector<64x8xbf16>, vector<128x64xf32> -> vector<128x64xf32>
    %168 = arith.addf %167, %92 : vector<128x64xf32>
    %cst_49 = arith.constant dense<0xFF800000> : vector<128xf32>
    %169 = vector.multi_reduction <maximumf>, %168, %cst_49 [1] : vector<128x64xf32> to vector<128xf32>
    %170 = vector.shape_cast %169 : vector<128xf32> to vector<128x1xf32>
    %171 = vector.broadcast %170 : vector<128x1xf32> to vector<128x64xf32>
    %172 = arith.subf %168, %171 : vector<128x64xf32>
    %173 = math.exp %172 : vector<128x64xf32>
    %cst_50 = arith.constant dense<0.000000e+00> : vector<128xf32>
    %174 = vector.multi_reduction <add>, %173, %cst_50 [1] : vector<128x64xf32> to vector<128xf32>
    %175 = vector.shape_cast %174 : vector<128xf32> to vector<128x1xf32>
    %176 = tpu.reciprocal %175 {approx = true} : vector<128x1xf32> -> vector<128x1xf32>
    %177 = vector.broadcast %176 : vector<128x1xf32> to vector<128x64xf32>
    %178 = arith.mulf %173, %177 : vector<128x64xf32>
    %179 = arith.truncf %178 : vector<128x64xf32> to vector<128x64xbf16>
    %180 = arith.truncf %164 : vector<64x8xf32> to vector<64x8xbf16>
    %cst_51 = arith.constant dense<0.000000e+00> : vector<128x8xf32>
    %181 = tpu.matmul %179, %180, %cst_51 {dimension_numbers = #tpu.dot_dimension_numbers<[1], [0], [0], [1], [0, 0, 1, 1], [], []>} : vector<128x64xbf16>, vector<64x8xbf16>, vector<128x8xf32> -> vector<128x8xf32>
    %182 = arith.addf %141, %181 : vector<128x8xf32>
    %183 = arith.truncf %178 : vector<128x64xf32> to vector<128x64xbf16>
    %184 = arith.truncf %113 : vector<64x8xf32> to vector<64x8xbf16>
    %cst_52 = arith.constant dense<0.000000e+00> : vector<128x8xf32>
    %185 = tpu.matmul %183, %184, %cst_52 {dimension_numbers = #tpu.dot_dimension_numbers<[1], [0], [0], [1], [0, 0, 1, 1], [], []>} : vector<128x64xbf16>, vector<64x8xbf16>, vector<128x8xf32> -> vector<128x8xf32>
    %186 = vector.extract_strided_slice %185 {offsets = [16, 0], sizes = [16, 8], strides = [1, 1]} : vector<128x8xf32> to vector<16x8xf32>
    %cst_53 = arith.constant 0.000000e+00 : f32
    %187 = vector.broadcast %cst_53 : f32 to vector<16x8xf32>
    %188 = arith.addf %187, %186 : vector<16x8xf32>
    %189 = vector.extract_strided_slice %185 {offsets = [48, 0], sizes = [16, 8], strides = [1, 1]} : vector<128x8xf32> to vector<16x8xf32>
    %190 = arith.addf %188, %189 : vector<16x8xf32>
    %191 = vector.extract_strided_slice %185 {offsets = [80, 0], sizes = [16, 8], strides = [1, 1]} : vector<128x8xf32> to vector<16x8xf32>
    %192 = arith.addf %190, %191 : vector<16x8xf32>
    %193 = vector.extract_strided_slice %185 {offsets = [112, 0], sizes = [16, 8], strides = [1, 1]} : vector<128x8xf32> to vector<16x8xf32>
    %194 = arith.addf %192, %193 : vector<16x8xf32>
    %195 = tpu.concatenate %153, %194 in 0 : vector<16x8xf32>, vector<16x8xf32> -> vector<32x8xf32>
    %cst_54 = arith.constant 2.500000e-01 : f32
    %196 = vector.broadcast %cst_54 : f32 to vector<32x8xf32>
    %197 = arith.mulf %195, %196 : vector<32x8xf32>
    %c0_55 = arith.constant 0 : index
    %c0_56 = arith.constant 0 : index
    %198 = vector.load %arg25[%c0_55, %c0_56] : memref<32x8xf32, #tpu.memory_space<vmem>>, vector<32x8xf32>
    tpu.vector_store %arg25[%c0_55, %c0_56], %197 {strides = array<i32>} : memref<32x8xf32, #tpu.memory_space<vmem>>, vector<32x8xf32>,
    %199 = vector.extract_strided_slice %182 {offsets = [0, 0], sizes = [32, 8], strides = [1, 1]} : vector<128x8xf32> to vector<32x8xf32>
    %200 = vector.extract_strided_slice %182 {offsets = [32, 0], sizes = [32, 8], strides = [1, 1]} : vector<128x8xf32> to vector<32x8xf32>
    %201 = vector.extract_strided_slice %182 {offsets = [64, 0], sizes = [32, 8], strides = [1, 1]} : vector<128x8xf32> to vector<32x8xf32>
    %202 = vector.extract_strided_slice %182 {offsets = [96, 0], sizes = [32, 8], strides = [1, 1]} : vector<128x8xf32> to vector<32x8xf32>
    %203 = tpu.concatenate %199, %200, %201, %202 in 1 : vector<32x8xf32>, vector<32x8xf32>, vector<32x8xf32>, vector<32x8xf32> -> vector<32x32xf32>
    %c0_57 = arith.constant 0 : index
    %c0_58 = arith.constant 0 : index
    %204 = vector.load %arg14[%c0_57, %c0_58] : memref<32x32xbf16, #tpu.memory_space<vmem>>, vector<32x32xbf16>
    %205 = arith.truncf %203 : vector<32x32xf32> to vector<32x32xbf16>
    %cst_59 = arith.constant dense<0.000000e+00> : vector<32x32xf32>
    %206 = tpu.matmul %205, %204, %cst_59 {dimension_numbers = #tpu.dot_dimension_numbers<[1], [0], [0], [1], [0, 0, 1, 1], [], []>} : vector<32x32xbf16>, vector<32x32xbf16>, vector<32x32xf32> -> vector<32x32xf32>
    %c0_60 = arith.constant 0 : index
    %c0_61 = arith.constant 0 : index
    %207 = vector.load %arg15[%c0_60, %c0_61] : memref<1x32xf32, #tpu.memory_space<vmem>>, vector<1x32xf32>
    %208 = vector.broadcast %207 : vector<1x32xf32> to vector<32x32xf32>
    %209 = arith.addf %206, %208 : vector<32x32xf32>
    %210 = arith.addf %209, %73 : vector<32x32xf32>
    %c0_62 = arith.constant 0 : index
    %c0_63 = arith.constant 0 : index
    %211 = vector.load %arg16[%c0_62, %c0_63] : memref<1x32xf32, #tpu.memory_space<vmem>>, vector<1x32xf32>
    %c0_64 = arith.constant 0 : index
    %c0_65 = arith.constant 0 : index
    %212 = vector.load %arg17[%c0_64, %c0_65] : memref<1x32xf32, #tpu.memory_space<vmem>>, vector<1x32xf32>
    %cst_66 = arith.constant dense<0.000000e+00> : vector<32xf32>
    %213 = vector.multi_reduction <add>, %210, %cst_66 [1] : vector<32x32xf32> to vector<32xf32>
    %214 = vector.shape_cast %213 : vector<32xf32> to vector<32x1xf32>
    %cst_67 = arith.constant 3.200000e+01 : f32
    %215 = vector.broadcast %cst_67 : f32 to vector<32x1xf32>
    %216 = arith.divf %214, %215 : vector<32x1xf32>
    %217 = vector.broadcast %216 : vector<32x1xf32> to vector<32x32xf32>
    %218 = arith.subf %210, %217 : vector<32x32xf32>
    %219 = arith.mulf %218, %218 : vector<32x32xf32>
    %cst_68 = arith.constant dense<0.000000e+00> : vector<32xf32>
    %220 = vector.multi_reduction <add>, %219, %cst_68 [1] : vector<32x32xf32> to vector<32xf32>
    %221 = vector.shape_cast %220 : vector<32xf32> to vector<32x1xf32>
    %cst_69 = arith.constant 3.200000e+01 : f32
    %222 = vector.broadcast %cst_69 : f32 to vector<32x1xf32>
    %223 = arith.divf %221, %222 : vector<32x1xf32>
    %cst_70 = arith.constant 9.99999974E-6 : f32
    %224 = vector.broadcast %cst_70 : f32 to vector<32x1xf32>
    %225 = arith.addf %223, %224 : vector<32x1xf32>
    %226 = math.rsqrt %225 : vector<32x1xf32>
    %227 = vector.broadcast %226 : vector<32x1xf32> to vector<32x32xf32>
    %228 = arith.mulf %218, %227 : vector<32x32xf32>
    %229 = vector.broadcast %211 : vector<1x32xf32> to vector<32x32xf32>
    %230 = arith.mulf %228, %229 : vector<32x32xf32>
    %231 = vector.broadcast %212 : vector<1x32xf32> to vector<32x32xf32>
    %232 = arith.addf %230, %231 : vector<32x32xf32>
    %c0_71 = arith.constant 0 : index
    %c0_72 = arith.constant 0 : index
    %233 = vector.load %arg18[%c0_71, %c0_72] : memref<32x64xbf16, #tpu.memory_space<vmem>>, vector<32x64xbf16>
    %234 = arith.truncf %232 : vector<32x32xf32> to vector<32x32xbf16>
    %cst_73 = arith.constant dense<0.000000e+00> : vector<32x64xf32>
    %235 = tpu.matmul %234, %233, %cst_73 {dimension_numbers = #tpu.dot_dimension_numbers<[1], [0], [0], [1], [0, 0, 1, 1], [], []>} : vector<32x32xbf16>, vector<32x64xbf16>, vector<32x64xf32> -> vector<32x64xf32>
    %c0_74 = arith.constant 0 : index
    %c0_75 = arith.constant 0 : index
    %236 = vector.load %arg19[%c0_74, %c0_75] : memref<1x64xf32, #tpu.memory_space<vmem>>, vector<1x64xf32>
    %237 = vector.broadcast %236 : vector<1x64xf32> to vector<32x64xf32>
    %238 = arith.addf %235, %237 : vector<32x64xf32>
    %cst_76 = arith.constant 0.000000e+00 : f32
    %239 = vector.broadcast %cst_76 : f32 to vector<32x64xf32>
    %240 = arith.maximumf %238, %239 : vector<32x64xf32>
    %c0_77 = arith.constant 0 : index
    %c0_78 = arith.constant 0 : index
    %241 = vector.load %arg20[%c0_77, %c0_78] : memref<64x32xbf16, #tpu.memory_space<vmem>>, vector<64x32xbf16>
    %242 = arith.truncf %240 : vector<32x64xf32> to vector<32x64xbf16>
    %cst_79 = arith.constant dense<0.000000e+00> : vector<32x32xf32>
    %243 = tpu.matmul %242, %241, %cst_79 {dimension_numbers = #tpu.dot_dimension_numbers<[1], [0], [0], [1], [0, 0, 1, 1], [], []>} : vector<32x64xbf16>, vector<64x32xbf16>, vector<32x32xf32> -> vector<32x32xf32>
    %c0_80 = arith.constant 0 : index
    %c0_81 = arith.constant 0 : index
    %244 = vector.load %arg21[%c0_80, %c0_81] : memref<1x32xf32, #tpu.memory_space<vmem>>, vector<1x32xf32>
    %245 = vector.broadcast %244 : vector<1x32xf32> to vector<32x32xf32>
    %246 = arith.addf %243, %245 : vector<32x32xf32>
    %247 = arith.addf %246, %232 : vector<32x32xf32>
    %c0_82 = arith.constant 0 : index
    %c0_83 = arith.constant 0 : index
    %248 = vector.load %arg22[%c0_82, %c0_83] : memref<1x32xf32, #tpu.memory_space<vmem>>, vector<1x32xf32>
    %c0_84 = arith.constant 0 : index
    %c0_85 = arith.constant 0 : index
    %249 = vector.load %arg23[%c0_84, %c0_85] : memref<1x32xf32, #tpu.memory_space<vmem>>, vector<1x32xf32>
    %cst_86 = arith.constant dense<0.000000e+00> : vector<32xf32>
    %250 = vector.multi_reduction <add>, %247, %cst_86 [1] : vector<32x32xf32> to vector<32xf32>
    %251 = vector.shape_cast %250 : vector<32xf32> to vector<32x1xf32>
    %cst_87 = arith.constant 3.200000e+01 : f32
    %252 = vector.broadcast %cst_87 : f32 to vector<32x1xf32>
    %253 = arith.divf %251, %252 : vector<32x1xf32>
    %254 = vector.broadcast %253 : vector<32x1xf32> to vector<32x32xf32>
    %255 = arith.subf %247, %254 : vector<32x32xf32>
    %256 = arith.mulf %255, %255 : vector<32x32xf32>
    %cst_88 = arith.constant dense<0.000000e+00> : vector<32xf32>
    %257 = vector.multi_reduction <add>, %256, %cst_88 [1] : vector<32x32xf32> to vector<32xf32>
    %258 = vector.shape_cast %257 : vector<32xf32> to vector<32x1xf32>
    %cst_89 = arith.constant 3.200000e+01 : f32
    %259 = vector.broadcast %cst_89 : f32 to vector<32x1xf32>
    %260 = arith.divf %258, %259 : vector<32x1xf32>
    %cst_90 = arith.constant 9.99999974E-6 : f32
    %261 = vector.broadcast %cst_90 : f32 to vector<32x1xf32>
    %262 = arith.addf %260, %261 : vector<32x1xf32>
    %263 = math.rsqrt %262 : vector<32x1xf32>
    %264 = vector.broadcast %263 : vector<32x1xf32> to vector<32x32xf32>
    %265 = arith.mulf %255, %264 : vector<32x32xf32>
    %266 = vector.broadcast %248 : vector<1x32xf32> to vector<32x32xf32>
    %267 = arith.mulf %265, %266 : vector<32x32xf32>
    %268 = vector.broadcast %249 : vector<1x32xf32> to vector<32x32xf32>
    %269 = arith.addf %267, %268 : vector<32x32xf32>
    %c0_91 = arith.constant 0 : index
    %c0_92 = arith.constant 0 : index
    %270 = vector.load %arg24[%c0_91, %c0_92] : memref<32x32xf32, #tpu.memory_space<vmem>>, vector<32x32xf32>
    tpu.vector_store %arg24[%c0_91, %c0_92], %269 {strides = array<i32>} : memref<32x32xf32, #tpu.memory_space<vmem>>, vector<32x32xf32>,
    return
  }
}

</mosaic_0001>

<bundles_post_ra>
// kernel: transformer_decoder_layer_forward.1
= control target key start
LH: loop header
LB: loop body
LE: loop exit
PB: predicated region body
PF: predicated region fallthrough
CT: control target
= control target key end

     0   :  { %vm109_vm0 = vcmask 261120   ;;  %vm253_vm1 = vcmask 64512   ;;  %s3852_s30 = smov 120   ;;  %s3855_s26 = smov 64   ;;  %vm724_vm2 = vcmask 130048   ;;  %vm729_vm3 = vcmask 195584   ;;  %s5212_s4 = inlined_call_operand.vmem [shape: bf16[32,96], index: 4, kind: input, shape index: {}]   ;;  %s5213_s0 = inlined_call_operand.vmem [shape: f32[32,32], index: 0, kind: input, shape index: {}]   ;;  %s5214_s5 = inlined_call_operand.vmem [shape: f32[1,96], index: 5, kind: input, shape index: {}]   ;;  %s5215_s2 = inlined_call_operand.vmem [shape: f32[128,128], index: 2, kind: input, shape index: {}]   ;;  %s5216_s6 = inlined_call_operand.vmem [shape: bf16[32,32], index: 6, kind: input, shape index: {}]   ;;  %s5217_s7 = inlined_call_operand.vmem [shape: f32[1,32], index: 7, kind: input, shape index: {}, may-alias: {7,9,11,15,17,21,23}]   ;;  %s5218_s10 = inlined_call_operand.vmem [shape: bf16[32,32], index: 10, kind: input, shape index: {}]   ;;  %s5219_s12 = inlined_call_operand.vmem [shape: bf16[32,64], index: 12, kind: input, shape index: {}]   ;;  %s5220_s8 = inlined_call_operand.vmem [shape: f32[1,32], index: 8, kind: input, shape index: {}, may-alias: {8,16,22}]   ;;  %s5221_s9 = inlined_call_operand.vmem [shape: f32[1,32], index: 9, kind: input, shape index: {}, may-alias: {7,9,11,15,17,21,23}]   ;;  %s5222_s1 = inlined_call_operand.vmem [shape: f32[32,32], index: 1, kind: input, shape index: {}]   ;;  %s5223_s11 = inlined_call_operand.vmem [shape: f32[1,32], index: 11, kind: input, shape index: {}, may-alias: {7,9,11,15,17,21,23}]   ;;  %s5224_s13 = inlined_call_operand.vmem [shape: f32[1,64], index: 13, kind: input, shape index: {}, may-alias: {13,19}]   ;;  %s5225_s3 = inlined_call_operand.vmem [shape: f32[128,64], index: 3, kind: input, shape index: {}]   ;;  %s5226_s14 = inlined_call_operand.vmem [shape: bf16[32,32], index: 14, kind: input, shape index: {}]   ;;  %s5227_s25 = inlined_call_operand.vmem [shape: f32[32,8], index: 25, kind: output, shape index: {1}]   ;;  %s5228_s15 = inlined_call_operand.vmem [shape: f32[1,32], index: 15, kind: input, shape index: {}, may-alias: {7,9,11,15,17,21,23}]   ;;  %s5229_s18 = inlined_call_operand.vmem [shape: bf16[32,64], index: 18, kind: input, shape index: {}]   ;;  %s5230_s20 = inlined_call_operand.vmem [shape: bf16[64,32], index: 20, kind: input, shape index: {}]   ;;  %s5231_s16 = inlined_call_operand.vmem [shape: f32[1,32], index: 16, kind: input, shape index: {}, may-alias: {8,16,22}]   ;;  %s5232_s17 = inlined_call_operand.vmem [shape: f32[1,32], index: 17, kind: input, shape index: {}, may-alias: {7,9,11,15,17,21,23}]   ;;  %s5233_s19 = inlined_call_operand.vmem [shape: f32[1,64], index: 19, kind: input, shape index: {}, may-alias: {13,19}]   ;;  %s5234_s21 = inlined_call_operand.vmem [shape: f32[1,32], index: 21, kind: input, shape index: {}, may-alias: {7,9,11,15,17,21,23}]   ;;  %s5235_s22 = inlined_call_operand.vmem [shape: f32[1,32], index: 22, kind: input, shape index: {}, may-alias: {8,16,22}]   ;;  %s5236_s23 = inlined_call_operand.vmem [shape: f32[1,32], index: 23, kind: input, shape index: {}, may-alias: {7,9,11,15,17,21,23}]   ;;  %s5237_s24 = inlined_call_operand.vmem [shape: f32[32,32], index: 24, kind: output, shape index: {0}]  }
   0x1   :  { %5244 = sst [smem:[#allocation2_spill]] %s5212_s4 }
   0x2   :  { %5245 = sst [smem:[#allocation3_spill]] %s5213_s0 }
   0x3   :  { %5246 = sst [smem:[#allocation4_spill]] %s5214_s5  ;;  %s5255_s0 = sld [smem:[#allocation3_spill]] }
   0x4   :  { %5247 = sst [smem:[#allocation5_spill]] %s5215_s2  ;;  %s5256_s5 = sld [smem:[#allocation4_spill]] }
   0x5   :  { %5248 = sst [smem:[#allocation6_spill]] %s5216_s6  ;;  %s3854_s2 = smov 96  }
   0x6   :  { %5249 = sst [smem:[#allocation7_spill]] %s5217_s7  ;;  %s5257_s27 = sld [smem:[#allocation5_spill]] }
   0x7   :  { %5250 = sst [smem:[#allocation8_spill]] %s5218_s10  ;;  %s5254_s10 = sld [smem:[#allocation2_spill]] }
   0x8   :  { %5251 = sst [smem:[#allocation9_spill]] %s5219_s12  ;;  %s3853_s12 = smov 104  }
   0x9   :  { %5252 = sst [smem:[#allocation10_spill]] %s5220_s8  ;;  %v3999_v2 = vld [vmem:[%s5255_s0] sm:$0xff]  ;;  %v4004_v3 = vld [vmem:[%s5255_s0 + $0x8] sm:$0xff]  ;;  %v4011_v5 = vld [vmem:[%s5255_s0 + $0x10] sm:$0xff]  ;;  %s5258_s7 = sld [smem:[#allocation6_spill]] }
   0xa   :  { %5253 = sst [smem:[#allocation11_spill]] %s5221_s9  ;;  %v88_v4 = vpack.c.bf16 %v4004_v3, %v3999_v2  ;;  %v4016_v6 = vld [vmem:[%s5255_s0 + $0x18] sm:$0xff]  ;;  %v2879_v9 = vld [vmem:[%s5256_s5] ss:$0 sm:$0xff]  ;;  %s3856_s5 = smov 8  }
   0xb   :  { %v89_v7 = vpack.c.bf16 %v4016_v6, %v4011_v5  ;;  %s3857_s0 = smov 16   ;;  %s3858_s8 = smov 24  }
   0xc   :  { %3140 = vmatprep.mubr.msk.bf16.mxu0 %vm109_vm0, %v88_v4  ;;  %v215_v62 = vld [vmem:[%s5257_s27 + $0x10] sm:$0xff]  ;;  %v214_v4 = vld [vmem:[%s5257_s27 + $0x8] sm:$0xff]  ;;  %s5259_s9 = sld [smem:[#allocation7_spill]]  ;;  %s5263_s6 = sld [smem:[#allocation11_spill]] }
   0xd   :  { %v3619_v0 = vld [vmem:[%s5254_s10] sm:$0xff]   ;;  %v3620_v1 = vld [vmem:[%s5254_s10 + $0x8] sm:$0xff]   ;;  %s3851_s10 = smov 112  }
   0xe   :  { %3136 = vmatprep.subr.bf16.mxu0 %v3619_v0 }
   0xf   :  { %3137 = vmatpush3.bf16.msra.mxu0 %v3619_v0 }
  0x10   :  { %3138 = vmatprep.subr.bf16.mxu0 %v3620_v1 }
  0x13   :  { %3139 = vmatpush3.bf16.msra.mxu0 %v3620_v1 }
  0x16   :  { %3141 = vmatmul.mubr.msk.bf16.vlgmr.msra.gmra.mrb[0].mxu0 %vm109_vm0, %v89_v7  ;;  %v213_v7 = vld [vmem:[%s5257_s27] sm:$0xff] }
  0xe9   :  { %v3142_v8 = vpop.f32.mrb[0].mxu0 }
  0xea   :  { %v150_v10 = vpop.f32.mrb[1].mxu0  ;;  %v159_v12 = vadd.f32 %v3142_v8, %v2879_v9 }
  0xeb   :  { %v3143_v11 = vpop.f32.mrb[2].mxu0  ;;  %v151_v15 = vadd.f32 %v2879_v9, %v150_v10 }
  0xec   :  { %v162_v13 = vadd.f32 %v3143_v11, %v2879_v9  ;;  %v153_v14 = vpop.f32.mrb[3].mxu0 }
  0xed   :  { %v154_v16 = vadd.f32 %v2879_v9, %v153_v14 }
  0xee   :  { %v3484_v17 = vpack.i.bf16 %v162_v13, %v159_v12  ;;  %v4025_v18 = vpack.c.bf16 %v162_v13, %v159_v12  ;;  %v216_v12 = vld [vmem:[%s5257_s27 + $0x18] sm:$0xff]  ;;  %v219_v13 = vld [vmem:[%s5257_s27 + $0x30] sm:$0xff] }
  0xef   :  { %v3479_v19 = vpack.i.bf16 %v154_v16, %v151_v15  ;;  %v205_v20 = vpack.c.bf16 %v154_v16, %v151_v15 }
  0xf1   :  { %3480 = vrot.lane.b32.xlu1 %v3479_v19, %s3851_s10  ;;  %3470 = vrot.lane.b32.xlu0 %v3479_v19, %s3852_s30 }
  0xf2   :  { %3160 = vmatprep.mubr.msk.bf16.mxu1 %vm253_vm1, %v205_v20 }
  0xf5   :  { %3485 = vrot.lane.b32.xlu1 %v3484_v17, %s3851_s10  ;;  %3475 = vrot.lane.b32.xlu0 %v3484_v17, %s3852_s30 }
  0xf9   :  { %3495 = vrot.lane.b32.xlu1 %v3484_v17, %s3853_s12  ;;  %3490 = vrot.lane.b32.xlu0 %v3479_v19, %s3853_s12  ;;  %v217_v19 = vld [vmem:[%s5257_s27 + $0x20] sm:$0xff] }
  0xfd   :  { %239 = vrot.lane.b32.xlu1 %v4025_v18, %s3854_s2  ;;  %237 = vrot.lane.b32.xlu0 %v205_v20, %s3854_s2 }
 0x163   :  { %v3481_v21 = vpop.permute.xlu1 %3480  ;;  %v3471_v22 = vpop.permute.xlu0 %3470 }
 0x164   :  { %v3473_v23 = vunpack.i.h.bf16 %v3471_v22  ;;  %v3472_v24 = vunpack.i.l.bf16 %v3471_v22  ;;  %v3483_v25 = vunpack.i.h.bf16 %v3481_v21  ;;  %v3482_v26 = vunpack.i.l.bf16 %v3481_v21 }
 0x166   :  { %v4037_v27 = vpack.c.bf16 %v3473_v23, %v3472_v24  ;;  %v4043_v35 = vpack.c.bf16 %v3483_v25, %v3482_v26  ;;  %v218_v25 = vld [vmem:[%s5257_s27 + $0x28] sm:$0xff]  ;;  %v223_v26 = vld [vmem:[%s5257_s27 + $0x50] sm:$0xff] }
 0x167   :  { %v3486_v28 = vpop.permute.xlu1 %3485  ;;  %v3476_v29 = vpop.permute.xlu0 %3475 }
 0x168   :  { %v3478_v30 = vunpack.i.h.bf16 %v3476_v29  ;;  %v3477_v31 = vunpack.i.l.bf16 %v3476_v29  ;;  %241 = vrot.lane.b32.xlu0 %v4037_v27, %s3854_s2  ;;  %v3488_v32 = vunpack.i.h.bf16 %v3486_v28  ;;  %v3487_v33 = vunpack.i.l.bf16 %v3486_v28 }
 0x16a   :  { %v4041_v34 = vpack.c.bf16 %v3478_v30, %v3477_v31  ;;  %v4049_v42 = vpack.c.bf16 %v3488_v32, %v3487_v33  ;;  %v221_v32 = vld [vmem:[%s5257_s27 + $0x40] sm:$0xff]  ;;  %v224_v33 = vld [vmem:[%s5257_s27 + $0x58] sm:$0xff] }
 0x16b   :  { %v3496_v36 = vpop.permute.xlu1 %3495  ;;  %v3491_v37 = vpop.permute.xlu0 %3490 }
 0x16c   :  { %v3493_v38 = vunpack.i.h.bf16 %v3491_v37  ;;  %v3492_v39 = vunpack.i.l.bf16 %v3491_v37  ;;  %243 = vrot.lane.b32.xlu1 %v4041_v34, %s3854_s2  ;;  %245 = vrot.lane.b32.xlu0 %v4043_v35, %s3854_s2  ;;  %v3498_v40 = vunpack.i.h.bf16 %v3496_v36  ;;  %v3497_v41 = vunpack.i.l.bf16 %v3496_v36 }
 0x16e   :  { %v4051_v43 = vpack.c.bf16 %v3493_v38, %v3492_v39  ;;  %v4059_v47 = vpack.c.bf16 %v3498_v40, %v3497_v41  ;;  %v222_v40 = vld [vmem:[%s5257_s27 + $0x48] sm:$0xff]  ;;  %v227_v41 = vld [vmem:[%s5257_s27 + $0x70] sm:$0xff] }
 0x16f   :  { %v238_v44 = vpop.permute.xlu0 %237  ;;  %v240_v46 = vpop.permute.xlu1 %239 }
 0x170   :  { %247 = vrot.lane.b32.xlu1 %v4049_v42, %s3854_s2  ;;  %249 = vrot.lane.b32.xlu0 %v4051_v43, %s3854_s2  ;;  %v279_v45 = vsel %vm253_vm1, %v238_v44, 0  ;;  %v282_v48 = vsel %vm253_vm1, %v240_v46, 0 }
 0x171   :  { %3444 = vmatprep.subr.msk.bf16.mxu1 %vm253_vm1, %v238_v44 }
 0x172   :  { %3145 = vmatpush3.bf16.xpose.msra.mxu1 %v279_v45 }
 0x173   :  { %3445 = vmatprep.subr.msk.bf16.mxu1 %vm253_vm1, %v240_v46 }
 0x174   :  { %251 = vrot.lane.b32.xlu1 %v4059_v47, %s3854_s2 }
 0x178   :  { %551 = vrot.lane.b32.xlu1 %v205_v20, %s3855_s26  ;;  %v220_v20 = vld [vmem:[%s5257_s27 + $0x38] sm:$0xff] }
 0x17a   :  { %3147 = vmatpush3.bf16.xpose.msra.mxu1 %v282_v48 }
 0x1da   :  { %v242_v49 = vpop.permute.xlu0 %241 }
 0x1db   :  { %3446 = vmatprep.subr.msk.bf16.mxu1 %vm253_vm1, %v242_v49  ;;  %v285_v50 = vsel %vm253_vm1, %v242_v49, 0  ;;  %v225_v49 = vld [vmem:[%s5257_s27 + $0x60] sm:$0xff] }
 0x1dc   :  { %3149 = vmatpush3.bf16.xpose.msra.mxu1 %v285_v50 }
 0x1de   :  { %v244_v51 = vpop.permute.xlu1 %243  ;;  %v246_v54 = vpop.permute.xlu0 %245 }
 0x1df   :  { %3447 = vmatprep.subr.msk.bf16.mxu1 %vm253_vm1, %v244_v51  ;;  %v288_v53 = vsel %vm253_vm1, %v244_v51, 0  ;;  %v291_v57 = vsel %vm253_vm1, %v246_v54, 0 }
 0x1e2   :  { %v248_v52 = vpop.permute.xlu1 %247  ;;  %v250_v59 = vpop.permute.xlu0 %249 }
 0x1e3   :  { %v294_v58 = vsel %vm253_vm1, %v248_v52, 0  ;;  %v297_v60 = vsel %vm253_vm1, %v250_v59, 0 }
 0x1e4   :  { %3151 = vmatpush3.bf16.xpose.msra.mxu1 %v288_v53  ;;  %v228_v53 = vld [vmem:[%s5257_s27 + $0x78] sm:$0xff] }
 0x1e5   :  { %3448 = vmatprep.subr.msk.bf16.mxu1 %vm253_vm1, %v246_v54 }
 0x1e6   :  { %v252_v55 = vpop.permute.xlu1 %251 }
 0x1e7   :  { %v300_v61 = vsel %vm253_vm1, %v252_v55, 0 }
 0x1ea   :  { %v552_v56 = vpop.permute.xlu1 %551 }
 0x1eb   :  { %3176 = vmatprep.subr.bf16.mxu0 %v552_v56 }
 0x1ec   :  { %3153 = vmatpush3.bf16.xpose.msra.mxu1 %v291_v57  ;;  %3177 = vmatpush3.bf16.msra.mxu0 %v552_v56 }
 0x1ed   :  { %3449 = vmatprep.subr.msk.bf16.mxu1 %vm253_vm1, %v248_v52 }
 0x1f4   :  { %3155 = vmatpush3.bf16.xpose.msra.mxu1 %v294_v58 }
 0x1f5   :  { %3450 = vmatprep.subr.msk.bf16.mxu1 %vm253_vm1, %v250_v59 }
 0x1fc   :  { %3157 = vmatpush3.bf16.xpose.msra.mxu1 %v297_v60 }
 0x1fd   :  { %3451 = vmatprep.subr.msk.bf16.mxu1 %vm253_vm1, %v252_v55 }
 0x204   :  { %3159 = vmatpush3.bf16.xpose.msra.mxu1 %v300_v61 }
 0x20b   :  { %3161 = vmatmul.mubr.msk.bf16.vlgmr.msra.gmra.mrb[0].mxu1 %vm253_vm1, %v4025_v18 }
 0x20c   :  { %3164 = vmatprep.mubr.msk.bf16.mxu1 %vm253_vm1, %v4037_v27 }
 0x213   :  { %3165 = vmatmul.mubr.msk.bf16.gmra.mrb[4].mxu1 %vm253_vm1, %v4041_v34 }
 0x214   :  { %3168 = vmatprep.mubr.msk.bf16.mxu1 %vm253_vm1, %v4043_v35 }
 0x21b   :  { %3169 = vmatmul.mubr.msk.bf16.gmra.mrb[8].mxu1 %vm253_vm1, %v4049_v42 }
 0x21c   :  { %3172 = vmatprep.mubr.msk.bf16.mxu1 %vm253_vm1, %v4051_v43 }
 0x223   :  { %3173 = vmatmul.mubr.msk.bf16.gmra.mrb[12].mxu1 %vm253_vm1, %v4059_v47 }
 0x2de   :  { %v3162_v63 = vpop.f32.mrb[0].mxu1 }
 0x2df   :  { %v4095_v0 = vadd.f32 %v3162_v63, %v215_v62  ;;  %v336_v1 = vpop.f32.mrb[1].mxu1 }
 0x2e0   :  { %v3163_v8 = vpop.f32.mrb[2].mxu1  ;;  %v4106_v11 = vadd.f32 %v336_v1, %v213_v7 }
 0x2e1   :  { %403 = vmax.xlane.f32.xlu0 %v4095_v0  ;;  %v339_v9 = vpop.f32.mrb[3].mxu1  ;;  %v4116_v15 = vadd.f32 %v3163_v8, %v216_v12 }
 0x2e2   :  { %v4104_v10 = vadd.f32 %v339_v9, %v214_v4 }
 0x2e4   :  { %401 = vmax.xlane.f32.xlu1 %v4104_v10 }
 0x2e5   :  { %399 = vmax.xlane.f32.xlu0 %v4106_v11 }
 0x2e6   :  { %v3166_v14 = vpop.f32.mrb[4].mxu1 }
 0x2e7   :  { %v4118_v16 = vadd.f32 %v3166_v14, %v219_v13  ;;  %v352_v17 = vpop.f32.mrb[5].mxu1 }
 0x2e8   :  { %v3167_v21 = vpop.f32.mrb[6].mxu1  ;;  %v4128_v23 = vadd.f32 %v352_v17, %v217_v19 }
 0x2e9   :  { %v355_v22 = vpop.f32.mrb[7].mxu1  ;;  %411 = vmax.xlane.f32.xlu1 %v4118_v16  ;;  %405 = vmax.xlane.f32.xlu0 %v4116_v15  ;;  %v4130_v24 = vadd.f32 %v3167_v21, %v220_v20 }
 0x2ea   :  { %v4140_v29 = vadd.f32 %v355_v22, %v218_v25 }
 0x2ed   :  { %407 = vmax.xlane.f32.xlu1 %v4128_v23  ;;  %413 = vmax.xlane.f32.xlu0 %v4130_v24 }
 0x2ee   :  { %v3170_v28 = vpop.f32.mrb[8].mxu1 }
 0x2ef   :  { %v4142_v30 = vadd.f32 %v3170_v28, %v223_v26  ;;  %v368_v31 = vpop.f32.mrb[9].mxu1 }
 0x2f0   :  { %v3171_v36 = vpop.f32.mrb[10].mxu1  ;;  %v4152_v38 = vadd.f32 %v368_v31, %v221_v32 }
 0x2f1   :  { %v371_v37 = vpop.f32.mrb[11].mxu1  ;;  %419 = vmax.xlane.f32.xlu1 %v4142_v30  ;;  %409 = vmax.xlane.f32.xlu0 %v4140_v29  ;;  %v4154_v39 = vadd.f32 %v3171_v36, %v224_v33 }
 0x2f2   :  { %v4164_v45 = vadd.f32 %v371_v37, %v222_v40 }
 0x2f5   :  { %415 = vmax.xlane.f32.xlu1 %v4152_v38  ;;  %421 = vmax.xlane.f32.xlu0 %v4154_v39 }
 0x2f6   :  { %v3174_v44 = vpop.f32.mrb[12].mxu1 }
 0x2f7   :  { %v4166_v46 = vadd.f32 %v3174_v44, %v227_v41  ;;  %v384_v48 = vpop.f32.mrb[13].mxu1 }
 0x2f8   :  { %v3175_v50 = vpop.f32.mrb[14].mxu1  ;;  %v4173_v52 = vadd.f32 %v384_v48, %v225_v49 }
 0x2f9   :  { %v387_v51 = vpop.f32.mrb[15].mxu1  ;;  %427 = vmax.xlane.f32.xlu1 %v4166_v46  ;;  %417 = vmax.xlane.f32.xlu0 %v4164_v45  ;;  %v4189_v54 = vadd.f32 %v3175_v50, %v228_v53 }
 0x2fd   :  { %423 = vmax.xlane.f32.xlu1 %v4173_v52 }
 0x30e   :  { %553 = vrot.lane.b32.xlu1 %v4025_v18, %s3855_s26  ;;  %v226_v18 = vld [vmem:[%s5257_s27 + $0x68] sm:$0xff] }
 0x30f   :  { %555 = vrot.lane.b32.xlu0 %v4037_v27, %s3855_s26  ;;  %v4195_v27 = vadd.f32 %v387_v51, %v226_v18 }
 0x312   :  { %557 = vrot.lane.b32.xlu1 %v4041_v34, %s3855_s26 }
 0x313   :  { %559 = vrot.lane.b32.xlu0 %v4043_v35, %s3855_s26 }
 0x316   :  { %563 = vrot.lane.b32.xlu1 %v4051_v43, %s3855_s26 }
 0x332   :  { %429 = vmax.xlane.f32.xlu0 %v4189_v54 }
 0x336   :  { %425 = vmax.xlane.f32.xlu0 %v4195_v27 }
 0x34c   :  { %561 = vrot.lane.b32.xlu0 %v4049_v42, %s3855_s26 }
 0x36e   :  { %v404_v34 = vpop.xlane.xlu0 %403 }
 0x36f   :  { %v433_v35 = vsub.f32 %v4095_v0, %v404_v34 }
 0x371   :  { %v451_v43 = vmul.f32 1.442695, %v433_v35  ;;  %v402_v55 = vpop.xlane.xlu1 %401 }
 0x372   :  { %v400_v56 = vpop.xlane.xlu0 %399  ;;  %v432_v63 = vsub.f32 %v4104_v10, %v402_v55 }
 0x373   :  { %3635 = vpow2.f32 %v451_v43  ;;  %v431_v57 = vsub.f32 %v4106_v11, %v400_v56 }
 0x374   :  { %v449_v9 = vmul.f32 1.442695, %v432_v63 }
 0x375   :  { %v447_v58 = vmul.f32 1.442695, %v431_v57 }
 0x376   :  { %v412_v59 = vpop.xlane.xlu1 %411  ;;  %v406_v60 = vpop.xlane.xlu0 %405 }
 0x377   :  { %3637 = vpow2.f32 %v447_v58  ;;  %v437_v61 = vsub.f32 %v4118_v16, %v412_v59  ;;  %v434_v62 = vsub.f32 %v4116_v15, %v406_v60 }
 0x379   :  { %v459_v42 = vmul.f32 1.442695, %v437_v61  ;;  %v453_v1 = vmul.f32 1.442695, %v434_v62 }
 0x37a   :  { %v408_v4 = vpop.xlane.xlu1 %407  ;;  %v414_v0 = vpop.xlane.xlu0 %413 }
 0x37b   :  { %3639 = vpow2.f32 %v459_v42  ;;  %v435_v7 = vsub.f32 %v4128_v23, %v408_v4  ;;  %v438_v8 = vsub.f32 %v4130_v24, %v414_v0 }
 0x37c   :  { %3641 = vpow2.f32 %v453_v1 }
 0x37d   :  { %v4207_v11 = vpop.eup %3635  ;;  %v455_v12 = vmul.f32 1.442695, %v435_v7  ;;  %v461_v10 = vmul.f32 1.442695, %v438_v8 }
 0x37e   :  { %v420_v13 = vpop.xlane.xlu1 %419  ;;  %483 = vadd.xlane.f32.xlu0 %v4207_v11  ;;  %v410_v14 = vpop.xlane.xlu0 %409 }
 0x37f   :  { %3643 = vpow2.f32 %v455_v12  ;;  %v441_v15 = vsub.f32 %v4142_v30, %v420_v13  ;;  %v436_v16 = vsub.f32 %v4140_v29, %v410_v14 }
 0x380   :  { %3645 = vpow2.f32 %v449_v9 }
 0x381   :  { %v4212_v17 = vpop.eup %3637  ;;  %v457_v19 = vmul.f32 1.442695, %v436_v16  ;;  %3647 = vpow2.f32 %v461_v10  ;;  %v467_v22 = vmul.f32 1.442695, %v441_v15 }
 0x382   :  { %v416_v20 = vpop.xlane.xlu1 %415  ;;  %479 = vadd.xlane.f32.xlu0 %v4212_v17  ;;  %v422_v21 = vpop.xlane.xlu0 %421 }
 0x383   :  { %v439_v23 = vsub.f32 %v4152_v38, %v416_v20  ;;  %3649 = vpow2.f32 %v457_v19  ;;  %v442_v30 = vsub.f32 %v4154_v39, %v422_v21 }
 0x384   :  { %3651 = vpow2.f32 %v467_v22 }
 0x385   :  { %v4216_v24 = vpop.eup %3639  ;;  %v463_v29 = vmul.f32 1.442695, %v439_v23  ;;  %v469_v40 = vmul.f32 1.442695, %v442_v30 }
 0x386   :  { %v4218_v25 = vpop.eup %3641  ;;  %491 = vadd.xlane.f32.xlu1 %v4216_v24  ;;  %v428_v26 = vpop.xlane.xlu1 %427 }
 0x387   :  { %v418_v28 = vpop.xlane.xlu0 %417  ;;  %485 = vadd.xlane.f32.xlu0 %v4218_v25  ;;  %v445_v32 = vsub.f32 %v4166_v46, %v428_v26  ;;  %3653 = vpow2.f32 %v463_v29 }
 0x388   :  { %v440_v31 = vsub.f32 %v4164_v45, %v418_v28 }
 0x389   :  { %v4225_v33 = vpop.eup %3643  ;;  %v475_v39 = vmul.f32 1.442695, %v445_v32 }
 0x38a   :  { %v465_v36 = vmul.f32 1.442695, %v440_v31  ;;  %v4227_v37 = vpop.eup %3645  ;;  %487 = vadd.xlane.f32.xlu1 %v4225_v33  ;;  %v424_v38 = vpop.xlane.xlu1 %423 }
 0x38b   :  { %v443_v41 = vsub.f32 %v4173_v52, %v424_v38  ;;  %481 = vadd.xlane.f32.xlu0 %v4227_v37  ;;  %v4232_v44 = vpop.eup %3647  ;;  %v556_v49 = vpop.permute.xlu0 %555 }
 0x38c   :  { %3655 = vpow2.f32 %v465_v36 }
 0x38d   :  { %v4234_v45 = vpop.eup %3649  ;;  %3657 = vpow2.f32 %v469_v40  ;;  %v471_v48 = vmul.f32 1.442695, %v443_v41 }
 0x38e   :  { %v554_v46 = vpop.permute.xlu1 %553  ;;  %493 = vadd.xlane.f32.xlu1 %v4232_v44  ;;  %3659 = vpow2.f32 %v475_v39  ;;  %v4238_v50 = vpop.eup %3651 }
 0x38f   :  { %489 = vadd.xlane.f32.xlu0 %v4234_v45  ;;  %3178 = vmatprep.subr.bf16.mxu0 %v554_v46  ;;  %3661 = vpow2.f32 %v471_v48  ;;  %v560_v18 = vpop.permute.xlu0 %559 }
 0x390   :  { %3179 = vmatpush3.bf16.msra.mxu0 %v554_v46 }
 0x391   :  { %3180 = vmatprep.subr.bf16.mxu0 %v556_v49  ;;  %v4241_v52 = vpop.eup %3653 }
 0x392   :  { %499 = vadd.xlane.f32.xlu1 %v4238_v50  ;;  %v558_v51 = vpop.permute.xlu1 %557 }
 0x394   :  { %3181 = vmatpush3.bf16.msra.mxu0 %v556_v49 }
 0x395   :  { %3182 = vmatprep.subr.bf16.mxu0 %v558_v51 }
 0x396   :  { %v4243_v53 = vpop.eup %3655  ;;  %495 = vadd.xlane.f32.xlu1 %v4241_v52  ;;  %v564_v62 = vpop.permute.xlu1 %563 }
 0x397   :  { %497 = vadd.xlane.f32.xlu0 %v4243_v53  ;;  %v4247_v34 = vpop.eup %3657 }
 0x398   :  { %3183 = vmatpush3.bf16.msra.mxu0 %v558_v51  ;;  %v4249_v35 = vpop.eup %3659 }
 0x399   :  { %3184 = vmatprep.subr.bf16.mxu0 %v560_v18  ;;  %v4253_v43 = vpop.eup %3661 }
 0x39a   :  { %501 = vadd.xlane.f32.xlu1 %v4247_v34 }
 0x39b   :  { %507 = vadd.xlane.f32.xlu0 %v4249_v35 }
 0x39c   :  { %3185 = vmatpush3.bf16.msra.mxu0 %v560_v18 }
 0x39e   :  { %503 = vadd.xlane.f32.xlu1 %v4253_v43 }
 0x3bf   :  { %v430_v55 = vpop.xlane.xlu0 %429 }
 0x3c0   :  { %v446_v56 = vsub.f32 %v4189_v54, %v430_v55 }
 0x3c2   :  { %v477_v57 = vmul.f32 1.442695, %v446_v56 }
 0x3c3   :  { %v426_v58 = vpop.xlane.xlu0 %425 }
 0x3c4   :  { %3663 = vpow2.f32 %v477_v57  ;;  %v444_v59 = vsub.f32 %v4195_v27, %v426_v58 }
 0x3c6   :  { %v473_v60 = vmul.f32 1.442695, %v444_v59 }
 0x3c7   :  { %v562_v61 = vpop.permute.xlu0 %561 }
 0x3c8   :  { %3665 = vpow2.f32 %v473_v60  ;;  %3186 = vmatprep.subr.bf16.mxu0 %v562_v61 }
 0x3c9   :  { %3187 = vmatpush3.bf16.msra.mxu0 %v562_v61 }
 0x3ca   :  { %3188 = vmatprep.subr.bf16.mxu0 %v564_v62 }
 0x3cd   :  { %3189 = vmatpush3.bf16.msra.mxu0 %v564_v62 }
 0x3ce   :  { %v4258_v63 = vpop.eup %3663 }
 0x3cf   :  { %509 = vadd.xlane.f32.xlu1 %v4258_v63 }
 0x3d2   :  { %v4261_v42 = vpop.eup %3665 }
 0x3d3   :  { %505 = vadd.xlane.f32.xlu0 %v4261_v42 }
 0x3e9   :  { %565 = vrot.lane.b32.xlu0 %v4059_v47, %s3855_s26 }
 0x40b   :  { %v484_v54 = vpop.xlane.xlu0 %483 }
 0x40f   :  { %v480_v27 = vpop.xlane.xlu0 %479 }
 0x410   :  { %3667 = vrcp.f32 %v480_v27 }
 0x413   :  { %v492_v13 = vpop.xlane.xlu1 %491 }
 0x414   :  { %v486_v1 = vpop.xlane.xlu0 %485 }
 0x417   :  { %v488_v14 = vpop.xlane.xlu1 %487 }
 0x418   :  { %v482_v4 = vpop.xlane.xlu0 %481 }
 0x419   :  { %3669 = vrcp.f32 %v482_v4 }
 0x41a   :  { %v3668_v0 = vpop.eup %3667  ;;  %3671 = vrcp.f32 %v486_v1 }
 0x41b   :  { %v527_v8 = vmul.f32 %v3668_v0, %v4212_v17  ;;  %v494_v10 = vpop.xlane.xlu1 %493  ;;  %v3622_v0 = vld [vmem:[%s5258_s7 + $0x8] sm:$0xff]  }
 0x41c   :  { %v490_v15 = vpop.xlane.xlu0 %489 }
 0x41d   :  { %3673 = vrcp.f32 %v490_v15 }
 0x41e   :  { %3675 = vrcp.f32 %v484_v54 }
 0x41f   :  { %v500_v16 = vpop.xlane.xlu1 %499  ;;  %3677 = vrcp.f32 %v488_v14 }
 0x420   :  { %3679 = vrcp.f32 %v494_v10 }
 0x423   :  { %v3670_v7 = vpop.eup %3669  ;;  %v496_v19 = vpop.xlane.xlu1 %495 }
 0x424   :  { %v528_v9 = vmul.f32 %v3670_v7, %v4227_v37  ;;  %v498_v47 = vpop.xlane.xlu0 %497  ;;  %3681 = vrcp.f32 %v496_v19  ;;  %v3672_v17 = vpop.eup %3671 }
 0x425   :  { %3683 = vrcp.f32 %v498_v47  ;;  %v530_v29 = vmul.f32 %v3672_v17, %v4218_v25 }
 0x426   :  { %v543_v12 = vpack.c.bf16 %v528_v9, %v527_v8  ;;  %3685 = vrcp.f32 %v492_v13 }
 0x427   :  { %v502_v21 = vpop.xlane.xlu1 %501  ;;  %v3674_v23 = vpop.eup %3673 }
 0x428   :  { %3192 = vmatprep.mubr.bf16.mxu0 %v543_v12  ;;  %v508_v20 = vpop.xlane.xlu0 %507  ;;  %v3676_v26 = vpop.eup %3675  ;;  %v532_v31 = vmul.f32 %v3674_v23, %v4234_v45  ;;  %3687 = vrcp.f32 %v502_v21 }
 0x429   :  { %v3678_v28 = vpop.eup %3677  ;;  %v529_v32 = vmul.f32 %v3676_v26, %v4207_v11 }
 0x42a   :  { %v531_v37 = vmul.f32 %v3678_v28, %v4225_v33  ;;  %v3680_v38 = vpop.eup %3679 }
 0x42b   :  { %v504_v36 = vpop.xlane.xlu1 %503  ;;  %v544_v40 = vpack.c.bf16 %v530_v29, %v529_v32  ;;  %v534_v48 = vmul.f32 %v3680_v38, %v4232_v44 }
 0x42c   :  { %v545_v39 = vpack.c.bf16 %v532_v31, %v531_v37 }
 0x42e   :  { %v3682_v41 = vpop.eup %3681 }
 0x42f   :  { %v3684_v46 = vpop.eup %3683  ;;  %v535_v11 = vmul.f32 %v3682_v41, %v4241_v52 }
 0x430   :  { %v3686_v25 = vpop.eup %3685  ;;  %v536_v49 = vmul.f32 %v3684_v46, %v4243_v53 }
 0x431   :  { %v533_v33 = vmul.f32 %v3686_v25, %v4216_v24 }
 0x432   :  { %v3688_v18 = vpop.eup %3687  ;;  %v547_v55 = vpack.c.bf16 %v536_v49, %v535_v11 }
 0x433   :  { %v546_v51 = vpack.c.bf16 %v534_v48, %v533_v33  ;;  %v538_v59 = vmul.f32 %v3688_v18, %v4247_v34  ;;  %v3621_v34 = vld [vmem:[%s5258_s7] sm:$0xff]   ;;  %s5260_s7 = sld [smem:[#allocation8_spill]] }
 0x45c   :  { %v510_v45 = vpop.xlane.xlu1 %509 }
 0x460   :  { %v506_v22 = vpop.xlane.xlu0 %505 }
 0x461   :  { %3689 = vrcp.f32 %v506_v22 }
 0x462   :  { %3691 = vrcp.f32 %v500_v16 }
 0x463   :  { %3693 = vrcp.f32 %v504_v36 }
 0x464   :  { %v566_v30 = vpop.permute.xlu0 %565  ;;  %3695 = vrcp.f32 %v510_v45 }
 0x465   :  { %3190 = vmatprep.subr.bf16.mxu0 %v566_v30  ;;  %3697 = vrcp.f32 %v508_v20 }
 0x466   :  { %3191 = vmatpush3.bf16.msra.mxu0 %v566_v30 }
 0x467   :  { %3208 = vmatprep.subr.bf16.mxu0 %v3621_v34 }
 0x469   :  { %3193 = vmatmul.mubr.bf16.vlgmr.msra.gmra.mrb[4].mxu0 %v544_v40 }
 0x46a   :  { %3196 = vmatprep.mubr.bf16.mxu0 %v545_v39  ;;  %3209 = vmatpush3.bf16.msra.mxu0 %v3621_v34 }
 0x46b   :  { %v3690_v56 = vpop.eup %3689  ;;  %3210 = vmatprep.subr.bf16.mxu0 %v3622_v0 }
 0x46c   :  { %v3692_v57 = vpop.eup %3691  ;;  %v540_v44 = vmul.f32 %v3690_v56, %v4261_v42 }
 0x46d   :  { %v3694_v58 = vpop.eup %3693  ;;  %v537_v52 = vmul.f32 %v3692_v57, %v4238_v50 }
 0x46e   :  { %v539_v53 = vmul.f32 %v3694_v58, %v4253_v43  ;;  %v3696_v24 = vpop.eup %3695  ;;  %3211 = vmatpush3.bf16.msra.mxu0 %v3622_v0 }
 0x46f   :  { %v548_v60 = vpack.c.bf16 %v538_v59, %v537_v52  ;;  %v3698_v62 = vpop.eup %3697  ;;  %v542_v54 = vmul.f32 %v3696_v24, %v4258_v63 }
 0x470   :  { %v549_v61 = vpack.c.bf16 %v540_v44, %v539_v53  ;;  %v541_v27 = vmul.f32 %v3698_v62, %v4249_v35  ;;  %v2892_v62 = vld [vmem:[%s5259_s9] ss:$0 sm:$0xff]  ;;  %s5261_s9 = sld [smem:[#allocation9_spill]] }
 0x471   :  { %3197 = vmatmul.mubr.bf16.gmra.mrb[8].mxu0 %v546_v51 }
 0x472   :  { %3200 = vmatprep.mubr.bf16.mxu0 %v547_v55  ;;  %v550_v1 = vpack.c.bf16 %v542_v54, %v541_v27 }
 0x479   :  { %3201 = vmatmul.mubr.bf16.gmra.mrb[12].mxu0 %v548_v60 }
 0x47a   :  { %3204 = vmatprep.mubr.bf16.mxu0 %v549_v61 }
 0x481   :  { %3205 = vmatmul.mubr.bf16.gmra.mrb[16].mxu0 %v550_v1 }
 0x53c   :  { %v3194_v50 = vpop.f32.mrb[4].mxu0 }
 0x53d   :  { %v609_v43 = vpop.f32.mrb[5].mxu0 }
 0x53e   :  { %v3195_v42 = vpop.f32.mrb[6].mxu0 }
 0x53f   :  { %v612_v4 = vpop.f32.mrb[7].mxu0 }
 0x544   :  { %v3198_v7 = vpop.f32.mrb[8].mxu0 }
 0x545   :  { %v625_v63 = vpop.f32.mrb[9].mxu0 }
 0x546   :  { %v3199_v35 = vpop.f32.mrb[10].mxu0 }
 0x547   :  { %v3499_v8 = vpack.i.bf16 %v3199_v35, %v3198_v7  ;;  %v628_v9 = vpop.f32.mrb[11].mxu0 }
 0x548   :  { %v3504_v12 = vpack.i.bf16 %v628_v9, %v625_v63 }
 0x549   :  { %3500 = vrot.lane.b32.xlu1 %v3499_v8, %s3856_s5 }
 0x54c   :  { %v3202_v13 = vpop.f32.mrb[12].mxu0 }
 0x54d   :  { %3505 = vrot.lane.b32.xlu1 %v3504_v12, %s3856_s5  ;;  %v641_v14 = vpop.f32.mrb[13].mxu0 }
 0x54e   :  { %v3203_v10 = vpop.f32.mrb[14].mxu0 }
 0x54f   :  { %v3509_v15 = vpack.i.bf16 %v3203_v10, %v3202_v13  ;;  %v644_v16 = vpop.f32.mrb[15].mxu0 }
 0x550   :  { %v3514_v47 = vpack.i.bf16 %v644_v16, %v641_v14 }
 0x551   :  { %3510 = vrot.lane.b32.xlu1 %v3509_v15, %s3857_s0 }
 0x552   :  { %3515 = vrot.lane.b32.xlu0 %v3514_v47, %s3857_s0 }
 0x554   :  { %v3206_v19 = vpop.f32.mrb[16].mxu0 }
 0x555   :  { %v657_v20 = vpop.f32.mrb[17].mxu0 }
 0x556   :  { %v3207_v17 = vpop.f32.mrb[18].mxu0 }
 0x557   :  { %v3524_v21 = vpack.i.bf16 %v3207_v17, %v3206_v19  ;;  %v660_v22 = vpop.f32.mrb[19].mxu0 }
 0x558   :  { %v3519_v23 = vpack.i.bf16 %v660_v22, %v657_v20 }
 0x559   :  { %3525 = vrot.lane.b32.xlu1 %v3524_v21, %s3858_s8 }
 0x55a   :  { %3520 = vrot.lane.b32.xlu0 %v3519_v23, %s3858_s8 }
 0x5bb   :  { %v3501_v26 = vpop.permute.xlu1 %3500 }
 0x5bc   :  { %v3503_v30 = vunpack.i.h.bf16 %v3501_v26  ;;  %v3502_v31 = vunpack.i.l.bf16 %v3501_v26 }
 0x5be   :  { %v723_v46 = vsel %vm253_vm1, %v3195_v42, %v3503_v30  ;;  %v722_v25 = vsel %vm253_vm1, %v3194_v50, %v3502_v31 }
 0x5bf   :  { %v3506_v28 = vpop.permute.xlu1 %3505 }
 0x5c0   :  { %v3508_v36 = vunpack.i.h.bf16 %v3506_v28  ;;  %v3507_v37 = vunpack.i.l.bf16 %v3506_v28 }
 0x5c2   :  { %v721_v48 = vsel %vm253_vm1, %v612_v4, %v3508_v36  ;;  %v720_v11 = vsel %vm253_vm1, %v609_v43, %v3507_v37  ;;  %v3624_v36 = vld [vmem:[%s5260_s7 + $0x8] sm:$0xff]   ;;  %v3625_v37 = vld [vmem:[%s5261_s9] sm:$0xff]  }
 0x5c3   :  { %v3511_v29 = vpop.permute.xlu1 %3510 }
 0x5c4   :  { %v3516_v32 = vpop.permute.xlu0 %3515  ;;  %v3513_v38 = vunpack.i.h.bf16 %v3511_v29  ;;  %v3512_v40 = vunpack.i.l.bf16 %v3511_v29 }
 0x5c5   :  { %v3518_v41 = vunpack.i.h.bf16 %v3516_v32  ;;  %v3517_v39 = vunpack.i.l.bf16 %v3516_v32  ;;  %v3623_v32 = vld [vmem:[%s5260_s7] sm:$0xff]   ;;  %s5262_s7 = sld [smem:[#allocation10_spill]] }
 0x5c6   :  { %v728_v18 = vsel %vm724_vm2, %v723_v46, %v3513_v38  ;;  %v727_v55 = vsel %vm724_vm2, %v722_v25, %v3512_v40  ;;  %3216 = vmatprep.subr.bf16.mxu0 %v3623_v32 }
 0x5c7   :  { %v726_v58 = vsel %vm724_vm2, %v721_v48, %v3518_v41  ;;  %v725_v59 = vsel %vm724_vm2, %v720_v11, %v3517_v39 }
 0x5cb   :  { %v3526_v45 = vpop.permute.xlu1 %3525 }
 0x5cc   :  { %v3528_v49 = vunpack.i.h.bf16 %v3526_v45  ;;  %v3527_v33 = vunpack.i.l.bf16 %v3526_v45  ;;  %v3521_v51 = vpop.permute.xlu0 %3520 }
 0x5cd   :  { %v3523_v56 = vunpack.i.h.bf16 %v3521_v51  ;;  %v3522_v57 = vunpack.i.l.bf16 %v3521_v51 }
 0x5ce   :  { %v733_v44 = vsel %vm729_vm3, %v728_v18, %v3528_v49  ;;  %v732_v52 = vsel %vm729_vm3, %v727_v55, %v3527_v33  ;;  %v2897_v55 = vld [vmem:[%s5262_s7] ss:$0 sm:$0xff] }
 0x5cf   :  { %v739_v53 = vpack.c.bf16 %v733_v44, %v732_v52  ;;  %v731_v60 = vsel %vm729_vm3, %v726_v58, %v3523_v56  ;;  %v730_v24 = vsel %vm729_vm3, %v725_v59, %v3522_v57  ;;  %v2898_v52 = vld [vmem:[%s5263_s6] ss:$0 sm:$0xff] }
 0x5d0   :  { %v738_v61 = vpack.c.bf16 %v731_v60, %v730_v24 }
 0x5d2   :  { %3212 = vmatprep.mubr.msk.bf16.mxu0 %vm109_vm0, %v738_v61 }
 0x5d3   :  { %3213 = vmatmul.mubr.msk.bf16.vlgmr.msra.gmra.mrb[20].mxu0 %vm109_vm0, %v739_v53 }
 0x5d4   :  { %3217 = vmatpush3.bf16.msra.mxu0 %v3623_v32 }
 0x5d5   :  { %3218 = vmatprep.subr.bf16.mxu0 %v3624_v36 }
 0x5d8   :  { %3219 = vmatpush3.bf16.msra.mxu0 %v3624_v36 }
 0x5d9   :  { %3224 = vmatprep.subr.bf16.mxu0 %v3625_v37 }
 0x6a6   :  { %v3214_v54 = vpop.f32.mrb[20].mxu0 }
 0x6a7   :  { %v799_v27 = vpop.f32.mrb[21].mxu0  ;;  %v808_v1 = vadd.f32 %v3214_v54, %v2892_v62 }
 0x6a8   :  { %v800_v34 = vadd.f32 %v2892_v62, %v799_v27  ;;  %v3215_v50 = vpop.f32.mrb[22].mxu0 }
 0x6a9   :  { %v802_v43 = vpop.f32.mrb[23].mxu0  ;;  %v811_v0 = vadd.f32 %v3215_v50, %v2892_v62  ;;  %v816_v35 = vadd.f32 %v808_v1, %v4011_v5  ;;  %v1013_v50 = vld [vmem:[%s5222_s1] sm:$0xff] }
 0x6aa   :  { %v803_v42 = vadd.f32 %v2892_v62, %v802_v43  ;;  %v814_v4 = vadd.f32 %v800_v34, %v3999_v2  ;;  %v1014_v43 = vld [vmem:[%s5222_s1 + $0x8] sm:$0xff] }
 0x6ab   :  { %v826_v9 = vsel %vm109_vm0, %v816_v35, 0.0  ;;  %v817_v12 = vadd.f32 %v811_v0, %v4016_v6  ;;  %v1021_v0 = vpack.c.bf16 %v1014_v43, %v1013_v50 }
 0x6ac   :  { %v820_v7 = vsel %vm109_vm0, %v814_v4, 0.0  ;;  %v815_v63 = vadd.f32 %v803_v42, %v4004_v3 }
 0x6ad   :  { %821 = vadd.xlane.f32.xlu0 %v820_v7  ;;  %v829_v13 = vsel %vm109_vm0, %v817_v12, 0.0 }
 0x6ae   :  { %v823_v8 = vsel %vm109_vm0, %v815_v63, 0.0 }
 0x6af   :  { %824 = vadd.xlane.f32.xlu1 %v823_v8  ;;  %v1016_v8 = vld [vmem:[%s5222_s1 + $0x18] sm:$0xff] }
 0x6b1   :  { %827 = vadd.xlane.f32.xlu0 %v826_v9 }
 0x6b5   :  { %830 = vadd.xlane.f32.xlu0 %v829_v13  ;;  %v2899_v13 = vld [vmem:[%s5223_s11] ss:$0 sm:$0xff] }
 0x73a   :  { %v822_v2 = vpop.xlane.xlu0 %821 }
 0x73b   :  { %v833_v14 = vmul.f32 0.03125, %v822_v2 }
 0x73c   :  { %v825_v10 = vpop.xlane.xlu1 %824 }
 0x73d   :  { %v837_v15 = vsub.f32 %v814_v4, %v833_v14  ;;  %v834_v16 = vmul.f32 0.03125, %v825_v10 }
 0x73e   :  { %v828_v3 = vpop.xlane.xlu0 %827 }
 0x73f   :  { %v838_v47 = vsub.f32 %v815_v63, %v834_v16  ;;  %v835_v5 = vmul.f32 0.03125, %v828_v3  ;;  %v841_v19 = vmul.f32 %v837_v15, %v837_v15  ;;  %v3626_v63 = vld [vmem:[%s5261_s9 + $0x8] sm:$0xff]  }
 0x741   :  { %v839_v20 = vsub.f32 %v816_v35, %v835_v5  ;;  %v845_v17 = vsel %vm109_vm0, %v841_v19, 0.0  ;;  %v842_v21 = vmul.f32 %v838_v47, %v838_v47  ;;  %v1015_v35 = vld [vmem:[%s5222_s1 + $0x10] sm:$0xff] }
 0x742   :  { %846 = vadd.xlane.f32.xlu1 %v845_v17  ;;  %v831_v22 = vpop.xlane.xlu0 %830  ;;  %v1022_v9 = vpack.c.bf16 %v1016_v8, %v1015_v35 }
 0x743   :  { %v836_v6 = vmul.f32 0.03125, %v831_v22  ;;  %v848_v23 = vsel %vm109_vm0, %v842_v21, 0.0  ;;  %v843_v26 = vmul.f32 %v839_v20, %v839_v20  ;;  %v2904_v22 = vld [vmem:[%s5224_s13] ss:$0 sm:$0xff] }
 0x744   :  { %849 = vadd.xlane.f32.xlu0 %v848_v23 }
 0x745   :  { %v840_v28 = vsub.f32 %v817_v12, %v836_v6  ;;  %v851_v29 = vsel %vm109_vm0, %v843_v26, 0.0  ;;  %v1113_v6 = vlaneseq }
 0x746   :  { %852 = vadd.xlane.f32.xlu1 %v851_v29 }
 0x747   :  { %v844_v30 = vmul.f32 %v840_v28, %v840_v28 }
 0x749   :  { %v854_v31 = vsel %vm109_vm0, %v844_v30, 0.0 }
 0x74a   :  { %855 = vadd.xlane.f32.xlu0 %v854_v31 }
 0x7cf   :  { %v847_v38 = vpop.xlane.xlu1 %846 }
 0x7d0   :  { %v857_v40 = vmul.f32 0.03125, %v847_v38 }
 0x7d1   :  { %v850_v41 = vpop.xlane.xlu0 %849 }
 0x7d2   :  { %v861_v39 = vadd.f32 1e-05, %v857_v40  ;;  %v858_v46 = vmul.f32 0.03125, %v850_v41 }
 0x7d3   :  { %v853_v25 = vpop.xlane.xlu1 %852 }
 0x7d4   :  { %3699 = vrsqrt.f32 %v861_v39  ;;  %v862_v45 = vadd.f32 1e-05, %v858_v46  ;;  %v859_v48 = vmul.f32 0.03125, %v853_v25  ;;  %v1123_v46 = vand.u32 127, %v1113_v6 }
 0x7d6   :  { %3701 = vrsqrt.f32 %v862_v45  ;;  %v863_v11 = vadd.f32 1e-05, %v859_v48 }
 0x7d7   :  { %v856_v49 = vpop.xlane.xlu0 %855 }
 0x7d8   :  { %3703 = vrsqrt.f32 %v863_v11  ;;  %v860_v33 = vmul.f32 0.03125, %v856_v49 }
 0x7da   :  { %v864_v51 = vadd.f32 1e-05, %v860_v33  ;;  %v4543_v33 = vld [vmem:[%s5225_s3] sm:$0xff] }
 0x7dc   :  { %3705 = vrsqrt.f32 %v864_v51 }
 0x7de   :  { %v3700_v18 = vpop.eup %3699 }
 0x7df   :  { %v869_v56 = vmul.f32 %v3700_v18, %v837_v15 }
 0x7e0   :  { %v3702_v57 = vpop.eup %3701 }
 0x7e1   :  { %v870_v58 = vmul.f32 %v3702_v57, %v838_v47  ;;  %v879_v59 = vmul.f32 %v2897_v55, %v869_v56 }
 0x7e2   :  { %v3704_v44 = vpop.eup %3703 }
 0x7e3   :  { %v871_v53 = vmul.f32 %v3704_v44, %v839_v20  ;;  %v880_v60 = vmul.f32 %v2897_v55, %v870_v58  ;;  %v4338_v24 = vadd.f32 %v2898_v52, %v879_v59 }
 0x7e5   :  { %v4340_v61 = vadd.f32 %v2898_v52, %v880_v60  ;;  %v881_v1 = vmul.f32 %v2897_v55, %v871_v53  ;;  %v4551_v60 = vld [vmem:[%s5225_s3 + $0x8] sm:$0xff] }
 0x7e6   :  { %v3706_v62 = vpop.eup %3705 }
 0x7e7   :  { %v872_v54 = vmul.f32 %v3706_v62, %v840_v28  ;;  %v897_v27 = vpack.c.bf16 %v4340_v61, %v4338_v24  ;;  %v4351_v42 = vadd.f32 %v2898_v52, %v881_v1  ;;  %v1114_v28 = vshrl.u32 %v1113_v6, 7 }
 0x7e9   :  { %3220 = vmatprep.mubr.msk.bf16.mxu0 %vm109_vm0, %v897_v27  ;;  %v882_v34 = vmul.f32 %v2897_v55, %v872_v54  ;;  %v1128_v25 = vand.u32 7, %v1114_v28  ;;  %v1116_v11 = vadd.s32 16, %v1114_v28  ;;  %v1117_v49 = vadd.s32 24, %v1114_v28 }
 0x7ea   :  { %v3859_v55 = vmov 1.0|1.0   ;;  %v1118_v56 = vadd.s32 32, %v1114_v28  ;;  %v1119_v57 = vadd.s32 40, %v1114_v28  ;;  %v1121_v53 = vadd.s32 56, %v1114_v28 }
 0x7eb   :  { %v4353_v4 = vadd.f32 %v2898_v52, %v882_v34  ;;  %vm1220_vm4 = vcmp.eq.s32.totalorder %v1128_v25, %v1123_v46  ;;  %v1142_v51 = vand.u32 7, %v1116_v11  ;;  %v1149_v18 = vand.u32 7, %v1117_v49 }
 0x7ec   :  { %v1156_v59 = vand.u32 7, %v1118_v56  ;;  %v1163_v44 = vand.u32 7, %v1119_v57  ;;  %v1120_v52 = vadd.s32 48, %v1114_v28  ;;  %v1177_v54 = vand.u32 7, %v1121_v53 }
 0x7ed   :  { %v898_v7 = vpack.c.bf16 %v4353_v4, %v4351_v42  ;;  %vm1222_vm7 = vcmp.eq.s32.totalorder %v1142_v51, %v1123_v46  ;;  %vm1223_vm8 = vcmp.eq.s32.totalorder %v1149_v18, %v1123_v46 }
 0x7ee   :  { %vm4408_vm9 = vmpackc.low %vm1223_vm8, %vm1222_vm7  ;;  %vm1224_vm10 = vcmp.eq.s32.totalorder %v1156_v59, %v1123_v46  ;;  %vm1225_vm11 = vcmp.eq.s32.totalorder %v1163_v44, %v1123_v46  ;;  %v1170_v62 = vand.u32 7, %v1120_v52  ;;  %vm1227_vm14 = vcmp.eq.s32.totalorder %v1177_v54, %v1123_v46 }
 0x7ef   :  { %3221 = vmatmul.mubr.msk.bf16.vlgmr.msra.gmra.mrb[24].mxu0 %vm109_vm0, %v898_v7  ;;  %vm4422_vm12 = vmpackc.low %vm1225_vm11, %vm1224_vm10 }
 0x7f0   :  { %3225 = vmatpush3.bf16.msra.mxu0 %v3625_v37  ;;  %3228 = vmatprep.mubr.msk.bf16.mxu0 %vm109_vm0, %v1021_v0  ;;  %v1115_v37 = vadd.s32 8, %v1114_v28  ;;  %vm1226_vm13 = vcmp.eq.s32.totalorder %v1170_v62, %v1123_v46 }
 0x7f1   :  { %3226 = vmatprep.subr.bf16.mxu0 %v3626_v63  ;;  %vm4434_vm15 = vmpackc.low %vm1227_vm14, %vm1226_vm13 }
 0x7f2   :  { %v1135_v45 = vand.u32 7, %v1115_v37 }
 0x7f4   :  { %3227 = vmatpush3.bf16.msra.mxu0 %v3626_v63  ;;  %vm1221_vm5 = vcmp.eq.s32.totalorder %v1135_v45, %v1123_v46 }
 0x7f5   :  { %vm4395_vm6 = vmpackc.low %vm1221_vm5, %vm1220_vm4  ;;  %vm1393_vm4 = vcmask 523264  }
 0x7f6   :  { %3256 = vmatprep.subr.msk.bf16.mxu0 %vm4395_vm6, %v3859_v55 }
 0x7f7   :  { %3229 = vmatmul.mubr.msk.bf16.vlgmr.msra.gmra.mrb[28].mxu0 %vm109_vm0, %v1022_v9 }
 0x7f8   :  { %3257 = vmatpush3.bf16.msk.msra.mxu0 %vm4395_vm6, %v3859_v55 }
 0x7f9   :  { %3258 = vmatprep.subr.msk.bf16.mxu0 %vm4408_vm9, %v3859_v55 }
 0x7fc   :  { %3259 = vmatpush3.bf16.msk.msra.mxu0 %vm4408_vm9, %v3859_v55 }
 0x7fd   :  { %3260 = vmatprep.subr.msk.bf16.mxu0 %vm4422_vm12, %v3859_v55 }
 0x800   :  { %3261 = vmatpush3.bf16.msk.msra.mxu0 %vm4422_vm12, %v3859_v55 }
 0x801   :  { %3262 = vmatprep.subr.msk.bf16.mxu0 %vm4434_vm15, %v3859_v55 }
 0x804   :  { %3263 = vmatpush3.bf16.msk.msra.mxu0 %vm4434_vm15, %v3859_v55 }
 0x8c2   :  { %v3222_v12 = vpop.f32.mrb[24].mxu0 }
 0x8c3   :  { %v958_v2 = vpop.f32.mrb[25].mxu0  ;;  %v967_v10 = vadd.f32 %v3222_v12, %v2899_v13 }
 0x8c4   :  { %v3223_v14 = vpop.f32.mrb[26].mxu0  ;;  %v959_v3 = vadd.f32 %v2899_v13, %v958_v2 }
 0x8c5   :  { %v970_v15 = vadd.f32 %v3223_v14, %v2899_v13  ;;  %v961_v16 = vpop.f32.mrb[27].mxu0 }
 0x8c6   :  { %v962_v47 = vadd.f32 %v2899_v13, %v961_v16 }
 0x8c7   :  { %v4372_v5 = vpack.c.bf16 %v970_v15, %v967_v10  ;;  %v4374_v19 = vpack.i.bf16 %v970_v15, %v967_v10 }
 0x8c8   :  { %v4376_v20 = vpack.c.bf16 %v962_v47, %v959_v3  ;;  %v4378_v17 = vpack.i.bf16 %v962_v47, %v959_v3 }
 0x8ca   :  { %v3230_v21 = vpop.f32.mrb[28].mxu0  ;;  %3240 = vmatprep.mubr.msk.bf16.mxu1 %vm253_vm1, %v4376_v20 }
 0x8cb   :  { %v1082_v23 = vpop.f32.mrb[29].mxu0  ;;  %v1091_v29 = vadd.f32 %v3230_v21, %v2904_v22 }
 0x8cc   :  { %v3231_v26 = vpop.f32.mrb[30].mxu0  ;;  %v1083_v32 = vadd.f32 %v2904_v22, %v1082_v23 }
 0x8cd   :  { %v1094_v30 = vadd.f32 %v3231_v26, %v2904_v22  ;;  %v1085_v31 = vpop.f32.mrb[31].mxu0 }
 0x8ce   :  { %v1086_v36 = vadd.f32 %v2904_v22, %v1085_v31 }
 0x8cf   :  { %v3569_v38 = vpack.i.bf16 %v1094_v30, %v1091_v29  ;;  %v4385_v40 = vpack.c.bf16 %v1094_v30, %v1091_v29 }
 0x8d0   :  { %v3534_v41 = vpack.i.bf16 %v1086_v36, %v1083_v32  ;;  %v4387_v39 = vpack.c.bf16 %v1086_v36, %v1083_v32 }
 0x8d1   :  { %v1744_v31 = vsel %vm253_vm1, %v4385_v40, 0 }
 0x8d2   :  { %3535 = vrot.lane.b32.xlu0 %v3534_v41, %s3851_s10  ;;  %3530 = vrot.lane.b32.xlu1 %v3534_v41, %s3852_s30  ;;  %v1285_v48 = vsel %vm253_vm1, %v4387_v39, 0 }
 0x8d3   :  { %3452 = vmatprep.subr.msk.bf16.mxu1 %vm253_vm1, %v4387_v39 }
 0x8d4   :  { %3233 = vmatpush3.bf16.xpose.msra.mxu1 %v1285_v48 }
 0x8d6   :  { %3550 = vrot.lane.b32.xlu0 %v4374_v19, %s3852_s30  ;;  %3540 = vrot.lane.b32.xlu1 %v3534_v41, %s3853_s12 }
 0x8da   :  { %3560 = vrot.lane.b32.xlu0 %v4378_v17, %s3851_s10  ;;  %3545 = vrot.lane.b32.xlu1 %v4378_v17, %s3852_s30 }
 0x8de   :  { %3570 = vrot.lane.b32.xlu0 %v3569_v38, %s3851_s10  ;;  %3555 = vrot.lane.b32.xlu1 %v3569_v38, %s3852_s30 }
 0x8e2   :  { %3580 = vrot.lane.b32.xlu0 %v4374_v19, %s3853_s12  ;;  %3565 = vrot.lane.b32.xlu1 %v4374_v19, %s3851_s10 }
 0x8e6   :  { %3575 = vrot.lane.b32.xlu1 %v4378_v17, %s3853_s12 }
 0x8ea   :  { %3585 = vrot.lane.b32.xlu1 %v3569_v38, %s3853_s12 }
 0x8ee   :  { %2040 = vrot.lane.b32.xlu1 %v4385_v40, %s3854_s2 }
 0x944   :  { %v3536_v1 = vpop.permute.xlu0 %3535  ;;  %v3531_v34 = vpop.permute.xlu1 %3530 }
 0x945   :  { %v3533_v50 = vunpack.i.h.bf16 %v3531_v34  ;;  %v3532_v43 = vunpack.i.l.bf16 %v3531_v34  ;;  %v3538_v0 = vunpack.i.h.bf16 %v3536_v1  ;;  %v3537_v7 = vunpack.i.l.bf16 %v3536_v1 }
 0x947   :  { %v4453_v63 = vpack.c.bf16 %v3533_v50, %v3532_v43  ;;  %v4457_v8 = vpack.c.bf16 %v3538_v0, %v3537_v7 }
 0x948   :  { %v3541_v35 = vpop.permute.xlu1 %3540  ;;  %v3551_v17 = vpop.permute.xlu0 %3550 }
 0x949   :  { %3453 = vmatprep.subr.msk.bf16.mxu1 %vm253_vm1, %v4453_v63  ;;  %v1288_v9 = vsel %vm253_vm1, %v4453_v63, 0  ;;  %v3543_v13 = vunpack.i.h.bf16 %v3541_v35  ;;  %v3542_v2 = vunpack.i.l.bf16 %v3541_v35  ;;  %v1291_v3 = vsel %vm253_vm1, %v4457_v8, 0 }
 0x94a   :  { %3235 = vmatpush3.bf16.xpose.msra.mxu1 %v1288_v9  ;;  %v3553_v36 = vunpack.i.h.bf16 %v3551_v17  ;;  %v3552_v37 = vunpack.i.l.bf16 %v3551_v17  ;;  %v4561_v9 = vld [vmem:[%s5225_s3 + $0x18] sm:$0xff] }
 0x94b   :  { %3454 = vmatprep.subr.msk.bf16.mxu1 %vm253_vm1, %v4457_v8  ;;  %v4463_v16 = vpack.c.bf16 %v3543_v13, %v3542_v2  ;;  %v4571_v2 = vld [vmem:[%s5225_s3 + $0x30] sm:$0xff] }
 0x94c   :  { %v3546_v12 = vpop.permute.xlu1 %3545  ;;  %v3561_v23 = vpop.permute.xlu0 %3560  ;;  %v1251_v45 = vpack.c.bf16 %v3553_v36, %v3552_v37 }
 0x94d   :  { %v1294_v22 = vsel %vm253_vm1, %v4463_v16, 0  ;;  %v3548_v26 = vunpack.i.h.bf16 %v3546_v12  ;;  %v3547_v28 = vunpack.i.l.bf16 %v3546_v12  ;;  %v3563_v38 = vunpack.i.h.bf16 %v3561_v23 }
 0x94e   :  { %v3562_v41 = vunpack.i.l.bf16 %v3561_v23 }
 0x94f   :  { %v1250_v30 = vpack.c.bf16 %v3548_v26, %v3547_v28 }
 0x950   :  { %v3556_v14 = vpop.permute.xlu1 %3555  ;;  %v3571_v32 = vpop.permute.xlu0 %3570  ;;  %v1252_v48 = vpack.c.bf16 %v3563_v38, %v3562_v41  ;;  %v4621_v41 = vld [vmem:[%s5225_s3 + $0x40] sm:$0xff] }
 0x951   :  { %v3558_v10 = vunpack.i.h.bf16 %v3556_v14  ;;  %v3557_v15 = vunpack.i.l.bf16 %v3556_v14  ;;  %v3573_v46 = vunpack.i.h.bf16 %v3571_v32  ;;  %v3572_v25 = vunpack.i.l.bf16 %v3571_v32 }
 0x952   :  { %3237 = vmatpush3.bf16.xpose.msra.mxu1 %v1291_v3  ;;  %v4581_v3 = vld [vmem:[%s5225_s3 + $0x20] sm:$0xff] }
 0x953   :  { %v1740_v47 = vpack.c.bf16 %v3558_v10, %v3557_v15  ;;  %3455 = vmatprep.subr.msk.bf16.mxu1 %vm253_vm1, %v4463_v16  ;;  %v4483_v11 = vpack.c.bf16 %v3573_v46, %v3572_v25  ;;  %v4626_v46 = vld [vmem:[%s5225_s3 + $0x58] sm:$0xff] }
 0x954   :  { %v3566_v19 = vpop.permute.xlu1 %3565  ;;  %v3581_v52 = vpop.permute.xlu0 %3580 }
 0x955   :  { %2042 = vrot.lane.b32.xlu1 %v1740_v47, %s3854_s2  ;;  %v3568_v49 = vunpack.i.h.bf16 %v3566_v19  ;;  %v3567_v51 = vunpack.i.l.bf16 %v3566_v19  ;;  %v1750_v54 = vsel %vm253_vm1, %v4483_v11, 0  ;;  %v3583_v1 = vunpack.i.h.bf16 %v3581_v52 }
 0x956   :  { %v3582_v34 = vunpack.i.l.bf16 %v3581_v52 }
 0x957   :  { %v1253_v44 = vpack.c.bf16 %v3568_v49, %v3567_v51 }
 0x958   :  { %v3576_v21 = vpop.permute.xlu1 %3575  ;;  %v1255_v50 = vpack.c.bf16 %v3583_v1, %v3582_v34  ;;  %v4661_v1 = vld [vmem:[%s5225_s3 + $0x60] sm:$0xff]  ;;  %v4666_v34 = vld [vmem:[%s5225_s3 + $0x78] sm:$0xff] }
 0x959   :  { %v3578_v18 = vunpack.i.h.bf16 %v3576_v21  ;;  %v3577_v56 = vunpack.i.l.bf16 %v3576_v21 }
 0x95a   :  { %3239 = vmatpush3.bf16.xpose.msra.mxu1 %v1294_v22 }
 0x95b   :  { %3456 = vmatprep.subr.msk.bf16.mxu1 %vm253_vm1, %v4385_v40  ;;  %v1747_v40 = vsel %vm253_vm1, %v1740_v47, 0  ;;  %v1254_v53 = vpack.c.bf16 %v3578_v18, %v3577_v56 }
 0x95c   :  { %v3586_v6 = vpop.permute.xlu1 %3585 }
 0x95d   :  { %v3588_v57 = vunpack.i.h.bf16 %v3586_v6  ;;  %v3587_v59 = vunpack.i.l.bf16 %v3586_v6 }
 0x95f   :  { %v4490_v62 = vpack.c.bf16 %v3588_v57, %v3587_v59  ;;  %v4644_v57 = vld [vmem:[%s5225_s3 + $0x48] sm:$0xff]  ;;  %v4649_v59 = vld [vmem:[%s5225_s3 + $0x70] sm:$0xff] }
 0x960   :  { %v4474_v29 = vpop.permute.xlu1 %2040 }
 0x961   :  { %3304 = vmatprep.subr.bf16.mxu0 %v4474_v29  ;;  %3241 = vmatmul.mubr.msk.bf16.vlgmr.msra.gmra.mrb[16].mxu1 %vm253_vm1, %v4372_v5  ;;  %v1753_v43 = vsel %vm253_vm1, %v4490_v62, 0 }
 0x962   :  { %3244 = vmatprep.mubr.msk.bf16.mxu1 %vm253_vm1, %v1250_v30  ;;  %3281 = vmatpush3.bf16.xpose.msra.mxu1 %v1744_v31  ;;  %v4609_v31 = vld [vmem:[%s5225_s3 + $0x50] sm:$0xff] }
 0x963   :  { %3457 = vmatprep.subr.msk.bf16.mxu1 %vm253_vm1, %v1740_v47  ;;  %v4586_v47 = vld [vmem:[%s5225_s3 + $0x38] sm:$0xff] }
 0x969   :  { %3245 = vmatmul.mubr.msk.bf16.gmra.mrb[20].mxu1 %vm253_vm1, %v1251_v45 }
 0x96a   :  { %3248 = vmatprep.mubr.msk.bf16.mxu1 %vm253_vm1, %v1252_v48  ;;  %3283 = vmatpush3.bf16.xpose.msra.mxu1 %v1747_v40 }
 0x96b   :  { %3458 = vmatprep.subr.msk.bf16.mxu1 %vm253_vm1, %v4483_v11 }
 0x971   :  { %3249 = vmatmul.mubr.msk.bf16.gmra.mrb[24].mxu1 %vm253_vm1, %v1253_v44 }
 0x972   :  { %3252 = vmatprep.mubr.msk.bf16.mxu1 %vm253_vm1, %v1254_v53  ;;  %3285 = vmatpush3.bf16.xpose.msra.mxu1 %v1750_v54 }
 0x973   :  { %3459 = vmatprep.subr.msk.bf16.mxu1 %vm253_vm1, %v4490_v62 }
 0x979   :  { %3253 = vmatmul.mubr.msk.bf16.gmra.mrb[28].mxu1 %vm253_vm1, %v1255_v50 }
 0x97a   :  { %3287 = vmatpush3.bf16.xpose.msra.mxu1 %v1753_v43  ;;  %3288 = vmatprep.mubr.msk.bf16.mxu1 %vm253_vm1, %v4376_v20 }
 0x97b   :  { %3352 = vmatprep.subr.msk.bf16.mxu1 %vm4395_vm6, %v3859_v55 }
 0x981   :  { %3289 = vmatmul.mubr.msk.bf16.vlgmr.msra.gmra.mrb[32].mxu1 %vm253_vm1, %v4372_v5  ;;  %v4538_v5 = vld [vmem:[%s5225_s3 + $0x10] sm:$0xff] }
 0x982   :  { %3292 = vmatprep.mubr.msk.bf16.mxu1 %vm253_vm1, %v1250_v30  ;;  %3353 = vmatpush3.bf16.msk.msra.mxu1 %vm4395_vm6, %v3859_v55  ;;  %v4604_v30 = vld [vmem:[%s5225_s3 + $0x28] sm:$0xff] }
 0x983   :  { %3354 = vmatprep.subr.msk.bf16.mxu1 %vm4408_vm9, %v3859_v55 }
 0x986   :  { %3355 = vmatpush3.bf16.msk.msra.mxu1 %vm4408_vm9, %v3859_v55 }
 0x987   :  { %3356 = vmatprep.subr.msk.bf16.mxu1 %vm4422_vm12, %v3859_v55 }
 0x989   :  { %3293 = vmatmul.mubr.msk.bf16.gmra.mrb[36].mxu1 %vm253_vm1, %v1251_v45 }
 0x98a   :  { %3296 = vmatprep.mubr.msk.bf16.mxu1 %vm253_vm1, %v1252_v48  ;;  %3357 = vmatpush3.bf16.msk.msra.mxu1 %vm4422_vm12, %v3859_v55 }
 0x98b   :  { %3358 = vmatprep.subr.msk.bf16.mxu1 %vm4434_vm15, %v3859_v55 }
 0x98e   :  { %3359 = vmatpush3.bf16.msk.msra.mxu1 %vm4434_vm15, %v3859_v55 }
 0x991   :  { %3297 = vmatmul.mubr.msk.bf16.gmra.mrb[40].mxu1 %vm253_vm1, %v1253_v44 }
 0x992   :  { %3300 = vmatprep.mubr.msk.bf16.mxu1 %vm253_vm1, %v1254_v53 }
 0x999   :  { %3301 = vmatmul.mubr.msk.bf16.gmra.mrb[44].mxu1 %vm253_vm1, %v1255_v50 }
 0xa34   :  { %v3242_v20 = vpop.f32.mrb[16].mxu1 }
 0xa35   :  { %v4546_v55 = vadd.f32 %v3242_v20, %v4538_v5  ;;  %v1330_v58 = vpop.f32.mrb[17].mxu1 }
 0xa36   :  { %v3243_v27 = vpop.f32.mrb[18].mxu1  ;;  %v4554_v0 = vadd.f32 %v1330_v58, %v4543_v33 }
 0xa37   :  { %v1333_v7 = vpop.f32.mrb[19].mxu1  ;;  %v1400_v35 = vsel %vm1393_vm4, %v4546_v55, -inf  ;;  %v4574_v14 = vadd.f32 %v3243_v27, %v4561_v9 }
 0xa38   :  { %v4564_v12 = vadd.f32 %v1333_v7, %v4551_v60  ;;  %1401 = vmax.xlane.f32.xlu0 %v1400_v35  ;;  %v1394_v10 = vsel %vm1393_vm4, %v4554_v0, -inf }
 0xa39   :  { %v1403_v28 = vsel %vm1393_vm4, %v4574_v14, -inf }
 0xa3a   :  { %v1397_v13 = vsel %vm1393_vm4, %v4564_v12, -inf }
 0xa3b   :  { %1398 = vmax.xlane.f32.xlu1 %v1397_v13 }
 0xa3c   :  { %v3246_v15 = vpop.f32.mrb[20].mxu1  ;;  %1395 = vmax.xlane.f32.xlu0 %v1394_v10  ;;  %v4684_v10 = vld [vmem:[%s5225_s3 + $0x68] sm:$0xff] }
 0xa3d   :  { %v4589_v19 = vadd.f32 %v3246_v15, %v4571_v2  ;;  %v1346_v17 = vpop.f32.mrb[21].mxu1 }
 0xa3e   :  { %v3247_v21 = vpop.f32.mrb[22].mxu1  ;;  %v4592_v22 = vadd.f32 %v1346_v17, %v4581_v3 }
 0xa3f   :  { %v4595_v6 = vadd.f32 %v3247_v21, %v4586_v47  ;;  %v1349_v23 = vpop.f32.mrb[23].mxu1  ;;  %v1412_v26 = vsel %vm1393_vm4, %v4589_v19, -inf }
 0xa40   :  { %1413 = vmax.xlane.f32.xlu1 %v1412_v26  ;;  %1404 = vmax.xlane.f32.xlu0 %v1403_v28  ;;  %v4612_v32 = vadd.f32 %v1349_v23, %v4604_v30  ;;  %v1406_v36 = vsel %vm1393_vm4, %v4592_v22, -inf }
 0xa41   :  { %v1415_v37 = vsel %vm1393_vm4, %v4595_v6, -inf }
 0xa42   :  { %v1409_v56 = vsel %vm1393_vm4, %v4612_v32, -inf }
 0xa44   :  { %v3250_v38 = vpop.f32.mrb[24].mxu1  ;;  %1407 = vmax.xlane.f32.xlu1 %v1406_v36  ;;  %1416 = vmax.xlane.f32.xlu0 %v1415_v37 }
 0xa45   :  { %v4629_v25 = vadd.f32 %v3250_v38, %v4609_v31  ;;  %v1362_v45 = vpop.f32.mrb[25].mxu1 }
 0xa46   :  { %v3251_v48 = vpop.f32.mrb[26].mxu1  ;;  %v4632_v40 = vadd.f32 %v1362_v45, %v4621_v41 }
 0xa47   :  { %v4635_v49 = vadd.f32 %v3251_v48, %v4626_v46  ;;  %v1365_v51 = vpop.f32.mrb[27].mxu1  ;;  %v1424_v18 = vsel %vm1393_vm4, %v4629_v25, -inf }
 0xa48   :  { %1425 = vmax.xlane.f32.xlu1 %v1424_v18  ;;  %1410 = vmax.xlane.f32.xlu0 %v1409_v56  ;;  %v4652_v44 = vadd.f32 %v1365_v51, %v4644_v57  ;;  %v1418_v52 = vsel %vm1393_vm4, %v4632_v40, -inf }
 0xa49   :  { %v1427_v53 = vsel %vm1393_vm4, %v4635_v49, -inf }
 0xa4a   :  { %v1421_v13 = vsel %vm1393_vm4, %v4652_v44, -inf }
 0xa4c   :  { %v3254_v54 = vpop.f32.mrb[28].mxu1  ;;  %1419 = vmax.xlane.f32.xlu1 %v1418_v52  ;;  %1428 = vmax.xlane.f32.xlu0 %v1427_v53 }
 0xa4d   :  { %v4669_v50 = vadd.f32 %v3254_v54, %v4649_v59  ;;  %v1378_v43 = vpop.f32.mrb[29].mxu1 }
 0xa4e   :  { %v3255_v20 = vpop.f32.mrb[30].mxu1  ;;  %v4672_v58 = vadd.f32 %v1378_v43, %v4661_v1 }
 0xa4f   :  { %v4675_v27 = vadd.f32 %v3255_v20, %v4666_v34  ;;  %v1381_v7 = vpop.f32.mrb[31].mxu1  ;;  %v1436_v35 = vsel %vm1393_vm4, %v4669_v50, -inf }
 0xa50   :  { %1437 = vmax.xlane.f32.xlu1 %v1436_v35  ;;  %1422 = vmax.xlane.f32.xlu0 %v1421_v13  ;;  %v4687_v15 = vadd.f32 %v1381_v7, %v4684_v10  ;;  %v1430_v17 = vsel %vm1393_vm4, %v4672_v58, -inf }
 0xa51   :  { %v1439_v21 = vsel %vm1393_vm4, %v4675_v27, -inf }
 0xa52   :  { %v1433_v51 = vsel %vm1393_vm4, %v4687_v15, -inf }
 0xa54   :  { %v3290_v23 = vpop.f32.mrb[32].mxu1  ;;  %1431 = vmax.xlane.f32.xlu1 %v1430_v17  ;;  %1440 = vmax.xlane.f32.xlu0 %v1439_v21 }
 0xa55   :  { %v4694_v26 = vadd.f32 %v3290_v23, %v4538_v5  ;;  %v1789_v28 = vpop.f32.mrb[33].mxu1 }
 0xa56   :  { %v3291_v36 = vpop.f32.mrb[34].mxu1  ;;  %v4697_v37 = vadd.f32 %v1789_v28, %v4543_v33 }
 0xa57   :  { %v4700_v38 = vadd.f32 %v3291_v36, %v4561_v9  ;;  %v1792_v45 = vpop.f32.mrb[35].mxu1  ;;  %v1858_v48 = vsel %vm1393_vm4, %v4694_v26, -inf }
 0xa58   :  { %1859 = vmax.xlane.f32.xlu1 %v1858_v48  ;;  %1434 = vmax.xlane.f32.xlu0 %v1433_v51  ;;  %v4707_v5 = vadd.f32 %v1792_v45, %v4551_v60  ;;  %v1852_v18 = vsel %vm1393_vm4, %v4697_v37, -inf }
 0xa59   :  { %v1861_v33 = vsel %vm1393_vm4, %v4700_v38, -inf }
 0xa5a   :  { %v1855_v7 = vsel %vm1393_vm4, %v4707_v5, -inf }
 0xa5c   :  { %v3294_v9 = vpop.f32.mrb[36].mxu1  ;;  %1853 = vmax.xlane.f32.xlu1 %v1852_v18  ;;  %1862 = vmax.xlane.f32.xlu0 %v1861_v33 }
 0xa5d   :  { %v4714_v56 = vadd.f32 %v3294_v9, %v4571_v2  ;;  %v1805_v52 = vpop.f32.mrb[37].mxu1 }
 0xa5e   :  { %v3295_v53 = vpop.f32.mrb[38].mxu1  ;;  %v4717_v54 = vadd.f32 %v1805_v52, %v4581_v3 }
 0xa5f   :  { %v4720_v60 = vadd.f32 %v3295_v53, %v4586_v47  ;;  %v1808_v43 = vpop.f32.mrb[39].mxu1  ;;  %v1870_v20 = vsel %vm1393_vm4, %v4714_v56, -inf }
 0xa60   :  { %1871 = vmax.xlane.f32.xlu1 %v1870_v20  ;;  %1856 = vmax.xlane.f32.xlu0 %v1855_v7  ;;  %v4727_v2 = vadd.f32 %v1808_v43, %v4604_v30  ;;  %v1864_v35 = vsel %vm1393_vm4, %v4717_v54, -inf  ;;  %v4777_v7 = vpop.permute.xlu1 %2042 }
 0xa61   :  { %v1873_v3 = vsel %vm1393_vm4, %v4720_v60, -inf }
 0xa62   :  { %v1867_v45 = vsel %vm1393_vm4, %v4727_v2, -inf }
 0xa64   :  { %v3298_v47 = vpop.f32.mrb[40].mxu1  ;;  %1865 = vmax.xlane.f32.xlu1 %v1864_v35  ;;  %1874 = vmax.xlane.f32.xlu0 %v1873_v3 }
 0xa65   :  { %v4734_v13 = vadd.f32 %v3298_v47, %v4609_v31  ;;  %v1821_v17 = vpop.f32.mrb[41].mxu1 }
 0xa66   :  { %v3299_v21 = vpop.f32.mrb[42].mxu1  ;;  %v4737_v23 = vadd.f32 %v1821_v17, %v4621_v41 }
 0xa67   :  { %v4740_v30 = vadd.f32 %v3299_v21, %v4626_v46  ;;  %v1824_v28 = vpop.f32.mrb[43].mxu1  ;;  %v1882_v36 = vsel %vm1393_vm4, %v4734_v13, -inf }
 0xa68   :  { %1883 = vmax.xlane.f32.xlu1 %v1882_v36  ;;  %1868 = vmax.xlane.f32.xlu0 %v1867_v45  ;;  %v4747_v31 = vadd.f32 %v1824_v28, %v4644_v57  ;;  %v1876_v48 = vsel %vm1393_vm4, %v4737_v23, -inf }
 0xa69   :  { %v1885_v41 = vsel %vm1393_vm4, %v4740_v30, -inf }
 0xa6a   :  { %v1879_v43 = vsel %vm1393_vm4, %v4747_v31, -inf }
 0xa6c   :  { %v3302_v46 = vpop.f32.mrb[44].mxu1  ;;  %1877 = vmax.xlane.f32.xlu1 %v1876_v48  ;;  %1886 = vmax.xlane.f32.xlu0 %v1885_v41 }
 0xa6d   :  { %v4754_v51 = vadd.f32 %v3302_v46, %v4649_v59  ;;  %v1837_v18 = vpop.f32.mrb[45].mxu1 }
 0xa6e   :  { %v3303_v33 = vpop.f32.mrb[46].mxu1  ;;  %v4757_v9 = vadd.f32 %v1837_v18, %v4661_v1 }
 0xa6f   :  { %v4760_v57 = vadd.f32 %v3303_v33, %v4666_v34  ;;  %v1840_v52 = vpop.f32.mrb[47].mxu1  ;;  %v1894_v53 = vsel %vm1393_vm4, %v4754_v51, -inf }
 0xa70   :  { %1895 = vmax.xlane.f32.xlu1 %v1894_v53  ;;  %1880 = vmax.xlane.f32.xlu0 %v1879_v43  ;;  %v4767_v59 = vadd.f32 %v1840_v52, %v4684_v10  ;;  %v1888_v20 = vsel %vm1393_vm4, %v4757_v9, -inf }
 0xa71   :  { %v1897_v1 = vsel %vm1393_vm4, %v4760_v57, -inf }
 0xa72   :  { %v1891_v34 = vsel %vm1393_vm4, %v4767_v59, -inf }
 0xa74   :  { %1889 = vmax.xlane.f32.xlu1 %v1888_v20  ;;  %1898 = vmax.xlane.f32.xlu0 %v1897_v1 }
 0xa78   :  { %1892 = vmax.xlane.f32.xlu0 %v1891_v34 }
 0xa8e   :  { %2044 = vrot.lane.b32.xlu0 %v4483_v11, %s3854_s2 }
 0xac5   :  { %v1402_v35 = vpop.xlane.xlu0 %1401 }
 0xac6   :  { %v1444_v10 = vsub.f32 %v4546_v55, %v1402_v35 }
 0xac8   :  { %v1462_v3 = vmul.f32 1.442695, %v1444_v10  ;;  %v1399_v47 = vpop.xlane.xlu1 %1398 }
 0xac9   :  { %v1396_v17 = vpop.xlane.xlu0 %1395  ;;  %v1443_v36 = vsub.f32 %v4564_v12, %v1399_v47 }
 0xaca   :  { %3707 = vpow2.f32 %v1462_v3  ;;  %v1442_v21 = vsub.f32 %v4554_v0, %v1396_v17 }
 0xacb   :  { %v1460_v33 = vmul.f32 1.442695, %v1443_v36 }
 0xacc   :  { %v1458_v28 = vmul.f32 1.442695, %v1442_v21 }
 0xacd   :  { %v1414_v45 = vpop.xlane.xlu1 %1413  ;;  %v1405_v48 = vpop.xlane.xlu0 %1404 }
 0xace   :  { %3709 = vpow2.f32 %v1458_v28  ;;  %v1448_v41 = vsub.f32 %v4589_v19, %v1414_v45  ;;  %v1445_v11 = vsub.f32 %v4574_v14, %v1405_v48 }
 0xad0   :  { %v1470_v46 = vmul.f32 1.442695, %v1448_v41  ;;  %v1464_v18 = vmul.f32 1.442695, %v1445_v11 }
 0xad1   :  { %v1408_v55 = vpop.xlane.xlu1 %1407  ;;  %v1417_v52 = vpop.xlane.xlu0 %1416 }
 0xad2   :  { %3711 = vpow2.f32 %v1470_v46  ;;  %v1446_v53 = vsub.f32 %v4592_v22, %v1408_v55  ;;  %v1449_v0 = vsub.f32 %v4595_v6, %v1417_v52 }
 0xad3   :  { %3713 = vpow2.f32 %v1464_v18 }
 0xad4   :  { %v4786_v43 = vpop.eup %3707  ;;  %v1466_v12 = vmul.f32 1.442695, %v1446_v53  ;;  %3715 = vpow2.f32 %v1460_v33  ;;  %v1472_v20 = vmul.f32 1.442695, %v1449_v0 }
 0xad5   :  { %v4788_v1 = vpop.xlane.xlu1 %1425  ;;  %v1411_v19 = vpop.xlane.xlu0 %1410  ;;  %v1496_v14 = vsel %vm1393_vm4, %v4786_v43, 0.0 }
 0xad6   :  { %3717 = vpow2.f32 %v1466_v12  ;;  %v1447_v34 = vsub.f32 %v4612_v32, %v1411_v19  ;;  %1497 = vadd.xlane.f32.xlu1 %v1496_v14 }
 0xad7   :  { %3719 = vpow2.f32 %v1472_v20 }
 0xad8   :  { %v4793_v35 = vpop.eup %3709  ;;  %v1468_v22 = vmul.f32 1.442695, %v1447_v34 }
 0xad9   :  { %v4795_v6 = vpop.xlane.xlu1 %1419  ;;  %v1429_v10 = vpop.xlane.xlu0 %1428  ;;  %v1490_v3 = vsel %vm1393_vm4, %v4793_v35, 0.0 }
 0xada   :  { %v1453_v47 = vsub.f32 %v4635_v49, %v1429_v10  ;;  %1491 = vadd.xlane.f32.xlu1 %v1490_v3  ;;  %3721 = vpow2.f32 %v1468_v22 }
 0xadc   :  { %v4800_v17 = vpop.eup %3711  ;;  %v1480_v32 = vmul.f32 1.442695, %v1453_v47 }
 0xadd   :  { %v4802_v21 = vpop.eup %3713  ;;  %v4804_v28 = vpop.xlane.xlu1 %1437  ;;  %v1508_v45 = vsel %vm1393_vm4, %v4800_v17, 0.0 }
 0xade   :  { %v1423_v36 = vpop.xlane.xlu0 %1422  ;;  %1509 = vadd.xlane.f32.xlu1 %v1508_v45  ;;  %v1499_v41 = vsel %vm1393_vm4, %v4802_v21, 0.0  ;;  %v4811_v49 = vpop.eup %3715  ;;  %3723 = vpow2.f32 %v1480_v32 }
 0xadf   :  { %v1451_v48 = vsub.f32 %v4652_v44, %v1423_v36  ;;  %1500 = vadd.xlane.f32.xlu0 %v1499_v41  ;;  %v1493_v44 = vsel %vm1393_vm4, %v4811_v49, 0.0 }
 0xae0   :  { %v4813_v11 = vpop.eup %3717 }
 0xae1   :  { %v1476_v46 = vmul.f32 1.442695, %v1451_v48  ;;  %v4815_v18 = vpop.xlane.xlu1 %1431  ;;  %v1502_v55 = vsel %vm1393_vm4, %v4813_v11, 0.0  ;;  %v4822_v53 = vpop.eup %3719 }
 0xae2   :  { %v1441_v33 = vpop.xlane.xlu0 %1440  ;;  %1503 = vadd.xlane.f32.xlu1 %v1502_v55  ;;  %v1511_v14 = vsel %vm1393_vm4, %v4822_v53, 0.0 }
 0xae3   :  { %v1457_v52 = vsub.f32 %v4675_v27, %v1441_v33  ;;  %1494 = vadd.xlane.f32.xlu0 %v1493_v44  ;;  %3725 = vpow2.f32 %v1476_v46 }
 0xae4   :  { %v4829_v34 = vpop.eup %3721 }
 0xae5   :  { %v1488_v0 = vmul.f32 1.442695, %v1457_v52  ;;  %v4824_v12 = vpop.xlane.xlu1 %1859  ;;  %v1505_v47 = vsel %vm1393_vm4, %v4829_v34, 0.0 }
 0xae6   :  { %v1435_v20 = vpop.xlane.xlu0 %1434 }
 0xae7   :  { %v1455_v19 = vsub.f32 %v4687_v15, %v1435_v20  ;;  %1512 = vadd.xlane.f32.xlu0 %v1511_v14  ;;  %3727 = vpow2.f32 %v1488_v0 }
 0xae8   :  { %v4836_v32 = vpop.eup %3723 }
 0xae9   :  { %v1484_v27 = vmul.f32 1.442695, %v1455_v19  ;;  %v4831_v22 = vpop.xlane.xlu1 %1853  ;;  %v1523_v41 = vsel %vm1393_vm4, %v4836_v32, 0.0 }
 0xaea   :  { %v1863_v10 = vpop.xlane.xlu0 %1862 }
 0xaeb   :  { %v1903_v3 = vsub.f32 %v4700_v38, %v1863_v10  ;;  %1506 = vadd.xlane.f32.xlu0 %v1505_v47  ;;  %3729 = vpow2.f32 %v1484_v27 }
 0xaed   :  { %v1922_v15 = vmul.f32 1.442695, %v1903_v3  ;;  %v4838_v36 = vpop.xlane.xlu1 %1871  ;;  %v4843_v46 = vpop.eup %3725 }
 0xaee   :  { %v1857_v45 = vpop.xlane.xlu0 %1856  ;;  %v1517_v44 = vsel %vm1393_vm4, %v4843_v46, 0.0 }
 0xaef   :  { %v1901_v48 = vsub.f32 %v4707_v5, %v1857_v45  ;;  %1524 = vadd.xlane.f32.xlu0 %v1523_v41  ;;  %3731 = vpow2.f32 %v1922_v15 }
 0xaf1   :  { %v1918_v38 = vmul.f32 1.442695, %v1901_v48  ;;  %v4845_v33 = vpop.xlane.xlu1 %1865  ;;  %v4850_v0 = vpop.eup %3727 }
 0xaf2   :  { %v1875_v55 = vpop.xlane.xlu0 %1874  ;;  %v1535_v27 = vsel %vm1393_vm4, %v4850_v0, 0.0 }
 0xaf3   :  { %v1907_v52 = vsub.f32 %v4720_v60, %v1875_v55  ;;  %1518 = vadd.xlane.f32.xlu0 %v1517_v44  ;;  %2046 = vrot.lane.b32.xlu1 %v4490_v62, %s3854_s2  ;;  %3733 = vpow2.f32 %v1918_v38 }
 0xaf5   :  { %v1930_v5 = vmul.f32 1.442695, %v1907_v52  ;;  %v1884_v20 = vpop.xlane.xlu1 %1883  ;;  %v4857_v10 = vpop.eup %3729 }
 0xaf6   :  { %v1869_v19 = vpop.xlane.xlu0 %1868  ;;  %v1910_v60 = vsub.f32 %v4734_v13, %v1884_v20  ;;  %v1529_v62 = vsel %vm1393_vm4, %v4857_v10, 0.0  ;;  %v1452_v13 = vsub.f32 %v4629_v25, %v4788_v1 }
 0xaf7   :  { %v1905_v14 = vsub.f32 %v4727_v2, %v1869_v19  ;;  %1536 = vadd.xlane.f32.xlu0 %v1535_v27  ;;  %3735 = vpow2.f32 %v1930_v5 }
 0xaf8   :  { %v1936_v48 = vmul.f32 1.442695, %v1910_v60  ;;  %v1478_v19 = vmul.f32 1.442695, %v1452_v13 }
 0xaf9   :  { %v1926_v3 = vmul.f32 1.442695, %v1905_v14  ;;  %v1878_v15 = vpop.xlane.xlu1 %1877  ;;  %v4862_v45 = vpop.eup %3731  ;;  %v1450_v14 = vsub.f32 %v4632_v40, %v4795_v6 }
 0xafa   :  { %v1887_v47 = vpop.xlane.xlu0 %1886  ;;  %v1908_v2 = vsub.f32 %v4737_v23, %v1878_v15  ;;  %v1957_v38 = vsel %vm1393_vm4, %v4862_v45, 0.0 }
 0xafb   :  { %1530 = vadd.xlane.f32.xlu0 %v1529_v62  ;;  %3737 = vpow2.f32 %v1926_v3  ;;  %v1911_v44 = vsub.f32 %v4740_v30, %v1887_v47  ;;  %v1474_v3 = vmul.f32 1.442695, %v1450_v14  ;;  %v1456_v47 = vsub.f32 %v4669_v50, %v4804_v28 }
 0xafc   :  { %3739 = vpow2.f32 %v1936_v48  ;;  %v1932_v52 = vmul.f32 1.442695, %v1908_v2  ;;  %v1454_v48 = vsub.f32 %v4672_v58, %v4815_v18  ;;  %v1906_v14 = vsub.f32 %v4714_v56, %v4838_v36 }
 0xafd   :  { %v4867_v55 = vpop.eup %3733  ;;  %v1938_v27 = vmul.f32 1.442695, %v1911_v44  ;;  %v1486_v62 = vmul.f32 1.442695, %v1456_v47 }
 0xafe   :  { %v1881_v41 = vpop.xlane.xlu0 %1880  ;;  %v1951_v20 = vsel %vm1393_vm4, %v4867_v55, 0.0  ;;  %3741 = vpow2.f32 %v1932_v52  ;;  %v1900_v52 = vsub.f32 %v4697_v37, %v4831_v22 }
 0xaff   :  { %1958 = vadd.xlane.f32.xlu0 %v1957_v38  ;;  %v1909_v25 = vsub.f32 %v4747_v31, %v1881_v41  ;;  %3743 = vpow2.f32 %v1478_v19  ;;  %v1902_v41 = vsub.f32 %v4694_v26, %v4824_v12 }
 0xb00   :  { %3745 = vpow2.f32 %v1938_v27  ;;  %v1916_v19 = vmul.f32 1.442695, %v1900_v52 }
 0xb01   :  { %v4876_v23 = vpop.eup %3735  ;;  %v1934_v15 = vmul.f32 1.442695, %v1909_v25  ;;  %3747 = vpow2.f32 %v1474_v3  ;;  %v1920_v18 = vmul.f32 1.442695, %v1902_v41  ;;  %v1904_v3 = vsub.f32 %v4717_v54, %v4845_v33 }
 0xb02   :  { %v4872_v5 = vpop.xlane.xlu0 %1898  ;;  %v1969_v30 = vsel %vm1393_vm4, %v4876_v23, 0.0 }
 0xb03   :  { %1952 = vadd.xlane.f32.xlu0 %v1951_v20  ;;  %3749 = vpow2.f32 %v1934_v15  ;;  %v1924_v15 = vmul.f32 1.442695, %v1904_v3 }
 0xb04   :  { %3751 = vpow2.f32 %v1486_v62 }
 0xb05   :  { %v4883_v60 = vpop.eup %3737 }
 0xb06   :  { %v1893_v1 = vpop.xlane.xlu0 %1892  ;;  %v1963_v6 = vsel %vm1393_vm4, %v4883_v60, 0.0  ;;  %v4890_v31 = vpop.eup %3739 }
 0xb07   :  { %1970 = vadd.xlane.f32.xlu0 %v1969_v30  ;;  %v1913_v40 = vsub.f32 %v4767_v59, %v1893_v1  ;;  %v1978_v50 = vsel %vm1393_vm4, %v4890_v31, 0.0  ;;  %v1482_v59 = vmul.f32 1.442695, %v1454_v48  ;;  %v1896_v1 = vpop.xlane.xlu1 %1895  ;;  %v1928_v30 = vmul.f32 1.442695, %v1906_v14 }
 0xb08   :  { %v4896_v28 = vpop.eup %3741 }
 0xb09   :  { %v1942_v2 = vmul.f32 1.442695, %v1913_v40  ;;  %v4900_v38 = vpop.eup %3743  ;;  %v1972_v13 = vsel %vm1393_vm4, %v4896_v28, 0.0  ;;  %v1914_v40 = vsub.f32 %v4754_v51, %v1896_v1  ;;  %v1915_v51 = vsub.f32 %v4760_v57, %v4872_v5 }
 0xb0a   :  { %v4904_v58 = vpop.eup %3745  ;;  %v1520_v26 = vsel %vm1393_vm4, %v4900_v38, 0.0 }
 0xb0b   :  { %1964 = vadd.xlane.f32.xlu0 %v1963_v6  ;;  %3753 = vpow2.f32 %v1942_v2  ;;  %v4908_v44 = vpop.eup %3747  ;;  %v1981_v20 = vsel %vm1393_vm4, %v4904_v58, 0.0  ;;  %v1890_v6 = vpop.xlane.xlu1 %1889  ;;  %v1944_v54 = vmul.f32 1.442695, %v1914_v40 }
 0xb0c   :  { %3755 = vpow2.f32 %v1482_v59  ;;  %v1514_v22 = vsel %vm1393_vm4, %v4908_v44, 0.0  ;;  %v1912_v33 = vsub.f32 %v4757_v9, %v1890_v6 }
 0xb0d   :  { %v4914_v12 = vpop.eup %3749  ;;  %3757 = vpow2.f32 %v1920_v18  ;;  %v1946_v18 = vmul.f32 1.442695, %v1915_v51 }
 0xb0e   :  { %v4918_v27 = vpop.eup %3751  ;;  %v1975_v37 = vsel %vm1393_vm4, %v4914_v12, 0.0  ;;  %3759 = vpow2.f32 %v1916_v19  ;;  %v1940_v59 = vmul.f32 1.442695, %v1912_v33 }
 0xb0f   :  { %1979 = vadd.xlane.f32.xlu0 %v1978_v50  ;;  %v1532_v36 = vsel %vm1393_vm4, %v4918_v27, 0.0  ;;  %3761 = vpow2.f32 %v1928_v30 }
 0xb10   :  { %3763 = vpow2.f32 %v1924_v15 }
 0xb11   :  { %3765 = vpow2.f32 %v1944_v54 }
 0xb12   :  { %3767 = vpow2.f32 %v1940_v59 }
 0xb13   :  { %1973 = vadd.xlane.f32.xlu0 %v1972_v13  ;;  %3769 = vpow2.f32 %v1946_v18 }
 0xb15   :  { %v4924_v25 = vpop.eup %3753 }
 0xb16   :  { %v1987_v56 = vsel %vm1393_vm4, %v4924_v25, 0.0  ;;  %v4932_v47 = vpop.eup %3755 }
 0xb17   :  { %1982 = vadd.xlane.f32.xlu0 %v1981_v20  ;;  %1521 = vadd.xlane.f32.xlu1 %v1520_v26  ;;  %v1526_v62 = vsel %vm1393_vm4, %v4932_v47, 0.0  ;;  %v4937_v48 = vpop.eup %3757 }
 0xb18   :  { %v1954_v2 = vsel %vm1393_vm4, %v4937_v48, 0.0  ;;  %v4942_v50 = vpop.eup %3759 }
 0xb19   :  { %v1948_v41 = vsel %vm1393_vm4, %v4942_v50, 0.0  ;;  %v4948_v13 = vpop.eup %3761 }
 0xb1a   :  { %v1966_v9 = vsel %vm1393_vm4, %v4948_v13, 0.0  ;;  %v4952_v52 = vpop.eup %3763 }
 0xb1b   :  { %1976 = vadd.xlane.f32.xlu0 %v1975_v37  ;;  %1515 = vadd.xlane.f32.xlu1 %v1514_v22  ;;  %v1960_v20 = vsel %vm1393_vm4, %v4952_v52, 0.0  ;;  %v4956_v26 = vpop.eup %3765  ;;  %v2045_v22 = vpop.permute.xlu0 %2044 }
 0xb1c   :  { %v1990_v57 = vsel %vm1393_vm4, %v4956_v26, 0.0  ;;  %v4962_v5 = vpop.eup %3767 }
 0xb1d   :  { %v1984_v19 = vsel %vm1393_vm4, %v4962_v5, 0.0  ;;  %v4966_v14 = vpop.eup %3769 }
 0xb1e   :  { %v1993_v37 = vsel %vm1393_vm4, %v4966_v14, 0.0 }
 0xb1f   :  { %1988 = vadd.xlane.f32.xlu0 %v1987_v56  ;;  %1533 = vadd.xlane.f32.xlu1 %v1532_v36 }
 0xb23   :  { %1527 = vadd.xlane.f32.xlu1 %v1526_v62 }
 0xb27   :  { %1955 = vadd.xlane.f32.xlu1 %v1954_v2 }
 0xb2b   :  { %1949 = vadd.xlane.f32.xlu1 %v1948_v41 }
 0xb2f   :  { %1967 = vadd.xlane.f32.xlu1 %v1966_v9 }
 0xb33   :  { %1961 = vadd.xlane.f32.xlu1 %v1960_v20 }
 0xb35   :  { %2177 = vrot.lane.b32.xlu0 %v4387_v39, %s3854_s2 }
 0xb37   :  { %1991 = vadd.xlane.f32.xlu1 %v1990_v57 }
 0xb3b   :  { %1985 = vadd.xlane.f32.xlu1 %v1984_v19 }
 0xb3f   :  { %1994 = vadd.xlane.f32.xlu1 %v1993_v37 }
 0xb50   :  { %2179 = vrot.lane.b32.xlu1 %v4453_v63, %s3854_s2 }
 0xb54   :  { %2181 = vrot.lane.b32.xlu1 %v4457_v8, %s3854_s2 }
 0xb58   :  { %2183 = vrot.lane.b32.xlu1 %v4463_v16, %s3854_s2 }
 0xb63   :  { %v1498_v39 = vpop.xlane.xlu1 %1497 }
 0xb67   :  { %v1492_v1 = vpop.xlane.xlu1 %1491 }
 0xb6b   :  { %v1510_v3 = vpop.xlane.xlu1 %1509 }
 0xb6c   :  { %v1501_v30 = vpop.xlane.xlu0 %1500 }
 0xb6d   :  { %3771 = vrcp.f32 %v1501_v30 }
 0xb6e   :  { %3773 = vrcp.f32 %v1492_v1 }
 0xb6f   :  { %3775 = vrcp.f32 %v1498_v39  ;;  %v1504_v36 = vpop.xlane.xlu1 %1503 }
 0xb70   :  { %v1495_v56 = vpop.xlane.xlu0 %1494 }
 0xb71   :  { %3777 = vrcp.f32 %v1495_v56 }
 0xb72   :  { %3779 = vrcp.f32 %v1504_v36 }
 0xb73   :  { %v2047_v1 = vpop.permute.xlu1 %2046 }
 0xb74   :  { %v1513_v15 = vpop.xlane.xlu0 %1512 }
 0xb77   :  { %v3772_v63 = vpop.eup %3771 }
 0xb78   :  { %v1507_v40 = vpop.xlane.xlu0 %1506  ;;  %v3774_v6 = vpop.eup %3773  ;;  %v1557_v62 = vmul.f32 %v3772_v63, %v4802_v21 }
 0xb79   :  { %3781 = vrcp.f32 %v1507_v40  ;;  %v3776_v8 = vpop.eup %3775  ;;  %v1554_v33 = vmul.f32 %v3774_v6, %v4793_v35 }
 0xb7a   :  { %3783 = vrcp.f32 %v1513_v15  ;;  %v1556_v59 = vmul.f32 %v3776_v8, %v4786_v43 }
 0xb7b   :  { %v3778_v16 = vpop.eup %3777  ;;  %3785 = vrcp.f32 %v1510_v3 }
 0xb7c   :  { %v1525_v54 = vpop.xlane.xlu0 %1524  ;;  %v1555_v2 = vmul.f32 %v3778_v16, %v4811_v49  ;;  %v4982_v41 = vpack.c.bf16 %v1557_v62, %v1556_v59  ;;  %v3780_v9 = vpop.eup %3779 }
 0xb7d   :  { %v1558_v43 = vmul.f32 %v3780_v9, %v4813_v11 }
 0xb7e   :  { %v4980_v51 = vpack.c.bf16 %v1555_v2, %v1554_v33 }
 0xb80   :  { %3264 = vmatprep.mubr.msk.bf16.mxu0 %vm1393_vm4, %v4980_v51  ;;  %v1519_v18 = vpop.xlane.xlu0 %1518 }
 0xb81   :  { %3265 = vmatmul.mubr.msk.bf16.vlgmr.msra.gmra.mrb[32].mxu0 %vm1393_vm4, %v4982_v41 }
 0xb82   :  { %3305 = vmatpush3.bf16.msra.mxu0 %v4474_v29 }
 0xb83   :  { %v3782_v21 = vpop.eup %3781  ;;  %3306 = vmatprep.subr.bf16.mxu0 %v4777_v7 }
 0xb84   :  { %v3784_v35 = vpop.eup %3783  ;;  %v1537_v49 = vpop.xlane.xlu0 %1536  ;;  %v1559_v20 = vmul.f32 %v3782_v21, %v4829_v34 }
 0xb85   :  { %v3786_v57 = vpop.eup %3785  ;;  %v1561_v37 = vmul.f32 %v3784_v35, %v4822_v53 }
 0xb86   :  { %3307 = vmatpush3.bf16.msra.mxu0 %v4777_v7  ;;  %v4993_v19 = vpack.c.bf16 %v1559_v20, %v1558_v43  ;;  %v1560_v39 = vmul.f32 %v3786_v57, %v4800_v17 }
 0xb87   :  { %3308 = vmatprep.subr.bf16.mxu0 %v2045_v22 }
 0xb88   :  { %3268 = vmatprep.mubr.msk.bf16.mxu0 %vm1393_vm4, %v4993_v19  ;;  %v1531_v29 = vpop.xlane.xlu0 %1530  ;;  %v4999_v11 = vpack.c.bf16 %v1561_v37, %v1560_v39 }
 0xb8a   :  { %3309 = vmatpush3.bf16.msra.mxu0 %v2045_v22 }
 0xb8b   :  { %3310 = vmatprep.subr.bf16.mxu0 %v2047_v1 }
 0xb8c   :  { %v1959_v34 = vpop.xlane.xlu0 %1958 }
 0xb8d   :  { %3269 = vmatmul.mubr.msk.bf16.gmra.mrb[32].mxu0 %vm1393_vm4, %v4999_v11 }
 0xb8e   :  { %3311 = vmatpush3.bf16.msra.mxu0 %v2047_v1 }
 0xb90   :  { %v1953_v7 = vpop.xlane.xlu0 %1952 }
 0xb94   :  { %v1971_v30 = vpop.xlane.xlu0 %1970 }
 0xb98   :  { %v1965_v3 = vpop.xlane.xlu0 %1964 }
 0xb9c   :  { %v5003_v53 = vpop.xlane.xlu0 %1979 }
 0xba0   :  { %v5005_v56 = vpop.xlane.xlu0 %1973 }
 0xba4   :  { %v5007_v36 = vpop.xlane.xlu0 %1982  ;;  %v1522_v17 = vpop.xlane.xlu1 %1521 }
 0xba5   :  { %3787 = vrcp.f32 %v1522_v17 }
 0xba6   :  { %3789 = vrcp.f32 %v1519_v18 }
 0xba7   :  { %3791 = vrcp.f32 %v1525_v54 }
 0xba8   :  { %v1977_v22 = vpop.xlane.xlu0 %1976  ;;  %v1516_v15 = vpop.xlane.xlu1 %1515 }
 0xba9   :  { %3793 = vrcp.f32 %v1516_v15 }
 0xbaa   :  { %3795 = vrcp.f32 %v1531_v29 }
 0xbac   :  { %v5009_v63 = vpop.xlane.xlu0 %1988  ;;  %v1534_v40 = vpop.xlane.xlu1 %1533 }
 0xbaf   :  { %v3788_v16 = vpop.eup %3787 }
 0xbb0   :  { %v5011_v6 = vpop.permute.xlu0 %2177  ;;  %v1528_v8 = vpop.xlane.xlu1 %1527  ;;  %v1564_v18 = vmul.f32 %v3788_v16, %v4900_v38 }
 0xbb1   :  { %3797 = vrcp.f32 %v1528_v8  ;;  %3328 = vmatprep.subr.bf16.mxu0 %v5011_v6  ;;  %v3790_v62 = vpop.eup %3789 }
 0xbb2   :  { %v3792_v33 = vpop.eup %3791  ;;  %3799 = vrcp.f32 %v1534_v40  ;;  %v1563_v9 = vmul.f32 %v3790_v62, %v4843_v46 }
 0xbb3   :  { %v3794_v2 = vpop.eup %3793  ;;  %3801 = vrcp.f32 %v1537_v49  ;;  %v1565_v21 = vmul.f32 %v3792_v33, %v4836_v32 }
 0xbb4   :  { %v1956_v59 = vpop.xlane.xlu1 %1955  ;;  %v1562_v54 = vmul.f32 %v3794_v2, %v4908_v44  ;;  %v3796_v57 = vpop.eup %3795 }
 0xbb5   :  { %3803 = vrcp.f32 %v1956_v59  ;;  %v5020_v20 = vpack.c.bf16 %v1565_v21, %v1564_v18  ;;  %v1567_v32 = vmul.f32 %v3796_v57, %v4857_v10 }
 0xbb6   :  { %3805 = vrcp.f32 %v1953_v7  ;;  %v5018_v35 = vpack.c.bf16 %v1563_v9, %v1562_v54 }
 0xbb7   :  { %3807 = vrcp.f32 %v1959_v34 }
 0xbb8   :  { %v1950_v43 = vpop.xlane.xlu1 %1949  ;;  %3272 = vmatprep.mubr.msk.bf16.mxu0 %vm1393_vm4, %v5018_v35 }
 0xbb9   :  { %3809 = vrcp.f32 %v1950_v43  ;;  %3273 = vmatmul.mubr.msk.bf16.gmra.mrb[32].mxu0 %vm1393_vm4, %v5020_v20 }
 0xbba   :  { %3811 = vrcp.f32 %v1965_v3 }
 0xbbb   :  { %v3798_v38 = vpop.eup %3797 }
 0xbbc   :  { %v1968_v46 = vpop.xlane.xlu1 %1967  ;;  %v1566_v44 = vmul.f32 %v3798_v38, %v4932_v47  ;;  %v3800_v49 = vpop.eup %3799 }
 0xbbd   :  { %v3802_v29 = vpop.eup %3801  ;;  %v1568_v34 = vmul.f32 %v3800_v49, %v4918_v27 }
 0xbbe   :  { %v5028_v37 = vpack.c.bf16 %v1567_v32, %v1566_v44  ;;  %v1569_v47 = vmul.f32 %v3802_v29, %v4850_v0 }
 0xbbf   :  { %v3804_v39 = vpop.eup %3803 }
 0xbc0   :  { %v1962_v1 = vpop.xlane.xlu1 %1961  ;;  %3276 = vmatprep.mubr.msk.bf16.mxu0 %vm1393_vm4, %v5028_v37  ;;  %v3806_v7 = vpop.eup %3805  ;;  %v2014_v10 = vmul.f32 %v3804_v39, %v4937_v48  ;;  %v5035_v3 = vpack.c.bf16 %v1569_v47, %v1568_v34 }
 0xbc1   :  { %3813 = vrcp.f32 %v1962_v1  ;;  %v3808_v17 = vpop.eup %3807  ;;  %v2013_v16 = vmul.f32 %v3806_v7, %v4867_v55 }
 0xbc2   :  { %3815 = vrcp.f32 %v1968_v46  ;;  %v2015_v27 = vmul.f32 %v3808_v17, %v4862_v45 }
 0xbc3   :  { %v3810_v15 = vpop.eup %3809  ;;  %3817 = vrcp.f32 %v1977_v22 }
 0xbc4   :  { %3819 = vrcp.f32 %v1971_v30  ;;  %v1992_v40 = vpop.xlane.xlu1 %1991  ;;  %v2012_v8 = vmul.f32 %v3810_v15, %v4942_v50  ;;  %v2029_v62 = vpack.c.bf16 %v2015_v27, %v2014_v10  ;;  %v3812_v48 = vpop.eup %3811  ;;  %v3628_v10 = vld [vmem:[%s5226_s14 + $0x8] sm:$0xff]  }
 0xbc5   :  { %3821 = vrcp.f32 %v5005_v56  ;;  %3277 = vmatmul.mubr.msk.bf16.gmra.mrb[32].mxu0 %vm1393_vm4, %v5035_v3  ;;  %v2017_v56 = vmul.f32 %v3812_v48, %v4883_v60 }
 0xbc6   :  { %v2028_v0 = vpack.c.bf16 %v2013_v16, %v2012_v8  ;;  %3823 = vrcp.f32 %v5007_v36 }
 0xbc8   :  { %v1986_v22 = vpop.xlane.xlu1 %1985  ;;  %3312 = vmatprep.mubr.msk.bf16.mxu0 %vm1393_vm4, %v2028_v0  ;;  %3360 = vmatprep.mubr.msk.bf16.mxu1 %vm1393_vm4, %v2028_v0 }
 0xbc9   :  { %3361 = vmatmul.mubr.msk.bf16.vlgmr.msra.gmra.mrb[48].mxu1 %vm1393_vm4, %v2029_v62  ;;  %3825 = vrcp.f32 %v1986_v22 }
 0xbca   :  { %3827 = vrcp.f32 %v5003_v53 }
 0xbcb   :  { %v3814_v50 = vpop.eup %3813  ;;  %3829 = vrcp.f32 %v5009_v63 }
 0xbcc   :  { %v3816_v55 = vpop.eup %3815  ;;  %v1995_v45 = vpop.xlane.xlu1 %1994  ;;  %v2016_v30 = vmul.f32 %v3814_v50, %v4952_v52 }
 0xbcd   :  { %v3818_v33 = vpop.eup %3817  ;;  %3313 = vmatmul.mubr.msk.bf16.vlgmr.msra.gmra.mrb[36].mxu0 %vm1393_vm4, %v2029_v62  ;;  %v2018_v36 = vmul.f32 %v3816_v55, %v4948_v13  ;;  %3831 = vrcp.f32 %v1995_v45 }
 0xbce   :  { %v3820_v2 = vpop.eup %3819  ;;  %v2030_v59 = vpack.c.bf16 %v2017_v56, %v2016_v30  ;;  %3329 = vmatpush3.bf16.msra.mxu0 %v5011_v6  ;;  %v2021_v60 = vmul.f32 %v3818_v33, %v4914_v12  ;;  %3833 = vrcp.f32 %v1992_v40 }
 0xbcf   :  { %v3822_v18 = vpop.eup %3821  ;;  %v2019_v52 = vmul.f32 %v3820_v2, %v4876_v23 }
 0xbd0   :  { %v2180_v54 = vpop.permute.xlu1 %2179  ;;  %3316 = vmatprep.mubr.msk.bf16.mxu0 %vm1393_vm4, %v2030_v59  ;;  %3364 = vmatprep.mubr.msk.bf16.mxu1 %vm1393_vm4, %v2030_v59  ;;  %v2020_v53 = vmul.f32 %v3822_v18, %v4896_v28  ;;  %v3824_v6 = vpop.eup %3823 }
 0xbd1   :  { %3330 = vmatprep.subr.bf16.mxu0 %v2180_v54  ;;  %v2031_v63 = vpack.c.bf16 %v2019_v52, %v2018_v36  ;;  %v2023_v43 = vmul.f32 %v3824_v6, %v4904_v58 }
 0xbd2   :  { %3331 = vmatpush3.bf16.msra.mxu0 %v2180_v54  ;;  %v2032_v21 = vpack.c.bf16 %v2021_v60, %v2020_v53 }
 0xbd3   :  { %v3826_v13 = vpop.eup %3825 }
 0xbd4   :  { %v2182_v9 = vpop.permute.xlu1 %2181  ;;  %v3828_v12 = vpop.eup %3827  ;;  %v2024_v57 = vmul.f32 %v3826_v13, %v4962_v5 }
 0xbd5   :  { %3332 = vmatprep.subr.bf16.mxu0 %v2182_v9  ;;  %3365 = vmatmul.mubr.msk.bf16.gmra.mrb[48].mxu1 %vm1393_vm4, %v2031_v63  ;;  %v3830_v23 = vpop.eup %3829  ;;  %v2022_v38 = vmul.f32 %v3828_v12, %v4890_v31 }
 0xbd6   :  { %3317 = vmatmul.mubr.msk.bf16.gmra.mrb[40].mxu0 %vm1393_vm4, %v2031_v63  ;;  %3368 = vmatprep.mubr.msk.bf16.mxu1 %vm1393_vm4, %v2032_v21  ;;  %v2025_v46 = vmul.f32 %v3830_v23, %v4924_v25  ;;  %v3627_v25 = vld [vmem:[%s5226_s14] sm:$0xff]  }
 0xbd7   :  { %3320 = vmatprep.mubr.msk.bf16.mxu0 %vm1393_vm4, %v2032_v21  ;;  %3333 = vmatpush3.bf16.msra.mxu0 %v2182_v9  ;;  %v2033_v44 = vpack.c.bf16 %v2023_v43, %v2022_v38  ;;  %v3832_v32 = vpop.eup %3831 }
 0xbd8   :  { %v2184_v28 = vpop.permute.xlu1 %2183  ;;  %v2034_v49 = vpack.c.bf16 %v2025_v46, %v2024_v57  ;;  %v3834_v29 = vpop.eup %3833  ;;  %v2027_v39 = vmul.f32 %v3832_v32, %v4966_v14  ;;  %3376 = vmatprep.subr.bf16.mxu1 %v3627_v25 }
 0xbd9   :  { %3334 = vmatprep.subr.bf16.mxu0 %v2184_v28  ;;  %v2026_v58 = vmul.f32 %v3834_v29, %v4956_v26  ;;  %3377 = vmatpush3.bf16.msra.mxu1 %v3627_v25 }
 0xbda   :  { %3378 = vmatprep.subr.bf16.mxu1 %v3628_v10 }
 0xbdb   :  { %3335 = vmatpush3.bf16.msra.mxu0 %v2184_v28  ;;  %v2035_v31 = vpack.c.bf16 %v2027_v39, %v2026_v58 }
 0xbdd   :  { %3379 = vmatpush3.bf16.msra.mxu1 %v3628_v10 }
 0xbde   :  { %3321 = vmatmul.mubr.msk.bf16.gmra.mrb[44].mxu0 %vm1393_vm4, %v2033_v44 }
 0xbdf   :  { %3324 = vmatprep.mubr.msk.bf16.mxu0 %vm1393_vm4, %v2034_v49 }
 0xbe1   :  { %3369 = vmatmul.mubr.msk.bf16.gmra.mrb[48].mxu1 %vm1393_vm4, %v2033_v44 }
 0xbe2   :  { %3372 = vmatprep.mubr.msk.bf16.mxu1 %vm1393_vm4, %v2034_v49 }
 0xbe6   :  { %3325 = vmatmul.mubr.msk.bf16.gmra.mrb[48].mxu0 %vm1393_vm4, %v2035_v31 }
 0xbe7   :  { %3336 = vmatprep.mubr.msk.bf16.mxu0 %vm1393_vm4, %v4980_v51 }
 0xbed   :  { %3373 = vmatmul.mubr.msk.bf16.gmra.mrb[48].mxu1 %vm1393_vm4, %v2035_v31 }
 0xbee   :  { %3337 = vmatmul.mubr.msk.bf16.vlgmr.msra.gmra.mrb[36].mxu0 %vm1393_vm4, %v4982_v41 }
 0xbef   :  { %3340 = vmatprep.mubr.msk.bf16.mxu0 %vm1393_vm4, %v4993_v19 }
 0xbf6   :  { %3341 = vmatmul.mubr.msk.bf16.gmra.mrb[40].mxu0 %vm1393_vm4, %v4999_v11 }
 0xbf7   :  { %3344 = vmatprep.mubr.msk.bf16.mxu0 %vm1393_vm4, %v5018_v35 }
 0xbfe   :  { %3345 = vmatmul.mubr.msk.bf16.gmra.mrb[44].mxu0 %vm1393_vm4, %v5020_v20 }
 0xbff   :  { %3348 = vmatprep.mubr.msk.bf16.mxu0 %vm1393_vm4, %v5028_v37 }
 0xc06   :  { %3349 = vmatmul.mubr.msk.bf16.gmra.mrb[48].mxu0 %vm1393_vm4, %v5035_v3 }
 0xc98   :  { %v3278_v26 = vpop.f32.mrb[32].mxu0 }
 0xc99   :  { %v1698_v5 = vpop.f32.mrb[33].mxu0 }
 0xc9a   :  { %v2383_v14 = vmul.f32 0.25, %v1698_v5  ;;  %v3279_v51 = vpop.f32.mrb[34].mxu0 }
 0xc9b   :  { %v1701_v41 = vpop.f32.mrb[35].mxu0 }
 0xc9c   :  { %2387 = vst.msk [vmem:[%s5227_s25] sm:$0xff] %vm253_vm1, %v2383_v14  ;;  %v2384_v19 = vmul.f32 0.25, %v1701_v41 }
 0xc9e   :  { %2388 = vst.msk [vmem:[%s5227_s25 + $0x8] sm:$0xff] %vm253_vm1, %v2384_v19 }
 0xcc0   :  { %v3374_v11 = vpop.f32.mrb[48].mxu1 }
 0xcc1   :  { %v3338_v35 = vpop.f32.mrb[36].mxu0  ;;  %v2385_v20 = vmul.f32 0.25, %v3374_v11  ;;  %v2362_v37 = vpop.f32.mrb[49].mxu1 }
 0xcc2   :  { %v2223_v1 = vpop.f32.mrb[37].mxu0  ;;  %v3375_v34 = vpop.f32.mrb[50].mxu1 }
 0xcc3   :  { %2389 = vst.msk [vmem:[%s5227_s25 + $0x10] sm:$0xff] %vm253_vm1, %v2385_v20  ;;  %v3339_v7 = vpop.f32.mrb[38].mxu0  ;;  %v2386_v17 = vmul.f32 0.25, %v3375_v34  ;;  %v2364_v47 = vpop.f32.mrb[51].mxu1 }
 0xcc4   :  { %v2226_v15 = vpop.f32.mrb[39].mxu0 }
 0xcc5   :  { %2390 = vst.msk [vmem:[%s5227_s25 + $0x18] sm:$0xff] %vm253_vm1, %v2386_v17 }
 0xcc9   :  { %v3342_v40 = vpop.f32.mrb[40].mxu0 }
 0xcca   :  { %v2239_v3 = vpop.f32.mrb[41].mxu0 }
 0xccb   :  { %v3343_v8 = vpop.f32.mrb[42].mxu0 }
 0xccc   :  { %v3589_v16 = vpack.i.bf16 %v3343_v8, %v3342_v40  ;;  %v2242_v27 = vpop.f32.mrb[43].mxu0 }
 0xccd   :  { %v3594_v0 = vpack.i.bf16 %v2242_v27, %v2239_v3 }
 0xcce   :  { %3590 = vrot.lane.b32.xlu1 %v3589_v16, %s3856_s5 }
 0xccf   :  { %3595 = vrot.lane.b32.xlu0 %v3594_v0, %s3856_s5 }
 0xcd1   :  { %v3346_v62 = vpop.f32.mrb[44].mxu0 }
 0xcd2   :  { %v2255_v22 = vpop.f32.mrb[45].mxu0 }
 0xcd3   :  { %v3347_v48 = vpop.f32.mrb[46].mxu0 }
 0xcd4   :  { %v3599_v50 = vpack.i.bf16 %v3347_v48, %v3346_v62  ;;  %v2258_v55 = vpop.f32.mrb[47].mxu0 }
 0xcd5   :  { %v3604_v45 = vpack.i.bf16 %v2258_v55, %v2255_v22 }
 0xcd6   :  { %3600 = vrot.lane.b32.xlu1 %v3599_v50, %s3857_s0 }
 0xcd7   :  { %3605 = vrot.lane.b32.xlu0 %v3604_v45, %s3857_s0 }
 0xcd9   :  { %v3350_v30 = vpop.f32.mrb[48].mxu0 }
 0xcda   :  { %v2271_v56 = vpop.f32.mrb[49].mxu0 }
 0xcdb   :  { %v3351_v33 = vpop.f32.mrb[50].mxu0 }
 0xcdc   :  { %v3614_v2 = vpack.i.bf16 %v3351_v33, %v3350_v30  ;;  %v2274_v59 = vpop.f32.mrb[51].mxu0 }
 0xcdd   :  { %v3609_v18 = vpack.i.bf16 %v2274_v59, %v2271_v56 }
 0xcde   :  { %3615 = vrot.lane.b32.xlu1 %v3614_v2, %s3858_s8 }
 0xcdf   :  { %3610 = vrot.lane.b32.xlu0 %v3609_v18, %s3858_s8 }
 0xd40   :  { %v3591_v36 = vpop.permute.xlu1 %3590 }
 0xd41   :  { %v3596_v54 = vpop.permute.xlu0 %3595  ;;  %v3593_v52 = vunpack.i.h.bf16 %v3591_v36  ;;  %v3592_v53 = vunpack.i.l.bf16 %v3591_v36 }
 0xd42   :  { %v3598_v9 = vunpack.i.h.bf16 %v3596_v54  ;;  %v3597_v21 = vunpack.i.l.bf16 %v3596_v54 }
 0xd43   :  { %v2442_v28 = vsel %vm253_vm1, %v3339_v7, %v3593_v52  ;;  %v2441_v43 = vsel %vm253_vm1, %v3338_v35, %v3592_v53  ;;  %v2981_v35 = vld [vmem:[%s5228_s15] ss:$0 sm:$0xff] }
 0xd44   :  { %v2440_v38 = vsel %vm253_vm1, %v2226_v15, %v3598_v9  ;;  %v2439_v46 = vsel %vm253_vm1, %v2223_v1, %v3597_v21  ;;  %v3630_v9 = vld [vmem:[%s5229_s18 + $0x8] sm:$0xff]   ;;  %v3631_v21 = vld [vmem:[%s5230_s20] sm:$0xff]  }
 0xd45   :  { %3392 = vmatprep.subr.bf16.mxu1 %v3631_v21 }
 0xd48   :  { %v3601_v60 = vpop.permute.xlu1 %3600 }
 0xd49   :  { %v3606_v63 = vpop.permute.xlu0 %3605  ;;  %v3603_v6 = vunpack.i.h.bf16 %v3601_v60  ;;  %v3602_v13 = vunpack.i.l.bf16 %v3601_v60 }
 0xd4a   :  { %v3608_v12 = vunpack.i.h.bf16 %v3606_v63  ;;  %v3607_v23 = vunpack.i.l.bf16 %v3606_v63 }
 0xd4b   :  { %v2446_v29 = vsel %vm724_vm2, %v2442_v28, %v3603_v6  ;;  %v2445_v39 = vsel %vm724_vm2, %v2441_v43, %v3602_v13  ;;  %v3632_v6 = vld [vmem:[%s5230_s20 + $0x8] sm:$0xff]  }
 0xd4c   :  { %v2444_v25 = vsel %vm724_vm2, %v2440_v38, %v3608_v12  ;;  %v2443_v26 = vsel %vm724_vm2, %v2439_v46, %v3607_v23 }
 0xd50   :  { %v3616_v57 = vpop.permute.xlu1 %3615 }
 0xd51   :  { %v3618_v44 = vunpack.i.h.bf16 %v3616_v57  ;;  %v3617_v32 = vunpack.i.l.bf16 %v3616_v57  ;;  %v3611_v49 = vpop.permute.xlu0 %3610 }
 0xd52   :  { %v3613_v58 = vunpack.i.h.bf16 %v3611_v49  ;;  %v3612_v31 = vunpack.i.l.bf16 %v3611_v49 }
 0xd53   :  { %v2450_v5 = vsel %vm729_vm3, %v2446_v29, %v3618_v44  ;;  %v2449_v14 = vsel %vm729_vm3, %v2445_v39, %v3617_v32 }
 0xd54   :  { %v2456_v51 = vpack.c.bf16 %v2450_v5, %v2449_v14  ;;  %v2448_v41 = vsel %vm729_vm3, %v2444_v25, %v3613_v58  ;;  %v2447_v19 = vsel %vm729_vm3, %v2443_v26, %v3612_v31  ;;  %v2986_v58 = vld [vmem:[%s5231_s16] ss:$0 sm:$0xff] }
 0xd55   :  { %v2455_v11 = vpack.c.bf16 %v2448_v41, %v2447_v19 }
 0xd57   :  { %3380 = vmatprep.mubr.msk.bf16.mxu1 %vm109_vm0, %v2455_v11 }
 0xd58   :  { %3381 = vmatmul.mubr.msk.bf16.vlgmr.msra.gmra.mrb[52].mxu1 %vm109_vm0, %v2456_v51  ;;  %v2987_v51 = vld [vmem:[%s5232_s17] ss:$0 sm:$0xff] }
 0xd59   :  { %3393 = vmatpush3.bf16.msra.mxu1 %v3631_v21 }
 0xd5a   :  { %3394 = vmatprep.subr.bf16.mxu1 %v3632_v6 }
 0xd5d   :  { %3395 = vmatpush3.bf16.msra.mxu1 %v3632_v6 }
 0xe2b   :  { %v3382_v20 = vpop.f32.mrb[52].mxu1 }
 0xe2c   :  { %v2516_v37 = vpop.f32.mrb[53].mxu1  ;;  %v2525_v1 = vadd.f32 %v3382_v20, %v2981_v35 }
 0xe2d   :  { %v2517_v34 = vadd.f32 %v2981_v35, %v2516_v37  ;;  %v3383_v7 = vpop.f32.mrb[54].mxu1 }
 0xe2e   :  { %v2519_v17 = vpop.f32.mrb[55].mxu1  ;;  %v2533_v10 = vadd.f32 %v2525_v1, %v4351_v42  ;;  %v2528_v40 = vadd.f32 %v3383_v7, %v2981_v35 }
 0xe2f   :  { %v2531_v47 = vadd.f32 %v2517_v34, %v4338_v24  ;;  %v2520_v15 = vadd.f32 %v2981_v35, %v2519_v17  ;;  %v3629_v24 = vld [vmem:[%s5229_s18] sm:$0xff]  }
 0xe30   :  { %v2534_v27 = vadd.f32 %v2528_v40, %v4353_v4  ;;  %v2543_v0 = vsel %vm109_vm0, %v2533_v10, 0.0  ;;  %3384 = vmatprep.subr.bf16.mxu0 %v3629_v24  ;;  %v3634_v40 = vld [vmem:[%s5230_s20 + $0x18] sm:$0xff]  }
 0xe31   :  { %v2532_v3 = vadd.f32 %v2520_v15, %v4340_v61  ;;  %v2537_v8 = vsel %vm109_vm0, %v2531_v47, 0.0  ;;  %3385 = vmatpush3.bf16.msra.mxu0 %v3629_v24 }
 0xe32   :  { %2538 = vadd.xlane.f32.xlu0 %v2537_v8  ;;  %v2546_v62 = vsel %vm109_vm0, %v2534_v27, 0.0  ;;  %3386 = vmatprep.subr.bf16.mxu0 %v3630_v9 }
 0xe33   :  { %v2540_v16 = vsel %vm109_vm0, %v2532_v3, 0.0 }
 0xe34   :  { %2541 = vadd.xlane.f32.xlu1 %v2540_v16 }
 0xe35   :  { %3387 = vmatpush3.bf16.msra.mxu0 %v3630_v9 }
 0xe36   :  { %2544 = vadd.xlane.f32.xlu0 %v2543_v0 }
 0xe3a   :  { %2547 = vadd.xlane.f32.xlu0 %v2546_v62 }
 0xebf   :  { %v2539_v61 = vpop.xlane.xlu0 %2538 }
 0xec0   :  { %v2549_v42 = vmul.f32 0.03125, %v2539_v61 }
 0xec1   :  { %v2542_v22 = vpop.xlane.xlu1 %2541 }
 0xec2   :  { %v2553_v48 = vsub.f32 %v2531_v47, %v2549_v42  ;;  %v2550_v50 = vmul.f32 0.03125, %v2542_v22 }
 0xec3   :  { %v2545_v55 = vpop.xlane.xlu0 %2544 }
 0xec4   :  { %v2554_v45 = vsub.f32 %v2532_v3, %v2550_v50  ;;  %v2551_v4 = vmul.f32 0.03125, %v2545_v55  ;;  %v2557_v30 = vmul.f32 %v2553_v48, %v2553_v48  ;;  %v2988_v3 = vld [vmem:[%s5233_s19] ss:$0 sm:$0xff] }
 0xec6   :  { %v2555_v56 = vsub.f32 %v2533_v10, %v2551_v4  ;;  %v2561_v33 = vsel %vm109_vm0, %v2557_v30, 0.0  ;;  %v2558_v2 = vmul.f32 %v2554_v45, %v2554_v45  ;;  %v3633_v10 = vld [vmem:[%s5230_s20 + $0x10] sm:$0xff]   ;;  %v2993_v30 = vld [vmem:[%s5234_s21] ss:$0 sm:$0xff] }
 0xec7   :  { %2562 = vadd.xlane.f32.xlu1 %v2561_v33  ;;  %v2548_v59 = vpop.xlane.xlu0 %2547  ;;  %3396 = vmatprep.subr.bf16.mxu1 %v3633_v10 }
 0xec8   :  { %v2552_v18 = vmul.f32 0.03125, %v2548_v59  ;;  %v2564_v36 = vsel %vm109_vm0, %v2558_v2, 0.0  ;;  %v2559_v54 = vmul.f32 %v2555_v56, %v2555_v56  ;;  %3397 = vmatpush3.bf16.msra.mxu1 %v3633_v10 }
 0xec9   :  { %2565 = vadd.xlane.f32.xlu0 %v2564_v36  ;;  %3398 = vmatprep.subr.bf16.mxu1 %v3634_v40 }
 0xeca   :  { %v2556_v60 = vsub.f32 %v2534_v27, %v2552_v18  ;;  %v2567_v52 = vsel %vm109_vm0, %v2559_v54, 0.0 }
 0xecb   :  { %2568 = vadd.xlane.f32.xlu1 %v2567_v52 }
 0xecc   :  { %v2560_v53 = vmul.f32 %v2556_v60, %v2556_v60  ;;  %3399 = vmatpush3.bf16.msra.mxu1 %v3634_v40 }
 0xece   :  { %v2570_v63 = vsel %vm109_vm0, %v2560_v53, 0.0 }
 0xecf   :  { %2571 = vadd.xlane.f32.xlu0 %v2570_v63 }
 0xf54   :  { %v2563_v13 = vpop.xlane.xlu1 %2562 }
 0xf55   :  { %v2573_v12 = vmul.f32 0.03125, %v2563_v13 }
 0xf56   :  { %v2566_v23 = vpop.xlane.xlu0 %2565 }
 0xf57   :  { %v2577_v28 = vadd.f32 1e-05, %v2573_v12  ;;  %v2574_v43 = vmul.f32 0.03125, %v2566_v23 }
 0xf58   :  { %v2569_v57 = vpop.xlane.xlu1 %2568 }
 0xf59   :  { %3835 = vrsqrt.f32 %v2577_v28  ;;  %v2578_v38 = vadd.f32 1e-05, %v2574_v43  ;;  %v2575_v46 = vmul.f32 0.03125, %v2569_v57 }
 0xf5b   :  { %3837 = vrsqrt.f32 %v2578_v38  ;;  %v2579_v44 = vadd.f32 1e-05, %v2575_v46 }
 0xf5c   :  { %v2572_v32 = vpop.xlane.xlu0 %2571 }
 0xf5d   :  { %3839 = vrsqrt.f32 %v2579_v44  ;;  %v2576_v49 = vmul.f32 0.03125, %v2572_v32 }
 0xf5f   :  { %v2580_v29 = vadd.f32 1e-05, %v2576_v49 }
 0xf61   :  { %3841 = vrsqrt.f32 %v2580_v29 }
 0xf63   :  { %v3836_v39 = vpop.eup %3835 }
 0xf64   :  { %v2585_v31 = vmul.f32 %v3836_v39, %v2553_v48 }
 0xf65   :  { %v3838_v25 = vpop.eup %3837 }
 0xf66   :  { %v2586_v26 = vmul.f32 %v3838_v25, %v2554_v45  ;;  %v2595_v5 = vmul.f32 %v2986_v58, %v2585_v31 }
 0xf67   :  { %v3840_v14 = vpop.eup %3839 }
 0xf68   :  { %v2587_v41 = vmul.f32 %v3840_v14, %v2555_v56  ;;  %v2596_v19 = vmul.f32 %v2986_v58, %v2586_v26  ;;  %v2605_v11 = vadd.f32 %v2987_v51, %v2595_v5 }
 0xf6a   :  { %v2606_v35 = vadd.f32 %v2987_v51, %v2596_v19  ;;  %v2597_v37 = vmul.f32 %v2986_v58, %v2587_v41 }
 0xf6b   :  { %v3842_v20 = vpop.eup %3841 }
 0xf6c   :  { %v2588_v1 = vmul.f32 %v3842_v20, %v2556_v60  ;;  %v2613_v34 = vpack.c.bf16 %v2606_v35, %v2605_v11  ;;  %v2607_v17 = vadd.f32 %v2987_v51, %v2597_v37 }
 0xf6e   :  { %v2598_v7 = vmul.f32 %v2986_v58, %v2588_v1  ;;  %3388 = vmatprep.mubr.msk.bf16.mxu0 %vm109_vm0, %v2613_v34 }
 0xf70   :  { %v2608_v47 = vadd.f32 %v2987_v51, %v2598_v7 }
 0xf72   :  { %v2614_v15 = vpack.c.bf16 %v2608_v47, %v2607_v17 }
 0xf74   :  { %3389 = vmatmul.mubr.msk.bf16.vlgmr.msra.gmra.mrb[52].mxu0 %vm109_vm0, %v2614_v15 }
0x1047   :  { %v3390_v8 = vpop.f32.mrb[52].mxu0 }
0x1048   :  { %v2683_v16 = vadd.f32 %v3390_v8, %v2988_v3  ;;  %v2674_v27 = vpop.f32.mrb[53].mxu0  ;;  %v3000_v8 = vld [vmem:[%s5235_s22] ss:$0 sm:$0xff] }
0x1049   :  { %v2675_v0 = vadd.f32 %v2988_v3, %v2674_v27  ;;  %v3391_v62 = vpop.f32.mrb[54].mxu0 }
0x104a   :  { %v2686_v24 = vadd.f32 %v3391_v62, %v2988_v3  ;;  %v2677_v61 = vpop.f32.mrb[55].mxu0  ;;  %v2691_v22 = vmax.f32 %v2683_v16, 0.0 }
0x104b   :  { %v2678_v42 = vadd.f32 %v2988_v3, %v2677_v61  ;;  %v2689_v50 = vmax.f32 %v2675_v0, 0.0  ;;  %v3001_v0 = vld [vmem:[%s5236_s23] ss:$0 sm:$0xff] }
0x104c   :  { %v2692_v48 = vmax.f32 %v2686_v24, 0.0 }
0x104d   :  { %v2690_v55 = vmax.f32 %v2678_v42, 0.0 }
0x104e   :  { %v2702_v45 = vpack.c.bf16 %v2692_v48, %v2691_v22 }
0x104f   :  { %v2701_v4 = vpack.c.bf16 %v2690_v55, %v2689_v50 }
0x1051   :  { %3400 = vmatprep.mubr.msk.bf16.mxu1 %vm1393_vm4, %v2701_v4 }
0x1052   :  { %3401 = vmatmul.mubr.msk.bf16.vlgmr.msra.gmra.mrb[56].mxu1 %vm1393_vm4, %v2702_v45 }
0x1125   :  { %v3402_v56 = vpop.f32.mrb[56].mxu1 }
0x1126   :  { %v2774_v33 = vpop.f32.mrb[57].mxu1  ;;  %v2783_v2 = vadd.f32 %v3402_v56, %v2993_v30 }
0x1127   :  { %v2775_v59 = vadd.f32 %v2993_v30, %v2774_v33  ;;  %v3403_v18 = vpop.f32.mrb[58].mxu1 }
0x1128   :  { %v2777_v36 = vpop.f32.mrb[59].mxu1  ;;  %v2786_v60 = vadd.f32 %v3403_v18, %v2993_v30  ;;  %v2791_v53 = vadd.f32 %v2783_v2, %v2607_v17 }
0x1129   :  { %v2789_v54 = vadd.f32 %v2775_v59, %v2605_v11  ;;  %v2778_v52 = vadd.f32 %v2993_v30, %v2777_v36 }
0x112a   :  { %v2792_v21 = vadd.f32 %v2786_v60, %v2608_v47  ;;  %v2801_v13 = vsel %vm109_vm0, %v2791_v53, 0.0 }
0x112b   :  { %v2790_v63 = vadd.f32 %v2778_v52, %v2606_v35  ;;  %v2795_v9 = vsel %vm109_vm0, %v2789_v54, 0.0 }
0x112c   :  { %2796 = vadd.xlane.f32.xlu1 %v2795_v9  ;;  %v2804_v12 = vsel %vm109_vm0, %v2792_v21, 0.0 }
0x112d   :  { %v2798_v6 = vsel %vm109_vm0, %v2790_v63, 0.0 }
0x112e   :  { %2799 = vadd.xlane.f32.xlu0 %v2798_v6 }
0x1130   :  { %2802 = vadd.xlane.f32.xlu1 %v2801_v13 }
0x1132   :  { %2805 = vadd.xlane.f32.xlu0 %v2804_v12 }
0x11b9   :  { %v2797_v23 = vpop.xlane.xlu1 %2796 }
0x11ba   :  { %v2807_v28 = vmul.f32 0.03125, %v2797_v23 }
0x11bb   :  { %v2800_v43 = vpop.xlane.xlu0 %2799 }
0x11bc   :  { %v2811_v57 = vsub.f32 %v2789_v54, %v2807_v28  ;;  %v2808_v38 = vmul.f32 0.03125, %v2800_v43 }
0x11bd   :  { %v2803_v46 = vpop.xlane.xlu1 %2802 }
0x11be   :  { %v2812_v44 = vsub.f32 %v2790_v63, %v2808_v38  ;;  %v2809_v32 = vmul.f32 0.03125, %v2803_v46  ;;  %v2815_v49 = vmul.f32 %v2811_v57, %v2811_v57 }
0x11bf   :  { %v2806_v29 = vpop.xlane.xlu0 %2805 }
0x11c0   :  { %v2813_v39 = vsub.f32 %v2791_v53, %v2809_v32  ;;  %v2810_v58 = vmul.f32 0.03125, %v2806_v29  ;;  %v2819_v31 = vsel %vm109_vm0, %v2815_v49, 0.0  ;;  %v2816_v25 = vmul.f32 %v2812_v44, %v2812_v44 }
0x11c1   :  { %2820 = vadd.xlane.f32.xlu1 %v2819_v31 }
0x11c2   :  { %v2814_v26 = vsub.f32 %v2792_v21, %v2810_v58  ;;  %v2822_v5 = vsel %vm109_vm0, %v2816_v25, 0.0  ;;  %v2817_v14 = vmul.f32 %v2813_v39, %v2813_v39 }
0x11c3   :  { %2823 = vadd.xlane.f32.xlu0 %v2822_v5 }
0x11c4   :  { %v2825_v51 = vsel %vm109_vm0, %v2817_v14, 0.0  ;;  %v2818_v41 = vmul.f32 %v2814_v26, %v2814_v26 }
0x11c5   :  { %2826 = vadd.xlane.f32.xlu1 %v2825_v51 }
0x11c6   :  { %v2828_v19 = vsel %vm109_vm0, %v2818_v41, 0.0 }
0x11c7   :  { %2829 = vadd.xlane.f32.xlu0 %v2828_v19 }
0x124e   :  { %v2821_v11 = vpop.xlane.xlu1 %2820 }
0x124f   :  { %v2831_v35 = vmul.f32 0.03125, %v2821_v11 }
0x1250   :  { %v2824_v20 = vpop.xlane.xlu0 %2823 }
0x1251   :  { %v2835_v37 = vadd.f32 1e-05, %v2831_v35  ;;  %v2832_v1 = vmul.f32 0.03125, %v2824_v20 }
0x1252   :  { %v2827_v34 = vpop.xlane.xlu1 %2826 }
0x1253   :  { %3843 = vrsqrt.f32 %v2835_v37  ;;  %v2836_v7 = vadd.f32 1e-05, %v2832_v1  ;;  %v2833_v17 = vmul.f32 0.03125, %v2827_v34 }
0x1254   :  { %v2830_v47 = vpop.xlane.xlu0 %2829 }
0x1255   :  { %3845 = vrsqrt.f32 %v2836_v7  ;;  %v2837_v15 = vadd.f32 1e-05, %v2833_v17  ;;  %v2834_v10 = vmul.f32 0.03125, %v2830_v47 }
0x1257   :  { %3847 = vrsqrt.f32 %v2837_v15  ;;  %v2838_v40 = vadd.f32 1e-05, %v2834_v10 }
0x1259   :  { %3849 = vrsqrt.f32 %v2838_v40 }
0x125d   :  { %v3844_v3 = vpop.eup %3843 }
0x125e   :  { %v2843_v16 = vmul.f32 %v3844_v3, %v2811_v57 }
0x125f   :  { %v3846_v27 = vpop.eup %3845 }
0x1260   :  { %v2853_v62 = vmul.f32 %v3000_v8, %v2843_v16  ;;  %v2844_v24 = vmul.f32 %v3846_v27, %v2812_v44 }
0x1261   :  { %v3848_v61 = vpop.eup %3847 }
0x1262   :  { %v2863_v42 = vadd.f32 %v3001_v0, %v2853_v62  ;;  %v2854_v22 = vmul.f32 %v3000_v8, %v2844_v24  ;;  %v2845_v48 = vmul.f32 %v3848_v61, %v2813_v39 }
0x1263   :  { %v3850_v50 = vpop.eup %3849 }
0x1264   :  { %2867 = vst.msk [vmem:[%s5237_s24] sm:$0xff] %vm109_vm0, %v2863_v42  ;;  %v2864_v55 = vadd.f32 %v3001_v0, %v2854_v22  ;;  %v2855_v45 = vmul.f32 %v3000_v8, %v2845_v48  ;;  %v2846_v4 = vmul.f32 %v3850_v50, %v2814_v26 }
0x1266   :  { %2868 = vst.msk [vmem:[%s5237_s24 + $0x8] sm:$0xff] %vm109_vm0, %v2864_v55  ;;  %v2865_v30 = vadd.f32 %v3001_v0, %v2855_v45  ;;  %v2856_v56 = vmul.f32 %v3000_v8, %v2846_v4 }
0x1268   :  { %2869 = vst.msk [vmem:[%s5237_s24 + $0x10] sm:$0xff] %vm109_vm0, %v2865_v30  ;;  %v2866_v33 = vadd.f32 %v3001_v0, %v2856_v56 }
0x126a   :  { %2870 = vst.msk [vmem:[%s5237_s24 + $0x18] sm:$0xff] %vm109_vm0, %v2866_v33 }

</bundles_post_ra>
